<compile_context>
chip_gen: v6e
topology: v6e:2x2x1
jax: 0.10.0
libtpu: 0.0.40
codegen_flags: <defaults>
</compile_context>

<pallas_src>
import numpy as np
import jax
import jax.numpy as jnp
from jax.experimental import pallas as pl
from jax.experimental.pallas import tpu as pltpu

STYLE_DIM = 2        # style_dim from the module __init__
N_LAYER = 10         # n_layer
N_STYLES = 18        # n_styles
HIDDEN = 64          # per-net hidden width (synthetic, small)
FUSED_H = 2 * HIDDEN # fused hidden width = 128 (one MXU lane tile)
NEG_SLOPE = 0.01     # LeakyReLU default slope
LOG_2PI = float(np.log(2.0 * np.pi))
OUT_LANES = 128      # lane-dense output slab width
SUBLANE = 8          # f32 sublane tile


def _leaky_relu(x):
    return jnp.where(x > 0, x, NEG_SLOPE * x)


# --------------------------------- kernel ------------------------------------
def flow_kernel(x_ref, pack_ref, w2_ref, out_ref):
    B = x_ref.shape[0]
    n_layer = pack_ref.shape[0]

    # carry z as two (B,1) columns -> coupling update is pure VPU work
    z0 = x_ref[:, 0:1]
    z1 = x_ref[:, 1:2]
    s_acc = jnp.zeros((B, 1), jnp.float32)   # deferred log_det accumulator

    for i in range(n_layer):                 # static unroll (n_layer = 10)
        upd = i % 2                          # column updated by this layer
        z_keep = z1 if upd == 0 else z0      # mask == 1 column (pass-through)
        z_upd = z0 if upd == 0 else z1

        p = pack_ref[i]                      # (8, 2H) f32 — one vreg-sized load
        w1row = p[0:1, :]                    # fused W1 row for the kept column
        b1 = p[1:2, :]
        b2 = p[2:3, :]
        b3s = p[3:4, 0:1]                    # (1,1) scalar biases of layer 3
        b3t = p[3:4, 1:2]
        w3s = p[4:5, :]                      # [sw3[:,upd] | 0]   (1, 2H)
        w3t = p[5:6, :]                      # [0 | tw3[:,upd]]   (1, 2H)

        # fused layer 1: K == 1 after static mask specialization -> VPU FMA (f32)
        h1 = _leaky_relu(z_keep * w1row + b1)                          # (B, 2H)
        # fused layer 2: one lane-dense (B,128)@(128,128) bf16 MXU matmul, f32 acc
        h2 = _leaky_relu(
            jnp.dot(h1.astype(jnp.bfloat16), w2_ref[i],
                    preferred_element_type=jnp.float32) + b2)          # (B, 2H)
        # fused layer 3: W3 columns folded into pack -> VPU mul + XLU lane-reduce
        s = jnp.tanh(jnp.sum(h2 * w3s, axis=1, keepdims=True) + b3s)   # (B,1)
        t = jnp.sum(h2 * w3t, axis=1, keepdims=True) + b3t             # (B,1)

        new = (z_upd - t) * jnp.exp(-s)
        if upd == 0:
            z0 = new
        else:
            z1 = new
        s_acc = s_acc + s                    # log_det -= sum(s) deferred

    log_det = -s_acc                                                   # (B,1)
    # Normal(0,1).log_prob(z).sum(dim=1) for D = 2
    logz_sum = -0.5 * (z0 * z0 + z1 * z1) - LOG_2PI                    # (B,1)

    # single unmasked lane-dense store: [z0 | z1 | log_det | logz_sum | 0...]
    pad = jnp.zeros((B, OUT_LANES - 4), jnp.float32)
    out_ref[...] = jnp.concatenate([z0, z1, log_det, logz_sum, pad], axis=1)


# ---------------------------- weight packing (once) ---------------------------
def pack_flow_params(params):
    """Fuse per-layer scale/translation nets into one 2H-wide MLP, specialize
    the alternating parity masks statically (style_dim == 2), fold W3/b3 into
    the pack array, and store the block-diagonal W2 in bfloat16."""
    sw1, sb1, sw2, sb2, sw3, sb3, tw1, tb1, tw2, tb2, tw3, tb3 = params
    L, D, H = sw1.shape
    assert D == 2, "static mask specialization assumes style_dim == 2"
    zH = jnp.zeros((H,), jnp.float32)
    z2H = jnp.zeros((2 * H,), jnp.float32)
    zHH = jnp.zeros((H, H), jnp.float32)

    pack_rows, w2_rows = [], []
    for i in range(L):
        upd = i % 2            # column updated by this layer (mask == 0)
        keep = 1 - upd         # column passed through        (mask == 1)
        w1row = jnp.concatenate([sw1[i, keep, :], tw1[i, keep, :]])      # (2H,)
        b1 = jnp.concatenate([sb1[i, 0, :], tb1[i, 0, :]])               # (2H,)
        b2 = jnp.concatenate([sb2[i, 0, :], tb2[i, 0, :]])               # (2H,)
        b3 = jnp.concatenate([sb3[i, 0, upd:upd + 1], tb3[i, 0, upd:upd + 1],
                              jnp.zeros((2 * H - 2,), jnp.float32)])     # (2H,)
        w3s = jnp.concatenate([sw3[i, :, upd], zH])                      # (2H,)
        w3t = jnp.concatenate([zH, tw3[i, :, upd]])                      # (2H,)
        pack_rows.append(jnp.stack([w1row, b1, b2, b3, w3s, w3t, z2H, z2H]))
        w2_rows.append(jnp.block([[sw2[i], zHH], [zHH, tw2[i]]]))        # (2H,2H)

    pack = jnp.stack(pack_rows).astype(jnp.float32)     # (L, 8, 2H) f32
    w2f = jnp.stack(w2_rows).astype(jnp.bfloat16)       # (L, 2H, 2H) bf16
    return pack, w2f


# --------------------------------- wrapper ------------------------------------
def flow_forward(inputs, packed):
    """Matches FLOW.forward: returns (loss, logz, log_det_jacobian, z)."""
    pack, w2f = packed
    if inputs.ndim == 3:
        bs, n_styles, dim = inputs.shape
        latents = inputs.reshape(bs * n_styles, dim)
    elif inputs.ndim == 2:
        latents = inputs
    else:
        raise NotImplementedError
    latents = latents.astype(jnp.float32)
    B, D = latents.shape

    # sublane-align the batch (f32 sublane tile = 8); padded rows are dropped
    # below and never enter the loss (loss is computed in the wrapper).
    B_pad = ((B + SUBLANE - 1) // SUBLANE) * SUBLANE
    if B_pad != B:
        latents = jnp.concatenate(
            [latents, jnp.zeros((B_pad - B, D), jnp.float32)], axis=0)

    vmem = pl.BlockSpec(memory_space=pltpu.MemorySpace.VMEM)
    slab = pl.pallas_call(
        flow_kernel,
        out_shape=jax.ShapeDtypeStruct((B_pad, OUT_LANES), jnp.float32),
        in_specs=[vmem, vmem, vmem],
        out_specs=vmem,
    )(latents, pack, w2f)

    z = slab[:B, 0:D]
    log_det = slab[:B, 2]
    logz_sum = slab[:B, 3]
    logz = logz_sum / float(D)
    loss = -jnp.mean(logz_sum + log_det) / float(D)
    return loss, logz, log_det, z


# ----------------------------- pure-JAX reference -----------------------------
def flow_ref(latents, masks, params):
    sw1, sb1, sw2, sb2, sw3, sb3, tw1, tb1, tw2, tb2, tw3, tb3 = params
    z = latents.astype(jnp.float32)
    B, D = z.shape
    log_det = jnp.zeros((B,), jnp.float32)

    def mlp(h, w1, b1, w2, b2, w3, b3):
        h1 = _leaky_relu(h @ w1 + b1)
        h2 = _leaky_relu(h1 @ w2 + b2)
        return h2 @ w3 + b3

    for i in range(masks.shape[0]):
        m = masks[i]
        one_m = 1.0 - m
        zm = m * z
        s = jnp.tanh(mlp(zm, sw1[i], sb1[i], sw2[i], sb2[i], sw3[i], sb3[i])) * one_m
        t = mlp(zm, tw1[i], tb1[i], tw2[i], tb2[i], tw3[i], tb3[i]) * one_m
        z = zm + one_m * (z - t) * jnp.exp(-s)
        log_det = log_det - jnp.sum(s, axis=1)

    logz_sum = jnp.sum(-0.5 * z * z - 0.5 * LOG_2PI, axis=1)
    loss = -jnp.mean(logz_sum + log_det) / D
    logz = logz_sum / D
    return loss, logz, log_det, z


# ------------------------------- param helpers --------------------------------
def init_params(key, n_layer, D, H):
    ks = jax.random.split(key, 12)

    def w(k, shape, scale):
        return jax.random.normal(k, shape, dtype=jnp.float32) * scale

    sw1 = w(ks[0], (n_layer, D, H), 0.4)
    sb1 = w(ks[1], (n_layer, 1, H), 0.05)
    sw2 = w(ks[2], (n_layer, H, H), 0.1)
    sb2 = w(ks[3], (n_layer, 1, H), 0.05)
    sw3 = w(ks[4], (n_layer, H, D), 0.1)
    sb3 = w(ks[5], (n_layer, 1, D), 0.05)
    tw1 = w(ks[6], (n_layer, D, H), 0.4)
    tb1 = w(ks[7], (n_layer, 1, H), 0.05)
    tw2 = w(ks[8], (n_layer, H, H), 0.1)
    tb2 = w(ks[9], (n_layer, 1, H), 0.05)
    tw3 = w(ks[10], (n_layer, H, D), 0.1)
    tb3 = w(ks[11], (n_layer, 1, D), 0.05)
    return (sw1, sb1, sw2, sb2, sw3, sb3, tw1, tb1, tw2, tb2, tw3, tb3)


def make_masks(n_layer, D):
    base = jnp.arange(D)
    return jnp.stack(
        [((base + i) % 2).astype(jnp.float32) for i in range(n_layer)]
    )[:, None, :]                                  # (n_layer, 1, D)


if __name__ == "__main__":
    key = jax.random.PRNGKey(0)
    k_in, k_par = jax.random.split(key)

    bs = 2
    inputs = jax.random.normal(k_in, (bs, N_STYLES, STYLE_DIM), dtype=jnp.float32)

    params = init_params(k_par, N_LAYER, STYLE_DIM, HIDDEN)
    masks = make_masks(N_LAYER, STYLE_DIM)
    packed = pack_flow_params(params)              # one-time weight prep

    loss, logz, logdet, z = flow_forward(inputs, packed)
    jax.block_until_ready((loss, logz, logdet, z))

    r_loss, r_logz, r_logdet, r_z = flow_ref(
        inputs.reshape(-1, STYLE_DIM), masks, params)

    # Kernel uses bf16 MXU operands (weights + activations of the fused W2
    # matmul) with f32 accumulation; allow a few e-3 drift accumulated over the
    # 10-layer serial chain vs the f32 reference.
    tol = dict(rtol=2e-2, atol=2e-2)
    np.testing.assert_allclose(np.asarray(loss), np.asarray(r_loss), **tol)
    np.testing.assert_allclose(np.asarray(logz), np.asarray(r_logz), **tol)
    np.testing.assert_allclose(np.asarray(logdet), np.asarray(r_logdet), **tol)
    np.testing.assert_allclose(np.asarray(z), np.asarray(r_z), **tol)

    print("KERNEL_OK")
</pallas_src>

<mosaic_0001>
module attributes {stable_mosaic.version = 11 : i64} {
  func.func @flow_kernel(%arg0: memref<40x2xf32, #tpu.memory_space<vmem>>, %arg1: memref<10x8x128xf32, #tpu.memory_space<vmem>>, %arg2: memref<10x128x128xbf16, #tpu.memory_space<vmem>>, %arg3: memref<40x128xf32, #tpu.memory_space<vmem>>) attributes {dimension_semantics = [], scalar_prefetch = 0 : i64, scratch_operands = 0 : i64, tpu.core_type = #tpu.core_type<tc>} {
    %c0 = arith.constant 0 : index
    %c0_0 = arith.constant 0 : index
    %0 = vector.load %arg0[%c0, %c0_0] : memref<40x2xf32, #tpu.memory_space<vmem>>, vector<40x1xf32>
    %c0_1 = arith.constant 0 : index
    %c1 = arith.constant 1 : index
    %1 = vector.load %arg0[%c0_1, %c1] : memref<40x2xf32, #tpu.memory_space<vmem>>, vector<40x1xf32>
    %cst = arith.constant 0.000000e+00 : f32
    %2 = vector.broadcast %cst : f32 to vector<40x1xf32>
    %c0_2 = arith.constant 0 : index
    %c0_3 = arith.constant 0 : index
    %c0_4 = arith.constant 0 : index
    %3 = vector.load %arg1[%c0_2, %c0_3, %c0_4] : memref<10x8x128xf32, #tpu.memory_space<vmem>>, vector<1x8x128xf32>
    %4 = vector.shape_cast %3 : vector<1x8x128xf32> to vector<8x128xf32>
    %5 = vector.extract_strided_slice %4 {offsets = [0, 0], sizes = [1, 128], strides = [1, 1]} : vector<8x128xf32> to vector<1x128xf32>
    %6 = vector.extract_strided_slice %4 {offsets = [1, 0], sizes = [1, 128], strides = [1, 1]} : vector<8x128xf32> to vector<1x128xf32>
    %7 = vector.extract_strided_slice %4 {offsets = [2, 0], sizes = [1, 128], strides = [1, 1]} : vector<8x128xf32> to vector<1x128xf32>
    %8 = vector.extract_strided_slice %4 {offsets = [3, 0], sizes = [1, 1], strides = [1, 1]} : vector<8x128xf32> to vector<1x1xf32>
    %9 = vector.extract_strided_slice %4 {offsets = [3, 1], sizes = [1, 1], strides = [1, 1]} : vector<8x128xf32> to vector<1x1xf32>
    %10 = vector.extract_strided_slice %4 {offsets = [4, 0], sizes = [1, 128], strides = [1, 1]} : vector<8x128xf32> to vector<1x128xf32>
    %11 = vector.extract_strided_slice %4 {offsets = [5, 0], sizes = [1, 128], strides = [1, 1]} : vector<8x128xf32> to vector<1x128xf32>
    %12 = vector.broadcast %1 : vector<40x1xf32> to vector<40x128xf32>
    %13 = vector.broadcast %5 : vector<1x128xf32> to vector<40x128xf32>
    %14 = arith.mulf %12, %13 : vector<40x128xf32>
    %15 = vector.broadcast %6 : vector<1x128xf32> to vector<40x128xf32>
    %16 = arith.addf %14, %15 : vector<40x128xf32>
    %cst_5 = arith.constant 0.000000e+00 : f32
    %17 = vector.broadcast %cst_5 : f32 to vector<40x128xf32>
    %18 = arith.cmpf ogt, %16, %17 : vector<40x128xf32>
    %cst_6 = arith.constant 0.00999999977 : f32
    %19 = vector.broadcast %cst_6 : f32 to vector<40x128xf32>
    %20 = arith.mulf %19, %16 : vector<40x128xf32>
    %21 = arith.select %18, %16, %20 : vector<40x128xi1>, vector<40x128xf32>
    %22 = arith.truncf %21 : vector<40x128xf32> to vector<40x128xbf16>
    %c0_7 = arith.constant 0 : index
    %c0_8 = arith.constant 0 : index
    %c0_9 = arith.constant 0 : index
    %23 = vector.load %arg2[%c0_7, %c0_8, %c0_9] : memref<10x128x128xbf16, #tpu.memory_space<vmem>>, vector<1x128x128xbf16>
    %24 = vector.shape_cast %23 : vector<1x128x128xbf16> to vector<128x128xbf16>
    %cst_10 = arith.constant dense<0.000000e+00> : vector<40x128xf32>
    %25 = tpu.matmul %22, %24, %cst_10 {dimension_numbers = #tpu.dot_dimension_numbers<[1], [0], [0], [1], [0, 0, 1, 1], [], []>} : vector<40x128xbf16>, vector<128x128xbf16>, vector<40x128xf32> -> vector<40x128xf32>
    %26 = vector.broadcast %7 : vector<1x128xf32> to vector<40x128xf32>
    %27 = arith.addf %25, %26 : vector<40x128xf32>
    %cst_11 = arith.constant 0.000000e+00 : f32
    %28 = vector.broadcast %cst_11 : f32 to vector<40x128xf32>
    %29 = arith.cmpf ogt, %27, %28 : vector<40x128xf32>
    %cst_12 = arith.constant 0.00999999977 : f32
    %30 = vector.broadcast %cst_12 : f32 to vector<40x128xf32>
    %31 = arith.mulf %30, %27 : vector<40x128xf32>
    %32 = arith.select %29, %27, %31 : vector<40x128xi1>, vector<40x128xf32>
    %33 = vector.broadcast %10 : vector<1x128xf32> to vector<40x128xf32>
    %34 = arith.mulf %32, %33 : vector<40x128xf32>
    %cst_13 = arith.constant dense<0.000000e+00> : vector<40xf32>
    %35 = vector.multi_reduction <add>, %34, %cst_13 [1] : vector<40x128xf32> to vector<40xf32>
    %36 = vector.shape_cast %35 : vector<40xf32> to vector<40x1xf32>
    %37 = vector.broadcast %8 : vector<1x1xf32> to vector<40x1xf32>
    %38 = arith.addf %36, %37 : vector<40x1xf32>
    %39 = math.tanh %38 : vector<40x1xf32>
    %40 = vector.broadcast %11 : vector<1x128xf32> to vector<40x128xf32>
    %41 = arith.mulf %32, %40 : vector<40x128xf32>
    %cst_14 = arith.constant dense<0.000000e+00> : vector<40xf32>
    %42 = vector.multi_reduction <add>, %41, %cst_14 [1] : vector<40x128xf32> to vector<40xf32>
    %43 = vector.shape_cast %42 : vector<40xf32> to vector<40x1xf32>
    %44 = vector.broadcast %9 : vector<1x1xf32> to vector<40x1xf32>
    %45 = arith.addf %43, %44 : vector<40x1xf32>
    %46 = arith.subf %0, %45 : vector<40x1xf32>
    %cst_15 = arith.constant 0.000000e+00 : f32
    %47 = vector.broadcast %cst_15 : f32 to vector<40x1xf32>
    %48 = arith.subf %47, %39 : vector<40x1xf32>
    %49 = math.exp %48 : vector<40x1xf32>
    %50 = arith.mulf %46, %49 : vector<40x1xf32>
    %51 = arith.addf %2, %39 : vector<40x1xf32>
    %c1_16 = arith.constant 1 : index
    %c0_17 = arith.constant 0 : index
    %c0_18 = arith.constant 0 : index
    %52 = vector.load %arg1[%c1_16, %c0_17, %c0_18] : memref<10x8x128xf32, #tpu.memory_space<vmem>>, vector<1x8x128xf32>
    %53 = vector.shape_cast %52 : vector<1x8x128xf32> to vector<8x128xf32>
    %54 = vector.extract_strided_slice %53 {offsets = [0, 0], sizes = [1, 128], strides = [1, 1]} : vector<8x128xf32> to vector<1x128xf32>
    %55 = vector.extract_strided_slice %53 {offsets = [1, 0], sizes = [1, 128], strides = [1, 1]} : vector<8x128xf32> to vector<1x128xf32>
    %56 = vector.extract_strided_slice %53 {offsets = [2, 0], sizes = [1, 128], strides = [1, 1]} : vector<8x128xf32> to vector<1x128xf32>
    %57 = vector.extract_strided_slice %53 {offsets = [3, 0], sizes = [1, 1], strides = [1, 1]} : vector<8x128xf32> to vector<1x1xf32>
    %58 = vector.extract_strided_slice %53 {offsets = [3, 1], sizes = [1, 1], strides = [1, 1]} : vector<8x128xf32> to vector<1x1xf32>
    %59 = vector.extract_strided_slice %53 {offsets = [4, 0], sizes = [1, 128], strides = [1, 1]} : vector<8x128xf32> to vector<1x128xf32>
    %60 = vector.extract_strided_slice %53 {offsets = [5, 0], sizes = [1, 128], strides = [1, 1]} : vector<8x128xf32> to vector<1x128xf32>
    %61 = vector.broadcast %50 : vector<40x1xf32> to vector<40x128xf32>
    %62 = vector.broadcast %54 : vector<1x128xf32> to vector<40x128xf32>
    %63 = arith.mulf %61, %62 : vector<40x128xf32>
    %64 = vector.broadcast %55 : vector<1x128xf32> to vector<40x128xf32>
    %65 = arith.addf %63, %64 : vector<40x128xf32>
    %cst_19 = arith.constant 0.000000e+00 : f32
    %66 = vector.broadcast %cst_19 : f32 to vector<40x128xf32>
    %67 = arith.cmpf ogt, %65, %66 : vector<40x128xf32>
    %cst_20 = arith.constant 0.00999999977 : f32
    %68 = vector.broadcast %cst_20 : f32 to vector<40x128xf32>
    %69 = arith.mulf %68, %65 : vector<40x128xf32>
    %70 = arith.select %67, %65, %69 : vector<40x128xi1>, vector<40x128xf32>
    %71 = arith.truncf %70 : vector<40x128xf32> to vector<40x128xbf16>
    %c1_21 = arith.constant 1 : index
    %c0_22 = arith.constant 0 : index
    %c0_23 = arith.constant 0 : index
    %72 = vector.load %arg2[%c1_21, %c0_22, %c0_23] : memref<10x128x128xbf16, #tpu.memory_space<vmem>>, vector<1x128x128xbf16>
    %73 = vector.shape_cast %72 : vector<1x128x128xbf16> to vector<128x128xbf16>
    %cst_24 = arith.constant dense<0.000000e+00> : vector<40x128xf32>
    %74 = tpu.matmul %71, %73, %cst_24 {dimension_numbers = #tpu.dot_dimension_numbers<[1], [0], [0], [1], [0, 0, 1, 1], [], []>} : vector<40x128xbf16>, vector<128x128xbf16>, vector<40x128xf32> -> vector<40x128xf32>
    %75 = vector.broadcast %56 : vector<1x128xf32> to vector<40x128xf32>
    %76 = arith.addf %74, %75 : vector<40x128xf32>
    %cst_25 = arith.constant 0.000000e+00 : f32
    %77 = vector.broadcast %cst_25 : f32 to vector<40x128xf32>
    %78 = arith.cmpf ogt, %76, %77 : vector<40x128xf32>
    %cst_26 = arith.constant 0.00999999977 : f32
    %79 = vector.broadcast %cst_26 : f32 to vector<40x128xf32>
    %80 = arith.mulf %79, %76 : vector<40x128xf32>
    %81 = arith.select %78, %76, %80 : vector<40x128xi1>, vector<40x128xf32>
    %82 = vector.broadcast %59 : vector<1x128xf32> to vector<40x128xf32>
    %83 = arith.mulf %81, %82 : vector<40x128xf32>
    %cst_27 = arith.constant dense<0.000000e+00> : vector<40xf32>
    %84 = vector.multi_reduction <add>, %83, %cst_27 [1] : vector<40x128xf32> to vector<40xf32>
    %85 = vector.shape_cast %84 : vector<40xf32> to vector<40x1xf32>
    %86 = vector.broadcast %57 : vector<1x1xf32> to vector<40x1xf32>
    %87 = arith.addf %85, %86 : vector<40x1xf32>
    %88 = math.tanh %87 : vector<40x1xf32>
    %89 = vector.broadcast %60 : vector<1x128xf32> to vector<40x128xf32>
    %90 = arith.mulf %81, %89 : vector<40x128xf32>
    %cst_28 = arith.constant dense<0.000000e+00> : vector<40xf32>
    %91 = vector.multi_reduction <add>, %90, %cst_28 [1] : vector<40x128xf32> to vector<40xf32>
    %92 = vector.shape_cast %91 : vector<40xf32> to vector<40x1xf32>
    %93 = vector.broadcast %58 : vector<1x1xf32> to vector<40x1xf32>
    %94 = arith.addf %92, %93 : vector<40x1xf32>
    %95 = arith.subf %1, %94 : vector<40x1xf32>
    %cst_29 = arith.constant 0.000000e+00 : f32
    %96 = vector.broadcast %cst_29 : f32 to vector<40x1xf32>
    %97 = arith.subf %96, %88 : vector<40x1xf32>
    %98 = math.exp %97 : vector<40x1xf32>
    %99 = arith.mulf %95, %98 : vector<40x1xf32>
    %100 = arith.addf %51, %88 : vector<40x1xf32>
    %c2 = arith.constant 2 : index
    %c0_30 = arith.constant 0 : index
    %c0_31 = arith.constant 0 : index
    %101 = vector.load %arg1[%c2, %c0_30, %c0_31] : memref<10x8x128xf32, #tpu.memory_space<vmem>>, vector<1x8x128xf32>
    %102 = vector.shape_cast %101 : vector<1x8x128xf32> to vector<8x128xf32>
    %103 = vector.extract_strided_slice %102 {offsets = [0, 0], sizes = [1, 128], strides = [1, 1]} : vector<8x128xf32> to vector<1x128xf32>
    %104 = vector.extract_strided_slice %102 {offsets = [1, 0], sizes = [1, 128], strides = [1, 1]} : vector<8x128xf32> to vector<1x128xf32>
    %105 = vector.extract_strided_slice %102 {offsets = [2, 0], sizes = [1, 128], strides = [1, 1]} : vector<8x128xf32> to vector<1x128xf32>
    %106 = vector.extract_strided_slice %102 {offsets = [3, 0], sizes = [1, 1], strides = [1, 1]} : vector<8x128xf32> to vector<1x1xf32>
    %107 = vector.extract_strided_slice %102 {offsets = [3, 1], sizes = [1, 1], strides = [1, 1]} : vector<8x128xf32> to vector<1x1xf32>
    %108 = vector.extract_strided_slice %102 {offsets = [4, 0], sizes = [1, 128], strides = [1, 1]} : vector<8x128xf32> to vector<1x128xf32>
    %109 = vector.extract_strided_slice %102 {offsets = [5, 0], sizes = [1, 128], strides = [1, 1]} : vector<8x128xf32> to vector<1x128xf32>
    %110 = vector.broadcast %99 : vector<40x1xf32> to vector<40x128xf32>
    %111 = vector.broadcast %103 : vector<1x128xf32> to vector<40x128xf32>
    %112 = arith.mulf %110, %111 : vector<40x128xf32>
    %113 = vector.broadcast %104 : vector<1x128xf32> to vector<40x128xf32>
    %114 = arith.addf %112, %113 : vector<40x128xf32>
    %cst_32 = arith.constant 0.000000e+00 : f32
    %115 = vector.broadcast %cst_32 : f32 to vector<40x128xf32>
    %116 = arith.cmpf ogt, %114, %115 : vector<40x128xf32>
    %cst_33 = arith.constant 0.00999999977 : f32
    %117 = vector.broadcast %cst_33 : f32 to vector<40x128xf32>
    %118 = arith.mulf %117, %114 : vector<40x128xf32>
    %119 = arith.select %116, %114, %118 : vector<40x128xi1>, vector<40x128xf32>
    %120 = arith.truncf %119 : vector<40x128xf32> to vector<40x128xbf16>
    %c2_34 = arith.constant 2 : index
    %c0_35 = arith.constant 0 : index
    %c0_36 = arith.constant 0 : index
    %121 = vector.load %arg2[%c2_34, %c0_35, %c0_36] : memref<10x128x128xbf16, #tpu.memory_space<vmem>>, vector<1x128x128xbf16>
    %122 = vector.shape_cast %121 : vector<1x128x128xbf16> to vector<128x128xbf16>
    %cst_37 = arith.constant dense<0.000000e+00> : vector<40x128xf32>
    %123 = tpu.matmul %120, %122, %cst_37 {dimension_numbers = #tpu.dot_dimension_numbers<[1], [0], [0], [1], [0, 0, 1, 1], [], []>} : vector<40x128xbf16>, vector<128x128xbf16>, vector<40x128xf32> -> vector<40x128xf32>
    %124 = vector.broadcast %105 : vector<1x128xf32> to vector<40x128xf32>
    %125 = arith.addf %123, %124 : vector<40x128xf32>
    %cst_38 = arith.constant 0.000000e+00 : f32
    %126 = vector.broadcast %cst_38 : f32 to vector<40x128xf32>
    %127 = arith.cmpf ogt, %125, %126 : vector<40x128xf32>
    %cst_39 = arith.constant 0.00999999977 : f32
    %128 = vector.broadcast %cst_39 : f32 to vector<40x128xf32>
    %129 = arith.mulf %128, %125 : vector<40x128xf32>
    %130 = arith.select %127, %125, %129 : vector<40x128xi1>, vector<40x128xf32>
    %131 = vector.broadcast %108 : vector<1x128xf32> to vector<40x128xf32>
    %132 = arith.mulf %130, %131 : vector<40x128xf32>
    %cst_40 = arith.constant dense<0.000000e+00> : vector<40xf32>
    %133 = vector.multi_reduction <add>, %132, %cst_40 [1] : vector<40x128xf32> to vector<40xf32>
    %134 = vector.shape_cast %133 : vector<40xf32> to vector<40x1xf32>
    %135 = vector.broadcast %106 : vector<1x1xf32> to vector<40x1xf32>
    %136 = arith.addf %134, %135 : vector<40x1xf32>
    %137 = math.tanh %136 : vector<40x1xf32>
    %138 = vector.broadcast %109 : vector<1x128xf32> to vector<40x128xf32>
    %139 = arith.mulf %130, %138 : vector<40x128xf32>
    %cst_41 = arith.constant dense<0.000000e+00> : vector<40xf32>
    %140 = vector.multi_reduction <add>, %139, %cst_41 [1] : vector<40x128xf32> to vector<40xf32>
    %141 = vector.shape_cast %140 : vector<40xf32> to vector<40x1xf32>
    %142 = vector.broadcast %107 : vector<1x1xf32> to vector<40x1xf32>
    %143 = arith.addf %141, %142 : vector<40x1xf32>
    %144 = arith.subf %50, %143 : vector<40x1xf32>
    %cst_42 = arith.constant 0.000000e+00 : f32
    %145 = vector.broadcast %cst_42 : f32 to vector<40x1xf32>
    %146 = arith.subf %145, %137 : vector<40x1xf32>
    %147 = math.exp %146 : vector<40x1xf32>
    %148 = arith.mulf %144, %147 : vector<40x1xf32>
    %149 = arith.addf %100, %137 : vector<40x1xf32>
    %c3 = arith.constant 3 : index
    %c0_43 = arith.constant 0 : index
    %c0_44 = arith.constant 0 : index
    %150 = vector.load %arg1[%c3, %c0_43, %c0_44] : memref<10x8x128xf32, #tpu.memory_space<vmem>>, vector<1x8x128xf32>
    %151 = vector.shape_cast %150 : vector<1x8x128xf32> to vector<8x128xf32>
    %152 = vector.extract_strided_slice %151 {offsets = [0, 0], sizes = [1, 128], strides = [1, 1]} : vector<8x128xf32> to vector<1x128xf32>
    %153 = vector.extract_strided_slice %151 {offsets = [1, 0], sizes = [1, 128], strides = [1, 1]} : vector<8x128xf32> to vector<1x128xf32>
    %154 = vector.extract_strided_slice %151 {offsets = [2, 0], sizes = [1, 128], strides = [1, 1]} : vector<8x128xf32> to vector<1x128xf32>
    %155 = vector.extract_strided_slice %151 {offsets = [3, 0], sizes = [1, 1], strides = [1, 1]} : vector<8x128xf32> to vector<1x1xf32>
    %156 = vector.extract_strided_slice %151 {offsets = [3, 1], sizes = [1, 1], strides = [1, 1]} : vector<8x128xf32> to vector<1x1xf32>
    %157 = vector.extract_strided_slice %151 {offsets = [4, 0], sizes = [1, 128], strides = [1, 1]} : vector<8x128xf32> to vector<1x128xf32>
    %158 = vector.extract_strided_slice %151 {offsets = [5, 0], sizes = [1, 128], strides = [1, 1]} : vector<8x128xf32> to vector<1x128xf32>
    %159 = vector.broadcast %148 : vector<40x1xf32> to vector<40x128xf32>
    %160 = vector.broadcast %152 : vector<1x128xf32> to vector<40x128xf32>
    %161 = arith.mulf %159, %160 : vector<40x128xf32>
    %162 = vector.broadcast %153 : vector<1x128xf32> to vector<40x128xf32>
    %163 = arith.addf %161, %162 : vector<40x128xf32>
    %cst_45 = arith.constant 0.000000e+00 : f32
    %164 = vector.broadcast %cst_45 : f32 to vector<40x128xf32>
    %165 = arith.cmpf ogt, %163, %164 : vector<40x128xf32>
    %cst_46 = arith.constant 0.00999999977 : f32
    %166 = vector.broadcast %cst_46 : f32 to vector<40x128xf32>
    %167 = arith.mulf %166, %163 : vector<40x128xf32>
    %168 = arith.select %165, %163, %167 : vector<40x128xi1>, vector<40x128xf32>
    %169 = arith.truncf %168 : vector<40x128xf32> to vector<40x128xbf16>
    %c3_47 = arith.constant 3 : index
    %c0_48 = arith.constant 0 : index
    %c0_49 = arith.constant 0 : index
    %170 = vector.load %arg2[%c3_47, %c0_48, %c0_49] : memref<10x128x128xbf16, #tpu.memory_space<vmem>>, vector<1x128x128xbf16>
    %171 = vector.shape_cast %170 : vector<1x128x128xbf16> to vector<128x128xbf16>
    %cst_50 = arith.constant dense<0.000000e+00> : vector<40x128xf32>
    %172 = tpu.matmul %169, %171, %cst_50 {dimension_numbers = #tpu.dot_dimension_numbers<[1], [0], [0], [1], [0, 0, 1, 1], [], []>} : vector<40x128xbf16>, vector<128x128xbf16>, vector<40x128xf32> -> vector<40x128xf32>
    %173 = vector.broadcast %154 : vector<1x128xf32> to vector<40x128xf32>
    %174 = arith.addf %172, %173 : vector<40x128xf32>
    %cst_51 = arith.constant 0.000000e+00 : f32
    %175 = vector.broadcast %cst_51 : f32 to vector<40x128xf32>
    %176 = arith.cmpf ogt, %174, %175 : vector<40x128xf32>
    %cst_52 = arith.constant 0.00999999977 : f32
    %177 = vector.broadcast %cst_52 : f32 to vector<40x128xf32>
    %178 = arith.mulf %177, %174 : vector<40x128xf32>
    %179 = arith.select %176, %174, %178 : vector<40x128xi1>, vector<40x128xf32>
    %180 = vector.broadcast %157 : vector<1x128xf32> to vector<40x128xf32>
    %181 = arith.mulf %179, %180 : vector<40x128xf32>
    %cst_53 = arith.constant dense<0.000000e+00> : vector<40xf32>
    %182 = vector.multi_reduction <add>, %181, %cst_53 [1] : vector<40x128xf32> to vector<40xf32>
    %183 = vector.shape_cast %182 : vector<40xf32> to vector<40x1xf32>
    %184 = vector.broadcast %155 : vector<1x1xf32> to vector<40x1xf32>
    %185 = arith.addf %183, %184 : vector<40x1xf32>
    %186 = math.tanh %185 : vector<40x1xf32>
    %187 = vector.broadcast %158 : vector<1x128xf32> to vector<40x128xf32>
    %188 = arith.mulf %179, %187 : vector<40x128xf32>
    %cst_54 = arith.constant dense<0.000000e+00> : vector<40xf32>
    %189 = vector.multi_reduction <add>, %188, %cst_54 [1] : vector<40x128xf32> to vector<40xf32>
    %190 = vector.shape_cast %189 : vector<40xf32> to vector<40x1xf32>
    %191 = vector.broadcast %156 : vector<1x1xf32> to vector<40x1xf32>
    %192 = arith.addf %190, %191 : vector<40x1xf32>
    %193 = arith.subf %99, %192 : vector<40x1xf32>
    %cst_55 = arith.constant 0.000000e+00 : f32
    %194 = vector.broadcast %cst_55 : f32 to vector<40x1xf32>
    %195 = arith.subf %194, %186 : vector<40x1xf32>
    %196 = math.exp %195 : vector<40x1xf32>
    %197 = arith.mulf %193, %196 : vector<40x1xf32>
    %198 = arith.addf %149, %186 : vector<40x1xf32>
    %c4 = arith.constant 4 : index
    %c0_56 = arith.constant 0 : index
    %c0_57 = arith.constant 0 : index
    %199 = vector.load %arg1[%c4, %c0_56, %c0_57] : memref<10x8x128xf32, #tpu.memory_space<vmem>>, vector<1x8x128xf32>
    %200 = vector.shape_cast %199 : vector<1x8x128xf32> to vector<8x128xf32>
    %201 = vector.extract_strided_slice %200 {offsets = [0, 0], sizes = [1, 128], strides = [1, 1]} : vector<8x128xf32> to vector<1x128xf32>
    %202 = vector.extract_strided_slice %200 {offsets = [1, 0], sizes = [1, 128], strides = [1, 1]} : vector<8x128xf32> to vector<1x128xf32>
    %203 = vector.extract_strided_slice %200 {offsets = [2, 0], sizes = [1, 128], strides = [1, 1]} : vector<8x128xf32> to vector<1x128xf32>
    %204 = vector.extract_strided_slice %200 {offsets = [3, 0], sizes = [1, 1], strides = [1, 1]} : vector<8x128xf32> to vector<1x1xf32>
    %205 = vector.extract_strided_slice %200 {offsets = [3, 1], sizes = [1, 1], strides = [1, 1]} : vector<8x128xf32> to vector<1x1xf32>
    %206 = vector.extract_strided_slice %200 {offsets = [4, 0], sizes = [1, 128], strides = [1, 1]} : vector<8x128xf32> to vector<1x128xf32>
    %207 = vector.extract_strided_slice %200 {offsets = [5, 0], sizes = [1, 128], strides = [1, 1]} : vector<8x128xf32> to vector<1x128xf32>
    %208 = vector.broadcast %197 : vector<40x1xf32> to vector<40x128xf32>
    %209 = vector.broadcast %201 : vector<1x128xf32> to vector<40x128xf32>
    %210 = arith.mulf %208, %209 : vector<40x128xf32>
    %211 = vector.broadcast %202 : vector<1x128xf32> to vector<40x128xf32>
    %212 = arith.addf %210, %211 : vector<40x128xf32>
    %cst_58 = arith.constant 0.000000e+00 : f32
    %213 = vector.broadcast %cst_58 : f32 to vector<40x128xf32>
    %214 = arith.cmpf ogt, %212, %213 : vector<40x128xf32>
    %cst_59 = arith.constant 0.00999999977 : f32
    %215 = vector.broadcast %cst_59 : f32 to vector<40x128xf32>
    %216 = arith.mulf %215, %212 : vector<40x128xf32>
    %217 = arith.select %214, %212, %216 : vector<40x128xi1>, vector<40x128xf32>
    %218 = arith.truncf %217 : vector<40x128xf32> to vector<40x128xbf16>
    %c4_60 = arith.constant 4 : index
    %c0_61 = arith.constant 0 : index
    %c0_62 = arith.constant 0 : index
    %219 = vector.load %arg2[%c4_60, %c0_61, %c0_62] : memref<10x128x128xbf16, #tpu.memory_space<vmem>>, vector<1x128x128xbf16>
    %220 = vector.shape_cast %219 : vector<1x128x128xbf16> to vector<128x128xbf16>
    %cst_63 = arith.constant dense<0.000000e+00> : vector<40x128xf32>
    %221 = tpu.matmul %218, %220, %cst_63 {dimension_numbers = #tpu.dot_dimension_numbers<[1], [0], [0], [1], [0, 0, 1, 1], [], []>} : vector<40x128xbf16>, vector<128x128xbf16>, vector<40x128xf32> -> vector<40x128xf32>
    %222 = vector.broadcast %203 : vector<1x128xf32> to vector<40x128xf32>
    %223 = arith.addf %221, %222 : vector<40x128xf32>
    %cst_64 = arith.constant 0.000000e+00 : f32
    %224 = vector.broadcast %cst_64 : f32 to vector<40x128xf32>
    %225 = arith.cmpf ogt, %223, %224 : vector<40x128xf32>
    %cst_65 = arith.constant 0.00999999977 : f32
    %226 = vector.broadcast %cst_65 : f32 to vector<40x128xf32>
    %227 = arith.mulf %226, %223 : vector<40x128xf32>
    %228 = arith.select %225, %223, %227 : vector<40x128xi1>, vector<40x128xf32>
    %229 = vector.broadcast %206 : vector<1x128xf32> to vector<40x128xf32>
    %230 = arith.mulf %228, %229 : vector<40x128xf32>
    %cst_66 = arith.constant dense<0.000000e+00> : vector<40xf32>
    %231 = vector.multi_reduction <add>, %230, %cst_66 [1] : vector<40x128xf32> to vector<40xf32>
    %232 = vector.shape_cast %231 : vector<40xf32> to vector<40x1xf32>
    %233 = vector.broadcast %204 : vector<1x1xf32> to vector<40x1xf32>
    %234 = arith.addf %232, %233 : vector<40x1xf32>
    %235 = math.tanh %234 : vector<40x1xf32>
    %236 = vector.broadcast %207 : vector<1x128xf32> to vector<40x128xf32>
    %237 = arith.mulf %228, %236 : vector<40x128xf32>
    %cst_67 = arith.constant dense<0.000000e+00> : vector<40xf32>
    %238 = vector.multi_reduction <add>, %237, %cst_67 [1] : vector<40x128xf32> to vector<40xf32>
    %239 = vector.shape_cast %238 : vector<40xf32> to vector<40x1xf32>
    %240 = vector.broadcast %205 : vector<1x1xf32> to vector<40x1xf32>
    %241 = arith.addf %239, %240 : vector<40x1xf32>
    %242 = arith.subf %148, %241 : vector<40x1xf32>
    %cst_68 = arith.constant 0.000000e+00 : f32
    %243 = vector.broadcast %cst_68 : f32 to vector<40x1xf32>
    %244 = arith.subf %243, %235 : vector<40x1xf32>
    %245 = math.exp %244 : vector<40x1xf32>
    %246 = arith.mulf %242, %245 : vector<40x1xf32>
    %247 = arith.addf %198, %235 : vector<40x1xf32>
    %c5 = arith.constant 5 : index
    %c0_69 = arith.constant 0 : index
    %c0_70 = arith.constant 0 : index
    %248 = vector.load %arg1[%c5, %c0_69, %c0_70] : memref<10x8x128xf32, #tpu.memory_space<vmem>>, vector<1x8x128xf32>
    %249 = vector.shape_cast %248 : vector<1x8x128xf32> to vector<8x128xf32>
    %250 = vector.extract_strided_slice %249 {offsets = [0, 0], sizes = [1, 128], strides = [1, 1]} : vector<8x128xf32> to vector<1x128xf32>
    %251 = vector.extract_strided_slice %249 {offsets = [1, 0], sizes = [1, 128], strides = [1, 1]} : vector<8x128xf32> to vector<1x128xf32>
    %252 = vector.extract_strided_slice %249 {offsets = [2, 0], sizes = [1, 128], strides = [1, 1]} : vector<8x128xf32> to vector<1x128xf32>
    %253 = vector.extract_strided_slice %249 {offsets = [3, 0], sizes = [1, 1], strides = [1, 1]} : vector<8x128xf32> to vector<1x1xf32>
    %254 = vector.extract_strided_slice %249 {offsets = [3, 1], sizes = [1, 1], strides = [1, 1]} : vector<8x128xf32> to vector<1x1xf32>
    %255 = vector.extract_strided_slice %249 {offsets = [4, 0], sizes = [1, 128], strides = [1, 1]} : vector<8x128xf32> to vector<1x128xf32>
    %256 = vector.extract_strided_slice %249 {offsets = [5, 0], sizes = [1, 128], strides = [1, 1]} : vector<8x128xf32> to vector<1x128xf32>
    %257 = vector.broadcast %246 : vector<40x1xf32> to vector<40x128xf32>
    %258 = vector.broadcast %250 : vector<1x128xf32> to vector<40x128xf32>
    %259 = arith.mulf %257, %258 : vector<40x128xf32>
    %260 = vector.broadcast %251 : vector<1x128xf32> to vector<40x128xf32>
    %261 = arith.addf %259, %260 : vector<40x128xf32>
    %cst_71 = arith.constant 0.000000e+00 : f32
    %262 = vector.broadcast %cst_71 : f32 to vector<40x128xf32>
    %263 = arith.cmpf ogt, %261, %262 : vector<40x128xf32>
    %cst_72 = arith.constant 0.00999999977 : f32
    %264 = vector.broadcast %cst_72 : f32 to vector<40x128xf32>
    %265 = arith.mulf %264, %261 : vector<40x128xf32>
    %266 = arith.select %263, %261, %265 : vector<40x128xi1>, vector<40x128xf32>
    %267 = arith.truncf %266 : vector<40x128xf32> to vector<40x128xbf16>
    %c5_73 = arith.constant 5 : index
    %c0_74 = arith.constant 0 : index
    %c0_75 = arith.constant 0 : index
    %268 = vector.load %arg2[%c5_73, %c0_74, %c0_75] : memref<10x128x128xbf16, #tpu.memory_space<vmem>>, vector<1x128x128xbf16>
    %269 = vector.shape_cast %268 : vector<1x128x128xbf16> to vector<128x128xbf16>
    %cst_76 = arith.constant dense<0.000000e+00> : vector<40x128xf32>
    %270 = tpu.matmul %267, %269, %cst_76 {dimension_numbers = #tpu.dot_dimension_numbers<[1], [0], [0], [1], [0, 0, 1, 1], [], []>} : vector<40x128xbf16>, vector<128x128xbf16>, vector<40x128xf32> -> vector<40x128xf32>
    %271 = vector.broadcast %252 : vector<1x128xf32> to vector<40x128xf32>
    %272 = arith.addf %270, %271 : vector<40x128xf32>
    %cst_77 = arith.constant 0.000000e+00 : f32
    %273 = vector.broadcast %cst_77 : f32 to vector<40x128xf32>
    %274 = arith.cmpf ogt, %272, %273 : vector<40x128xf32>
    %cst_78 = arith.constant 0.00999999977 : f32
    %275 = vector.broadcast %cst_78 : f32 to vector<40x128xf32>
    %276 = arith.mulf %275, %272 : vector<40x128xf32>
    %277 = arith.select %274, %272, %276 : vector<40x128xi1>, vector<40x128xf32>
    %278 = vector.broadcast %255 : vector<1x128xf32> to vector<40x128xf32>
    %279 = arith.mulf %277, %278 : vector<40x128xf32>
    %cst_79 = arith.constant dense<0.000000e+00> : vector<40xf32>
    %280 = vector.multi_reduction <add>, %279, %cst_79 [1] : vector<40x128xf32> to vector<40xf32>
    %281 = vector.shape_cast %280 : vector<40xf32> to vector<40x1xf32>
    %282 = vector.broadcast %253 : vector<1x1xf32> to vector<40x1xf32>
    %283 = arith.addf %281, %282 : vector<40x1xf32>
    %284 = math.tanh %283 : vector<40x1xf32>
    %285 = vector.broadcast %256 : vector<1x128xf32> to vector<40x128xf32>
    %286 = arith.mulf %277, %285 : vector<40x128xf32>
    %cst_80 = arith.constant dense<0.000000e+00> : vector<40xf32>
    %287 = vector.multi_reduction <add>, %286, %cst_80 [1] : vector<40x128xf32> to vector<40xf32>
    %288 = vector.shape_cast %287 : vector<40xf32> to vector<40x1xf32>
    %289 = vector.broadcast %254 : vector<1x1xf32> to vector<40x1xf32>
    %290 = arith.addf %288, %289 : vector<40x1xf32>
    %291 = arith.subf %197, %290 : vector<40x1xf32>
    %cst_81 = arith.constant 0.000000e+00 : f32
    %292 = vector.broadcast %cst_81 : f32 to vector<40x1xf32>
    %293 = arith.subf %292, %284 : vector<40x1xf32>
    %294 = math.exp %293 : vector<40x1xf32>
    %295 = arith.mulf %291, %294 : vector<40x1xf32>
    %296 = arith.addf %247, %284 : vector<40x1xf32>
    %c6 = arith.constant 6 : index
    %c0_82 = arith.constant 0 : index
    %c0_83 = arith.constant 0 : index
    %297 = vector.load %arg1[%c6, %c0_82, %c0_83] : memref<10x8x128xf32, #tpu.memory_space<vmem>>, vector<1x8x128xf32>
    %298 = vector.shape_cast %297 : vector<1x8x128xf32> to vector<8x128xf32>
    %299 = vector.extract_strided_slice %298 {offsets = [0, 0], sizes = [1, 128], strides = [1, 1]} : vector<8x128xf32> to vector<1x128xf32>
    %300 = vector.extract_strided_slice %298 {offsets = [1, 0], sizes = [1, 128], strides = [1, 1]} : vector<8x128xf32> to vector<1x128xf32>
    %301 = vector.extract_strided_slice %298 {offsets = [2, 0], sizes = [1, 128], strides = [1, 1]} : vector<8x128xf32> to vector<1x128xf32>
    %302 = vector.extract_strided_slice %298 {offsets = [3, 0], sizes = [1, 1], strides = [1, 1]} : vector<8x128xf32> to vector<1x1xf32>
    %303 = vector.extract_strided_slice %298 {offsets = [3, 1], sizes = [1, 1], strides = [1, 1]} : vector<8x128xf32> to vector<1x1xf32>
    %304 = vector.extract_strided_slice %298 {offsets = [4, 0], sizes = [1, 128], strides = [1, 1]} : vector<8x128xf32> to vector<1x128xf32>
    %305 = vector.extract_strided_slice %298 {offsets = [5, 0], sizes = [1, 128], strides = [1, 1]} : vector<8x128xf32> to vector<1x128xf32>
    %306 = vector.broadcast %295 : vector<40x1xf32> to vector<40x128xf32>
    %307 = vector.broadcast %299 : vector<1x128xf32> to vector<40x128xf32>
    %308 = arith.mulf %306, %307 : vector<40x128xf32>
    %309 = vector.broadcast %300 : vector<1x128xf32> to vector<40x128xf32>
    %310 = arith.addf %308, %309 : vector<40x128xf32>
    %cst_84 = arith.constant 0.000000e+00 : f32
    %311 = vector.broadcast %cst_84 : f32 to vector<40x128xf32>
    %312 = arith.cmpf ogt, %310, %311 : vector<40x128xf32>
    %cst_85 = arith.constant 0.00999999977 : f32
    %313 = vector.broadcast %cst_85 : f32 to vector<40x128xf32>
    %314 = arith.mulf %313, %310 : vector<40x128xf32>
    %315 = arith.select %312, %310, %314 : vector<40x128xi1>, vector<40x128xf32>
    %316 = arith.truncf %315 : vector<40x128xf32> to vector<40x128xbf16>
    %c6_86 = arith.constant 6 : index
    %c0_87 = arith.constant 0 : index
    %c0_88 = arith.constant 0 : index
    %317 = vector.load %arg2[%c6_86, %c0_87, %c0_88] : memref<10x128x128xbf16, #tpu.memory_space<vmem>>, vector<1x128x128xbf16>
    %318 = vector.shape_cast %317 : vector<1x128x128xbf16> to vector<128x128xbf16>
    %cst_89 = arith.constant dense<0.000000e+00> : vector<40x128xf32>
    %319 = tpu.matmul %316, %318, %cst_89 {dimension_numbers = #tpu.dot_dimension_numbers<[1], [0], [0], [1], [0, 0, 1, 1], [], []>} : vector<40x128xbf16>, vector<128x128xbf16>, vector<40x128xf32> -> vector<40x128xf32>
    %320 = vector.broadcast %301 : vector<1x128xf32> to vector<40x128xf32>
    %321 = arith.addf %319, %320 : vector<40x128xf32>
    %cst_90 = arith.constant 0.000000e+00 : f32
    %322 = vector.broadcast %cst_90 : f32 to vector<40x128xf32>
    %323 = arith.cmpf ogt, %321, %322 : vector<40x128xf32>
    %cst_91 = arith.constant 0.00999999977 : f32
    %324 = vector.broadcast %cst_91 : f32 to vector<40x128xf32>
    %325 = arith.mulf %324, %321 : vector<40x128xf32>
    %326 = arith.select %323, %321, %325 : vector<40x128xi1>, vector<40x128xf32>
    %327 = vector.broadcast %304 : vector<1x128xf32> to vector<40x128xf32>
    %328 = arith.mulf %326, %327 : vector<40x128xf32>
    %cst_92 = arith.constant dense<0.000000e+00> : vector<40xf32>
    %329 = vector.multi_reduction <add>, %328, %cst_92 [1] : vector<40x128xf32> to vector<40xf32>
    %330 = vector.shape_cast %329 : vector<40xf32> to vector<40x1xf32>
    %331 = vector.broadcast %302 : vector<1x1xf32> to vector<40x1xf32>
    %332 = arith.addf %330, %331 : vector<40x1xf32>
    %333 = math.tanh %332 : vector<40x1xf32>
    %334 = vector.broadcast %305 : vector<1x128xf32> to vector<40x128xf32>
    %335 = arith.mulf %326, %334 : vector<40x128xf32>
    %cst_93 = arith.constant dense<0.000000e+00> : vector<40xf32>
    %336 = vector.multi_reduction <add>, %335, %cst_93 [1] : vector<40x128xf32> to vector<40xf32>
    %337 = vector.shape_cast %336 : vector<40xf32> to vector<40x1xf32>
    %338 = vector.broadcast %303 : vector<1x1xf32> to vector<40x1xf32>
    %339 = arith.addf %337, %338 : vector<40x1xf32>
    %340 = arith.subf %246, %339 : vector<40x1xf32>
    %cst_94 = arith.constant 0.000000e+00 : f32
    %341 = vector.broadcast %cst_94 : f32 to vector<40x1xf32>
    %342 = arith.subf %341, %333 : vector<40x1xf32>
    %343 = math.exp %342 : vector<40x1xf32>
    %344 = arith.mulf %340, %343 : vector<40x1xf32>
    %345 = arith.addf %296, %333 : vector<40x1xf32>
    %c7 = arith.constant 7 : index
    %c0_95 = arith.constant 0 : index
    %c0_96 = arith.constant 0 : index
    %346 = vector.load %arg1[%c7, %c0_95, %c0_96] : memref<10x8x128xf32, #tpu.memory_space<vmem>>, vector<1x8x128xf32>
    %347 = vector.shape_cast %346 : vector<1x8x128xf32> to vector<8x128xf32>
    %348 = vector.extract_strided_slice %347 {offsets = [0, 0], sizes = [1, 128], strides = [1, 1]} : vector<8x128xf32> to vector<1x128xf32>
    %349 = vector.extract_strided_slice %347 {offsets = [1, 0], sizes = [1, 128], strides = [1, 1]} : vector<8x128xf32> to vector<1x128xf32>
    %350 = vector.extract_strided_slice %347 {offsets = [2, 0], sizes = [1, 128], strides = [1, 1]} : vector<8x128xf32> to vector<1x128xf32>
    %351 = vector.extract_strided_slice %347 {offsets = [3, 0], sizes = [1, 1], strides = [1, 1]} : vector<8x128xf32> to vector<1x1xf32>
    %352 = vector.extract_strided_slice %347 {offsets = [3, 1], sizes = [1, 1], strides = [1, 1]} : vector<8x128xf32> to vector<1x1xf32>
    %353 = vector.extract_strided_slice %347 {offsets = [4, 0], sizes = [1, 128], strides = [1, 1]} : vector<8x128xf32> to vector<1x128xf32>
    %354 = vector.extract_strided_slice %347 {offsets = [5, 0], sizes = [1, 128], strides = [1, 1]} : vector<8x128xf32> to vector<1x128xf32>
    %355 = vector.broadcast %344 : vector<40x1xf32> to vector<40x128xf32>
    %356 = vector.broadcast %348 : vector<1x128xf32> to vector<40x128xf32>
    %357 = arith.mulf %355, %356 : vector<40x128xf32>
    %358 = vector.broadcast %349 : vector<1x128xf32> to vector<40x128xf32>
    %359 = arith.addf %357, %358 : vector<40x128xf32>
    %cst_97 = arith.constant 0.000000e+00 : f32
    %360 = vector.broadcast %cst_97 : f32 to vector<40x128xf32>
    %361 = arith.cmpf ogt, %359, %360 : vector<40x128xf32>
    %cst_98 = arith.constant 0.00999999977 : f32
    %362 = vector.broadcast %cst_98 : f32 to vector<40x128xf32>
    %363 = arith.mulf %362, %359 : vector<40x128xf32>
    %364 = arith.select %361, %359, %363 : vector<40x128xi1>, vector<40x128xf32>
    %365 = arith.truncf %364 : vector<40x128xf32> to vector<40x128xbf16>
    %c7_99 = arith.constant 7 : index
    %c0_100 = arith.constant 0 : index
    %c0_101 = arith.constant 0 : index
    %366 = vector.load %arg2[%c7_99, %c0_100, %c0_101] : memref<10x128x128xbf16, #tpu.memory_space<vmem>>, vector<1x128x128xbf16>
    %367 = vector.shape_cast %366 : vector<1x128x128xbf16> to vector<128x128xbf16>
    %cst_102 = arith.constant dense<0.000000e+00> : vector<40x128xf32>
    %368 = tpu.matmul %365, %367, %cst_102 {dimension_numbers = #tpu.dot_dimension_numbers<[1], [0], [0], [1], [0, 0, 1, 1], [], []>} : vector<40x128xbf16>, vector<128x128xbf16>, vector<40x128xf32> -> vector<40x128xf32>
    %369 = vector.broadcast %350 : vector<1x128xf32> to vector<40x128xf32>
    %370 = arith.addf %368, %369 : vector<40x128xf32>
    %cst_103 = arith.constant 0.000000e+00 : f32
    %371 = vector.broadcast %cst_103 : f32 to vector<40x128xf32>
    %372 = arith.cmpf ogt, %370, %371 : vector<40x128xf32>
    %cst_104 = arith.constant 0.00999999977 : f32
    %373 = vector.broadcast %cst_104 : f32 to vector<40x128xf32>
    %374 = arith.mulf %373, %370 : vector<40x128xf32>
    %375 = arith.select %372, %370, %374 : vector<40x128xi1>, vector<40x128xf32>
    %376 = vector.broadcast %353 : vector<1x128xf32> to vector<40x128xf32>
    %377 = arith.mulf %375, %376 : vector<40x128xf32>
    %cst_105 = arith.constant dense<0.000000e+00> : vector<40xf32>
    %378 = vector.multi_reduction <add>, %377, %cst_105 [1] : vector<40x128xf32> to vector<40xf32>
    %379 = vector.shape_cast %378 : vector<40xf32> to vector<40x1xf32>
    %380 = vector.broadcast %351 : vector<1x1xf32> to vector<40x1xf32>
    %381 = arith.addf %379, %380 : vector<40x1xf32>
    %382 = math.tanh %381 : vector<40x1xf32>
    %383 = vector.broadcast %354 : vector<1x128xf32> to vector<40x128xf32>
    %384 = arith.mulf %375, %383 : vector<40x128xf32>
    %cst_106 = arith.constant dense<0.000000e+00> : vector<40xf32>
    %385 = vector.multi_reduction <add>, %384, %cst_106 [1] : vector<40x128xf32> to vector<40xf32>
    %386 = vector.shape_cast %385 : vector<40xf32> to vector<40x1xf32>
    %387 = vector.broadcast %352 : vector<1x1xf32> to vector<40x1xf32>
    %388 = arith.addf %386, %387 : vector<40x1xf32>
    %389 = arith.subf %295, %388 : vector<40x1xf32>
    %cst_107 = arith.constant 0.000000e+00 : f32
    %390 = vector.broadcast %cst_107 : f32 to vector<40x1xf32>
    %391 = arith.subf %390, %382 : vector<40x1xf32>
    %392 = math.exp %391 : vector<40x1xf32>
    %393 = arith.mulf %389, %392 : vector<40x1xf32>
    %394 = arith.addf %345, %382 : vector<40x1xf32>
    %c8 = arith.constant 8 : index
    %c0_108 = arith.constant 0 : index
    %c0_109 = arith.constant 0 : index
    %395 = vector.load %arg1[%c8, %c0_108, %c0_109] : memref<10x8x128xf32, #tpu.memory_space<vmem>>, vector<1x8x128xf32>
    %396 = vector.shape_cast %395 : vector<1x8x128xf32> to vector<8x128xf32>
    %397 = vector.extract_strided_slice %396 {offsets = [0, 0], sizes = [1, 128], strides = [1, 1]} : vector<8x128xf32> to vector<1x128xf32>
    %398 = vector.extract_strided_slice %396 {offsets = [1, 0], sizes = [1, 128], strides = [1, 1]} : vector<8x128xf32> to vector<1x128xf32>
    %399 = vector.extract_strided_slice %396 {offsets = [2, 0], sizes = [1, 128], strides = [1, 1]} : vector<8x128xf32> to vector<1x128xf32>
    %400 = vector.extract_strided_slice %396 {offsets = [3, 0], sizes = [1, 1], strides = [1, 1]} : vector<8x128xf32> to vector<1x1xf32>
    %401 = vector.extract_strided_slice %396 {offsets = [3, 1], sizes = [1, 1], strides = [1, 1]} : vector<8x128xf32> to vector<1x1xf32>
    %402 = vector.extract_strided_slice %396 {offsets = [4, 0], sizes = [1, 128], strides = [1, 1]} : vector<8x128xf32> to vector<1x128xf32>
    %403 = vector.extract_strided_slice %396 {offsets = [5, 0], sizes = [1, 128], strides = [1, 1]} : vector<8x128xf32> to vector<1x128xf32>
    %404 = vector.broadcast %393 : vector<40x1xf32> to vector<40x128xf32>
    %405 = vector.broadcast %397 : vector<1x128xf32> to vector<40x128xf32>
    %406 = arith.mulf %404, %405 : vector<40x128xf32>
    %407 = vector.broadcast %398 : vector<1x128xf32> to vector<40x128xf32>
    %408 = arith.addf %406, %407 : vector<40x128xf32>
    %cst_110 = arith.constant 0.000000e+00 : f32
    %409 = vector.broadcast %cst_110 : f32 to vector<40x128xf32>
    %410 = arith.cmpf ogt, %408, %409 : vector<40x128xf32>
    %cst_111 = arith.constant 0.00999999977 : f32
    %411 = vector.broadcast %cst_111 : f32 to vector<40x128xf32>
    %412 = arith.mulf %411, %408 : vector<40x128xf32>
    %413 = arith.select %410, %408, %412 : vector<40x128xi1>, vector<40x128xf32>
    %414 = arith.truncf %413 : vector<40x128xf32> to vector<40x128xbf16>
    %c8_112 = arith.constant 8 : index
    %c0_113 = arith.constant 0 : index
    %c0_114 = arith.constant 0 : index
    %415 = vector.load %arg2[%c8_112, %c0_113, %c0_114] : memref<10x128x128xbf16, #tpu.memory_space<vmem>>, vector<1x128x128xbf16>
    %416 = vector.shape_cast %415 : vector<1x128x128xbf16> to vector<128x128xbf16>
    %cst_115 = arith.constant dense<0.000000e+00> : vector<40x128xf32>
    %417 = tpu.matmul %414, %416, %cst_115 {dimension_numbers = #tpu.dot_dimension_numbers<[1], [0], [0], [1], [0, 0, 1, 1], [], []>} : vector<40x128xbf16>, vector<128x128xbf16>, vector<40x128xf32> -> vector<40x128xf32>
    %418 = vector.broadcast %399 : vector<1x128xf32> to vector<40x128xf32>
    %419 = arith.addf %417, %418 : vector<40x128xf32>
    %cst_116 = arith.constant 0.000000e+00 : f32
    %420 = vector.broadcast %cst_116 : f32 to vector<40x128xf32>
    %421 = arith.cmpf ogt, %419, %420 : vector<40x128xf32>
    %cst_117 = arith.constant 0.00999999977 : f32
    %422 = vector.broadcast %cst_117 : f32 to vector<40x128xf32>
    %423 = arith.mulf %422, %419 : vector<40x128xf32>
    %424 = arith.select %421, %419, %423 : vector<40x128xi1>, vector<40x128xf32>
    %425 = vector.broadcast %402 : vector<1x128xf32> to vector<40x128xf32>
    %426 = arith.mulf %424, %425 : vector<40x128xf32>
    %cst_118 = arith.constant dense<0.000000e+00> : vector<40xf32>
    %427 = vector.multi_reduction <add>, %426, %cst_118 [1] : vector<40x128xf32> to vector<40xf32>
    %428 = vector.shape_cast %427 : vector<40xf32> to vector<40x1xf32>
    %429 = vector.broadcast %400 : vector<1x1xf32> to vector<40x1xf32>
    %430 = arith.addf %428, %429 : vector<40x1xf32>
    %431 = math.tanh %430 : vector<40x1xf32>
    %432 = vector.broadcast %403 : vector<1x128xf32> to vector<40x128xf32>
    %433 = arith.mulf %424, %432 : vector<40x128xf32>
    %cst_119 = arith.constant dense<0.000000e+00> : vector<40xf32>
    %434 = vector.multi_reduction <add>, %433, %cst_119 [1] : vector<40x128xf32> to vector<40xf32>
    %435 = vector.shape_cast %434 : vector<40xf32> to vector<40x1xf32>
    %436 = vector.broadcast %401 : vector<1x1xf32> to vector<40x1xf32>
    %437 = arith.addf %435, %436 : vector<40x1xf32>
    %438 = arith.subf %344, %437 : vector<40x1xf32>
    %cst_120 = arith.constant 0.000000e+00 : f32
    %439 = vector.broadcast %cst_120 : f32 to vector<40x1xf32>
    %440 = arith.subf %439, %431 : vector<40x1xf32>
    %441 = math.exp %440 : vector<40x1xf32>
    %442 = arith.mulf %438, %441 : vector<40x1xf32>
    %443 = arith.addf %394, %431 : vector<40x1xf32>
    %c9 = arith.constant 9 : index
    %c0_121 = arith.constant 0 : index
    %c0_122 = arith.constant 0 : index
    %444 = vector.load %arg1[%c9, %c0_121, %c0_122] : memref<10x8x128xf32, #tpu.memory_space<vmem>>, vector<1x8x128xf32>
    %445 = vector.shape_cast %444 : vector<1x8x128xf32> to vector<8x128xf32>
    %446 = vector.extract_strided_slice %445 {offsets = [0, 0], sizes = [1, 128], strides = [1, 1]} : vector<8x128xf32> to vector<1x128xf32>
    %447 = vector.extract_strided_slice %445 {offsets = [1, 0], sizes = [1, 128], strides = [1, 1]} : vector<8x128xf32> to vector<1x128xf32>
    %448 = vector.extract_strided_slice %445 {offsets = [2, 0], sizes = [1, 128], strides = [1, 1]} : vector<8x128xf32> to vector<1x128xf32>
    %449 = vector.extract_strided_slice %445 {offsets = [3, 0], sizes = [1, 1], strides = [1, 1]} : vector<8x128xf32> to vector<1x1xf32>
    %450 = vector.extract_strided_slice %445 {offsets = [3, 1], sizes = [1, 1], strides = [1, 1]} : vector<8x128xf32> to vector<1x1xf32>
    %451 = vector.extract_strided_slice %445 {offsets = [4, 0], sizes = [1, 128], strides = [1, 1]} : vector<8x128xf32> to vector<1x128xf32>
    %452 = vector.extract_strided_slice %445 {offsets = [5, 0], sizes = [1, 128], strides = [1, 1]} : vector<8x128xf32> to vector<1x128xf32>
    %453 = vector.broadcast %442 : vector<40x1xf32> to vector<40x128xf32>
    %454 = vector.broadcast %446 : vector<1x128xf32> to vector<40x128xf32>
    %455 = arith.mulf %453, %454 : vector<40x128xf32>
    %456 = vector.broadcast %447 : vector<1x128xf32> to vector<40x128xf32>
    %457 = arith.addf %455, %456 : vector<40x128xf32>
    %cst_123 = arith.constant 0.000000e+00 : f32
    %458 = vector.broadcast %cst_123 : f32 to vector<40x128xf32>
    %459 = arith.cmpf ogt, %457, %458 : vector<40x128xf32>
    %cst_124 = arith.constant 0.00999999977 : f32
    %460 = vector.broadcast %cst_124 : f32 to vector<40x128xf32>
    %461 = arith.mulf %460, %457 : vector<40x128xf32>
    %462 = arith.select %459, %457, %461 : vector<40x128xi1>, vector<40x128xf32>
    %463 = arith.truncf %462 : vector<40x128xf32> to vector<40x128xbf16>
    %c9_125 = arith.constant 9 : index
    %c0_126 = arith.constant 0 : index
    %c0_127 = arith.constant 0 : index
    %464 = vector.load %arg2[%c9_125, %c0_126, %c0_127] : memref<10x128x128xbf16, #tpu.memory_space<vmem>>, vector<1x128x128xbf16>
    %465 = vector.shape_cast %464 : vector<1x128x128xbf16> to vector<128x128xbf16>
    %cst_128 = arith.constant dense<0.000000e+00> : vector<40x128xf32>
    %466 = tpu.matmul %463, %465, %cst_128 {dimension_numbers = #tpu.dot_dimension_numbers<[1], [0], [0], [1], [0, 0, 1, 1], [], []>} : vector<40x128xbf16>, vector<128x128xbf16>, vector<40x128xf32> -> vector<40x128xf32>
    %467 = vector.broadcast %448 : vector<1x128xf32> to vector<40x128xf32>
    %468 = arith.addf %466, %467 : vector<40x128xf32>
    %cst_129 = arith.constant 0.000000e+00 : f32
    %469 = vector.broadcast %cst_129 : f32 to vector<40x128xf32>
    %470 = arith.cmpf ogt, %468, %469 : vector<40x128xf32>
    %cst_130 = arith.constant 0.00999999977 : f32
    %471 = vector.broadcast %cst_130 : f32 to vector<40x128xf32>
    %472 = arith.mulf %471, %468 : vector<40x128xf32>
    %473 = arith.select %470, %468, %472 : vector<40x128xi1>, vector<40x128xf32>
    %474 = vector.broadcast %451 : vector<1x128xf32> to vector<40x128xf32>
    %475 = arith.mulf %473, %474 : vector<40x128xf32>
    %cst_131 = arith.constant dense<0.000000e+00> : vector<40xf32>
    %476 = vector.multi_reduction <add>, %475, %cst_131 [1] : vector<40x128xf32> to vector<40xf32>
    %477 = vector.shape_cast %476 : vector<40xf32> to vector<40x1xf32>
    %478 = vector.broadcast %449 : vector<1x1xf32> to vector<40x1xf32>
    %479 = arith.addf %477, %478 : vector<40x1xf32>
    %480 = math.tanh %479 : vector<40x1xf32>
    %481 = vector.broadcast %452 : vector<1x128xf32> to vector<40x128xf32>
    %482 = arith.mulf %473, %481 : vector<40x128xf32>
    %cst_132 = arith.constant dense<0.000000e+00> : vector<40xf32>
    %483 = vector.multi_reduction <add>, %482, %cst_132 [1] : vector<40x128xf32> to vector<40xf32>
    %484 = vector.shape_cast %483 : vector<40xf32> to vector<40x1xf32>
    %485 = vector.broadcast %450 : vector<1x1xf32> to vector<40x1xf32>
    %486 = arith.addf %484, %485 : vector<40x1xf32>
    %487 = arith.subf %393, %486 : vector<40x1xf32>
    %cst_133 = arith.constant 0.000000e+00 : f32
    %488 = vector.broadcast %cst_133 : f32 to vector<40x1xf32>
    %489 = arith.subf %488, %480 : vector<40x1xf32>
    %490 = math.exp %489 : vector<40x1xf32>
    %491 = arith.mulf %487, %490 : vector<40x1xf32>
    %492 = arith.addf %443, %480 : vector<40x1xf32>
    %cst_134 = arith.constant 0.000000e+00 : f32
    %493 = vector.broadcast %cst_134 : f32 to vector<40x1xf32>
    %494 = arith.subf %493, %492 : vector<40x1xf32>
    %495 = arith.mulf %442, %442 : vector<40x1xf32>
    %496 = arith.mulf %491, %491 : vector<40x1xf32>
    %497 = arith.addf %495, %496 : vector<40x1xf32>
    %cst_135 = arith.constant -5.000000e-01 : f32
    %498 = vector.broadcast %cst_135 : f32 to vector<40x1xf32>
    %499 = arith.mulf %498, %497 : vector<40x1xf32>
    %cst_136 = arith.constant 1.83787704 : f32
    %500 = vector.broadcast %cst_136 : f32 to vector<40x1xf32>
    %501 = arith.subf %499, %500 : vector<40x1xf32>
    %cst_137 = arith.constant 0.000000e+00 : f32
    %502 = vector.broadcast %cst_137 : f32 to vector<40x124xf32>
    %503 = tpu.concatenate %442, %491, %494, %501, %502 in 1 : vector<40x1xf32>, vector<40x1xf32>, vector<40x1xf32>, vector<40x1xf32>, vector<40x124xf32> -> vector<40x128xf32>
    %c0_138 = arith.constant 0 : index
    %c0_139 = arith.constant 0 : index
    %504 = vector.load %arg3[%c0_138, %c0_139] : memref<40x128xf32, #tpu.memory_space<vmem>>, vector<40x128xf32>
    tpu.vector_store %arg3[%c0_138, %c0_139], %503 {strides = array<i32>} : memref<40x128xf32, #tpu.memory_space<vmem>>, vector<40x128xf32>,
    return
  }
}

</mosaic_0001>

<bundles_post_ra>
// kernel: tpu_custom_call.1
= control target key start
LH: loop header
LB: loop body
LE: loop exit
PB: predicated region body
PF: predicated region fallthrough
CT: control target
= control target key end

     0   :  { %8 = vsyncpa [#allocation3], 0  ;;  %s5076_s0 = inlined_call_operand.vmem [shape: f32[40,2], index: 0, kind: input, shape index: {}]   ;;  %s5077_s1 = inlined_call_operand.hbm [shape: f32[10,8,128], index: 1, kind: input, shape index: {}]   ;;  %s5078_s2 = inlined_call_operand.hbm [shape: bf16[10,128,128], index: 2, kind: input, shape index: {}]   ;;  %s5079_s3 = inlined_call_operand.hbm [shape: f32[40,128], index: 3, kind: output, shape index: {}]  }
   0x1   :  { %9 = vsyncpa [#allocation6], 0 }
   0x2   :  { %10 = vsyncpa [#allocation4], 0  ;;  %s4139_s12 = smov [#allocation2]  }
   0x3   :  { %s18_s13 = sshll.u32 %s4139_s12, 4  ;;  %s19_s13 = int_to_ptr.vmem [resolvable:$true] %s18_s13 }
   0x4   :  { %s4081_s14 = scalar_lea.vmem %s19_s13, 1280  ;;  %p4086_p1 = scmp.lt.s32.totalorder %s19_s13, %s19_s13 }
   0x5   :  { %p4082_p0 = scmp.ne.s32.totalorder %s19_s13, %s4081_s14  ;;  %p4087_p2 = scmp.lt.s32.totalorder %s4081_s14, %s4081_s14 }
   0x7   :  { %p4088_p3 = por %p4087_p2, %p4086_p1 }
   0x9   :  { %p4089_p4 = pnand %p4088_p3, %p4082_p0 }
   0xb   :  { %4092 = shalt.err (!%p4089_p4)
}
   0xc   :  { %s4140_s15 = smov 128   ;;  %s4141_s16 = smov 8  }
   0xd   :  { %24 = dma.hbm_to_vmem [thread:$0]  %s5077_s1, 1280, %s19_s13, [#allocation3], %s4140_s15, %s4140_s15, %s4141_s16  }
   0xe   :  { %s4142_s19 = smov [#allocation5]  }
   0xf   :  { %s30_s20 = sshll.u32 %s4142_s19, 4  ;;  %s31_s20 = int_to_ptr.vmem [resolvable:$true] %s30_s20 }
  0x10   :  { %s4101_s21 = scalar_lea.vmem %s31_s20, 10240  ;;  %p4106_p6 = scmp.lt.s32.totalorder %s31_s20, %s31_s20 }
  0x11   :  { %p4102_p5 = scmp.ne.s32.totalorder %s31_s20, %s4101_s21  ;;  %p4107_p7 = scmp.lt.s32.totalorder %s4101_s21, %s4101_s21 }
  0x13   :  { %p4108_p8 = por %p4107_p7, %p4106_p6 }
  0x15   :  { %p4109_p9 = pnand %p4108_p8, %p4102_p5 }
  0x17   :  { %4112 = shalt.err (!%p4109_p9)
}
  0x18   :  { %s4143_s22 = smov 64   ;;  %s4144_s23 = smov 4  }
  0x19   :  { %36 = dma.hbm_to_vmem [thread:$0]  %s5078_s2, 10240, %s31_s20, [#allocation6], %s4143_s22, %s4143_s22, %s4144_s23  }
  0x1a   :  { %4133 = dma.done.wait [#allocation3], 1280  }
  0x1b   :  { %4134 = vsyncadd [#allocation3], 4294966016 }
  0x1c   :  { %4135 = dma.done.wait [#allocation6], 10240  }
  0x1d   :  { %4136 = vsyncadd [#allocation6], 4294957056  ;;  %v4145_v0 = vmov 1   ;;  %v4146_v1 = vmov 0.0   ;;  %v4190_v2 = vld [vmem:[%s5076_s0] sm:$0xff]  ;;  %v4195_v3 = vld [vmem:[%s5076_s0 + $0x10] sm:$0xff]  ;;  %v75_v15 = vlaneseq }
  0x1e   :  { %3774 = vset.pattern.permute.xlu0 %v4145_v0  ;;  %3775 = vset.pattern.permute.xlu1 %v4145_v0  ;;  %v4201_v4 = vld [vmem:[%s5076_s0 + $0x8] sm:$0xff]  ;;  %v4207_v5 = vld [vmem:[%s5076_s0 + $0x18] sm:$0xff]  ;;  %v3789_v7 = vld [vmem:[#allocation5 + $0x30] sm:$0xff]   ;;  %vm4147_vm0 = vmmov 0   ;;  %s4149_s7 = smov 127   ;;  %s4150_s8 = smov 1  }
  0x1f   :  { %3479 = vmatprep.subr.bf16.mxu0 %v4146_v1  ;;  %3507 = vmatprep.subr.bf16.mxu1 %v4146_v1  ;;  %v3788_v6 = vld [vmem:[#allocation5 + $0x38] sm:$0xff]   ;;  %v4214_v8 = vld [vmem:[%s5076_s0 + $0x20] sm:$0xff]  ;;  %v3790_v9 = vld [vmem:[#allocation5 + $0x28] sm:$0xff]   ;;  %v4229_v16 = vshrl.u32 %v75_v15, 7  ;;  %s4152_s21 = smov 3   ;;  %s4153_s22 = smov [#allocation7]  }
  0x20   :  { %52 = vperm.xlu0 %3774, %v4190_v2   ;;  %62 = vperm.xlu1 %3775, %v4195_v3   ;;  %v3791_v10 = vld [vmem:[#allocation5 + $0x20] sm:$0xff]   ;;  %v3792_v11 = vld [vmem:[#allocation5 + $0x18] sm:$0xff]   ;;  %v3793_v12 = vld [vmem:[#allocation5 + $0x10] sm:$0xff]   ;;  %s3271_s23 = sshll.u32 %s4153_s22, 4  ;;  %s3272_s23 = int_to_ptr.vmem [resolvable:$true] %s3271_s23 }
  0x21   :  { %3480 = vmatpush3.bf16.msra.mxu0 %v3788_v6  ;;  %3495 = vmatprep.mubr.msk.bf16.mxu0 %vm4147_vm0, %v4146_v1  ;;  %v3794_v13 = vld [vmem:[#allocation5 + $0x8] sm:$0xff]   ;;  %v3795_v14 = vld [vmem:[#allocation5] sm:$0xff]   ;;  %v4232_v17 = vsub.s32 0, %v4229_v16  ;;  %v4234_v18 = vld [vmem:[#allocation2] sm:$0xff]  ;;  %v4237_v19 = vsub.s32 1, %v4229_v16  ;;  %v4250_v50 = vsub.s32 2, %v4229_v16  ;;  %p4118_p11 = scmp.lt.s32.totalorder %s3272_s23, %s3272_s23 }
  0x22   :  { %3481 = vmatprep.subr.bf16.mxu0 %v4146_v1  ;;  %3523 = vmatprep.mubr.msk.bf16.mxu1 %vm4147_vm0, %v4146_v1  ;;  %v4255_v52 = vsub.s32 5, %v4229_v16  ;;  %s4113_s24 = scalar_lea.vmem %s3272_s23, 640 }
  0x23   :  { %v78_v20 = vrot.slane %v4234_v18, %v4232_v17  ;;  %v87_v21 = vrot.slane %v4234_v18, %v4237_v19  ;;  %v130_v51 = vrot.slane %v4234_v18, %v4250_v50  ;;  %p4114_p10 = scmp.ne.s32.totalorder %s3272_s23, %s4113_s24  ;;  %p4119_p12 = scmp.lt.s32.totalorder %s4113_s24, %s4113_s24 }
  0x24   :  { %57 = vperm.xlu0 %3774, %v4201_v4   ;;  %67 = vperm.xlu1 %3775, %v4207_v5   ;;  %v286_v56 = vrot.slane %v4234_v18, %v4255_v52 }
  0x25   :  { %3482 = vmatpush3.bf16.msra.mxu0 %v3789_v7  ;;  %p4120_p13 = por %p4119_p12, %p4118_p11 }
  0x26   :  { %3483 = vmatprep.subr.bf16.mxu0 %v4146_v1 }
  0x27   :  { %p4121_p0 = pnand %p4120_p13, %p4114_p10 }
  0x28   :  { %72 = vperm.xlu0 %3774, %v4214_v8  }
  0x29   :  { %3484 = vmatpush3.bf16.msra.mxu0 %v3790_v9 }
  0x2a   :  { %3485 = vmatprep.subr.bf16.mxu0 %v4146_v1 }
  0x2d   :  { %3486 = vmatpush3.bf16.msra.mxu0 %v3791_v10 }
  0x2e   :  { %3487 = vmatprep.subr.bf16.mxu0 %v4146_v1 }
  0x31   :  { %3488 = vmatpush3.bf16.msra.mxu0 %v3792_v11 }
  0x32   :  { %3489 = vmatprep.subr.bf16.mxu0 %v4146_v1 }
  0x35   :  { %3490 = vmatpush3.bf16.msra.mxu0 %v3793_v12  ;;  %v4260_v12 = vsub.s32 4, %v4229_v16 }
  0x36   :  { %3491 = vmatprep.subr.bf16.mxu0 %v4146_v1 }
  0x39   :  { %3492 = vmatpush3.bf16.msra.mxu0 %v3794_v13 }
  0x3a   :  { %3493 = vmatprep.subr.bf16.mxu0 %v4146_v1 }
  0x3d   :  { %3494 = vmatpush3.bf16.msra.mxu0 %v3795_v14 }
  0x3e   :  { %3535 = vmatprep.subr.bf16.mxu0 %v4146_v1 }
  0x9b   :  { %v53_v22 = vpop.permute.xlu0 %52  ;;  %v63_v23 = vpop.permute.xlu1 %62 }
  0x9c   :  { %v79_v24 = vmul.f32 %v78_v20, %v53_v22  ;;  %v81_v26 = vmul.f32 %v78_v20, %v63_v23  ;;  %v253_v23 = vrot.slane %v4234_v18, %v4260_v12 }
  0x9e   :  { %v88_v25 = vadd.f32 %v87_v21, %v79_v24  ;;  %v90_v33 = vadd.f32 %v87_v21, %v81_v26 }
  0x9f   :  { %v58_v27 = vpop.permute.xlu0 %57  ;;  %v68_v28 = vpop.permute.xlu1 %67 }
  0xa0   :  { %v80_v29 = vmul.f32 %v78_v20, %v58_v27  ;;  %v82_v30 = vmul.f32 %v78_v20, %v68_v28  ;;  %v98_v31 = vmul.f32 0.01, %v88_v25  ;;  %vm93_vm1 = vcmp.gt.f32.partialorder %v88_v25, 0.0 }
  0xa1   :  { %v100_v37 = vmul.f32 0.01, %v90_v33  ;;  %vm95_vm3 = vcmp.gt.f32.partialorder %v90_v33, 0.0 }
  0xa2   :  { %v89_v32 = vadd.f32 %v87_v21, %v80_v29  ;;  %v91_v34 = vadd.f32 %v87_v21, %v82_v30  ;;  %v103_v39 = vsel %vm93_vm1, %v88_v25, %v98_v31 }
  0xa3   :  { %v73_v36 = vpop.permute.xlu0 %72  ;;  %v105_v43 = vsel %vm95_vm3, %v90_v33, %v100_v37 }
  0xa4   :  { %v99_v35 = vmul.f32 0.01, %v89_v32  ;;  %vm94_vm2 = vcmp.gt.f32.partialorder %v89_v32, 0.0  ;;  %v101_v38 = vmul.f32 0.01, %v91_v34  ;;  %vm96_vm4 = vcmp.gt.f32.partialorder %v91_v34, 0.0 }
  0xa5   :  { %v83_v42 = vmul.f32 %v78_v20, %v73_v36 }
  0xa6   :  { %v104_v40 = vsel %vm94_vm2, %v89_v32, %v99_v35  ;;  %v106_v44 = vsel %vm96_vm4, %v91_v34, %v101_v38 }
  0xa7   :  { %v108_v41 = vpack.c.bf16 %v104_v40, %v103_v39  ;;  %v92_v45 = vadd.f32 %v87_v21, %v83_v42  ;;  %v109_v46 = vpack.c.bf16 %v106_v44, %v105_v43  ;;  %v4265_v40 = vsub.s32 3, %v4229_v16 }
  0xa9   :  { %3496 = vmatmul.mubr.bf16.vlgmr.msra.gmra.mxu0 %v108_v41  ;;  %v102_v47 = vmul.f32 0.01, %v92_v45  ;;  %vm97_vm5 = vcmp.gt.f32.partialorder %v92_v45, 0.0  ;;  %v4148_v41 = vmov 0   ;;  %v4271_v42 = vrot.slane %v4234_v18, %v4265_v40 }
  0xaa   :  { %3499 = vmatprep.mubr.msk.bf16.mxu0 %vm4147_vm0, %v4146_v1  ;;  %3776 = vset.pattern.permute.xlu0 %v4148_v41 }
  0xab   :  { %v107_v48 = vsel %vm97_vm5, %v92_v45, %v102_v47  ;;  %3777 = vset.pattern.permute.xlu1 %v4148_v41 }
  0xac   :  { %v110_v49 = vpack.c.bf16 %v107_v48, %v107_v48 }
  0xb1   :  { %3500 = vmatmul.mubr.bf16.gmra.mxu0 %v109_v46 }
  0xb2   :  { %3503 = vmatprep.mubr.msk.bf16.mxu0 %vm4147_vm0, %v4146_v1 }
  0xb9   :  { %3504 = vmatmul.mubr.bf16.gmra.mxu0 %v110_v49 }
  0xba   :  { %3551 = vmatprep.mubr.msk.bf16.mxu0 %vm4147_vm0, %v4146_v1 }
 0x169   :  { %v213_v53 = vpop.f32.mrf.mxu0 }
 0x16a   :  { %v214_v54 = vadd.f32 %v213_v53, %v130_v51 }
 0x16b   :  { %v3497_v55 = vpop.f32.mrf.mxu0 }
 0x16c   :  { %v240_v57 = vmul.f32 0.01, %v214_v54  ;;  %vm235_vm6 = vcmp.gt.f32.partialorder %v214_v54, 0.0 }
 0x16d   :  { %v216_v58 = vpop.f32.mrf.mxu0 }
 0x16e   :  { %v217_v59 = vadd.f32 %v216_v58, %v130_v51  ;;  %v245_v60 = vsel %vm235_vm6, %v214_v54, %v240_v57  ;;  %v3796_v58 = vld [vmem:[#allocation5 + $0x78] sm:$0xff]  }
 0x16f   :  { %v3498_v61 = vpop.f32.mrf.mxu0  ;;  %v287_v62 = vmul.f32 %v286_v56, %v245_v60  ;;  %v254_v29 = vmul.f32 %v253_v23, %v245_v60  ;;  %3508 = vmatpush3.bf16.msra.mxu1 %v3796_v58 }
 0x170   :  { %v241_v63 = vmul.f32 0.01, %v217_v59  ;;  %vm236_vm7 = vcmp.gt.f32.partialorder %v217_v59, 0.0  ;;  %v3797_v61 = vld [vmem:[#allocation5 + $0x70] sm:$0xff]   ;;  %3509 = vmatprep.subr.bf16.mxu1 %v4146_v1 }
 0x171   :  { %292 = vadd.xlane.f32.xlu1 %v287_v62  ;;  %v221_v6 = vpop.f32.mrf.mxu0 }
 0x172   :  { %v222_v7 = vadd.f32 %v221_v6, %v130_v51  ;;  %v246_v9 = vsel %vm236_vm7, %v217_v59, %v241_v63  ;;  %v3798_v63 = vld [vmem:[#allocation5 + $0x68] sm:$0xff]  }
 0x173   :  { %v3501_v10 = vpop.f32.mrf.mxu0  ;;  %v288_v11 = vmul.f32 %v286_v56, %v246_v9  ;;  %v255_v36 = vmul.f32 %v253_v23, %v246_v9  ;;  %3510 = vmatpush3.bf16.msra.mxu1 %v3797_v61 }
 0x174   :  { %v242_v13 = vmul.f32 0.01, %v222_v7  ;;  %vm237_vm8 = vcmp.gt.f32.partialorder %v222_v7, 0.0  ;;  %3511 = vmatprep.subr.bf16.mxu1 %v4146_v1 }
 0x175   :  { %294 = vadd.xlane.f32.xlu0 %v288_v11  ;;  %v224_v14 = vpop.f32.mrf.mxu0  ;;  %v3800_v11 = vld [vmem:[#allocation5 + $0x58] sm:$0xff]  }
 0x176   :  { %v225_v15 = vadd.f32 %v224_v14, %v130_v51  ;;  %v247_v20 = vsel %vm237_vm8, %v222_v7, %v242_v13  ;;  %v3799_v7 = vld [vmem:[#allocation5 + $0x60] sm:$0xff]  }
 0x177   :  { %v3502_v21 = vpop.f32.mrf.mxu0  ;;  %v289_v22 = vmul.f32 %v286_v56, %v247_v20  ;;  %v256_v33 = vmul.f32 %v253_v23, %v247_v20  ;;  %3512 = vmatpush3.bf16.msra.mxu1 %v3798_v63 }
 0x178   :  { %v243_v24 = vmul.f32 0.01, %v225_v15  ;;  %vm238_vm9 = vcmp.gt.f32.partialorder %v225_v15, 0.0  ;;  %3513 = vmatprep.subr.bf16.mxu1 %v4146_v1 }
 0x179   :  { %296 = vadd.xlane.f32.xlu0 %v289_v22  ;;  %v229_v25 = vpop.f32.mrf.mxu0 }
 0x17a   :  { %v230_v26 = vadd.f32 %v229_v25, %v130_v51  ;;  %v248_v27 = vsel %vm238_vm9, %v225_v15, %v243_v24 }
 0x17b   :  { %v3505_v28 = vpop.f32.mrf.mxu0  ;;  %v290_v30 = vmul.f32 %v286_v56, %v248_v27  ;;  %v257_v38 = vmul.f32 %v253_v23, %v248_v27  ;;  %3514 = vmatpush3.bf16.msra.mxu1 %v3799_v7 }
 0x17c   :  { %v244_v31 = vmul.f32 0.01, %v230_v26  ;;  %vm239_vm10 = vcmp.gt.f32.partialorder %v230_v26, 0.0  ;;  %3515 = vmatprep.subr.bf16.mxu1 %v4146_v1 }
 0x17d   :  { %259 = vadd.xlane.f32.xlu0 %v254_v29  ;;  %298 = vadd.xlane.f32.xlu1 %v290_v30  ;;  %v232_v32 = vpop.f32.mrf.mxu0  ;;  %v3801_v29 = vld [vmem:[#allocation5 + $0x50] sm:$0xff]  }
 0x17e   :  { %v249_v34 = vsel %vm239_vm10, %v230_v26, %v244_v31 }
 0x17f   :  { %v3506_v35 = vpop.f32.mrf.mxu0  ;;  %v258_v37 = vmul.f32 %v253_v23, %v249_v34  ;;  %v291_v39 = vmul.f32 %v286_v56, %v249_v34  ;;  %3516 = vmatpush3.bf16.msra.mxu1 %v3800_v11  ;;  %v3802_v34 = vld [vmem:[#allocation5 + $0x48] sm:$0xff]  }
 0x180   :  { %3517 = vmatprep.subr.bf16.mxu1 %v4146_v1 }
 0x181   :  { %263 = vadd.xlane.f32.xlu0 %v256_v33  ;;  %261 = vadd.xlane.f32.xlu1 %v255_v36 }
 0x183   :  { %3518 = vmatpush3.bf16.msra.mxu1 %v3801_v29 }
 0x184   :  { %3519 = vmatprep.subr.bf16.mxu1 %v4146_v1 }
 0x185   :  { %300 = vadd.xlane.f32.xlu0 %v291_v39  ;;  %265 = vadd.xlane.f32.xlu1 %v257_v38  ;;  %v3803_v38 = vld [vmem:[#allocation5 + $0x40] sm:$0xff]  }
 0x187   :  { %3520 = vmatpush3.bf16.msra.mxu1 %v3802_v34 }
 0x188   :  { %3521 = vmatprep.subr.bf16.mxu1 %v4146_v1 }
 0x18b   :  { %3522 = vmatpush3.bf16.msra.mxu1 %v3803_v38 }
 0x18c   :  { %3563 = vmatprep.subr.bf16.mxu1 %v4146_v1 }
 0x1fa   :  { %v293_v43 = vpop.xlane.xlu1 %292 }
 0x1fb   :  { %v302_v44 = vadd.f32 %v293_v43, %v4271_v42 }
 0x1fd   :  { %312 = vrot.lane.b32.xlu1 %v302_v44, %s4149_s7 }
 0x1fe   :  { %v295_v45 = vpop.xlane.xlu0 %294 }
 0x1ff   :  { %v303_v46 = vadd.f32 %v295_v45, %v4271_v42 }
 0x201   :  { %314 = vrot.lane.b32.xlu0 %v303_v46, %s4149_s7 }
 0x202   :  { %v297_v16 = vpop.xlane.xlu0 %296 }
 0x203   :  { %v304_v47 = vadd.f32 %v297_v16, %v4271_v42 }
 0x205   :  { %316 = vrot.lane.b32.xlu0 %v304_v47, %s4149_s7 }
 0x206   :  { %v299_v48 = vpop.xlane.xlu1 %298  ;;  %v260_v49 = vpop.xlane.xlu0 %259 }
 0x207   :  { %v305_v18 = vadd.f32 %v299_v48, %v4271_v42  ;;  %v273_v55 = vadd.f32 %v4271_v42, %v260_v49 }
 0x209   :  { %318 = vrot.lane.b32.xlu0 %v305_v18, %s4149_s7  ;;  %3868 = vtanh.f32 %v273_v55 }
 0x20a   :  { %v264_v51 = vpop.xlane.xlu0 %263  ;;  %v262_v56 = vpop.xlane.xlu1 %261 }
 0x20b   :  { %v274_v57 = vadd.f32 %v4271_v42, %v262_v56  ;;  %v275_v59 = vadd.f32 %v4271_v42, %v264_v51 }
 0x20d   :  { %3870 = vtanh.f32 %v274_v57 }
 0x20e   :  { %v301_v53 = vpop.xlane.xlu0 %300  ;;  %v266_v60 = vpop.xlane.xlu1 %265  ;;  %3872 = vtanh.f32 %v275_v59 }
 0x20f   :  { %v306_v54 = vadd.f32 %v301_v53, %v4271_v42  ;;  %v276_v62 = vadd.f32 %v4271_v42, %v266_v60  ;;  %v4332_v53 = vld [vmem:[#allocation2 + $0x8] sm:$0xff] }
 0x211   :  { %320 = vrot.lane.b32.xlu0 %v306_v54, %s4149_s7  ;;  %3874 = vtanh.f32 %v276_v62  ;;  %v396_v54 = vrot.slane %v4332_v53, %v4237_v19 }
 0x216   :  { %v4289_v6 = vpop.eup %3868 }
 0x217   :  { %v332_v9 = vsub.f32 0.0, %v4289_v6 }
 0x219   :  { %v337_v13 = vmul.f32 1.442695, %v332_v9 }
 0x21a   :  { %v4293_v10 = vpop.eup %3870 }
 0x21b   :  { %v333_v14 = vsub.f32 0.0, %v4293_v10  ;;  %v4297_v15 = vpop.eup %3872  ;;  %3876 = vpow2.f32 %v337_v13 }
 0x21c   :  { %v334_v21 = vsub.f32 0.0, %v4297_v15 }
 0x21d   :  { %v339_v20 = vmul.f32 1.442695, %v333_v14 }
 0x21e   :  { %v4301_v22 = vpop.eup %3874  ;;  %v341_v23 = vmul.f32 1.442695, %v334_v21 }
 0x21f   :  { %3878 = vpow2.f32 %v339_v20  ;;  %v335_v24 = vsub.f32 0.0, %v4301_v22 }
 0x220   :  { %3880 = vpow2.f32 %v341_v23 }
 0x221   :  { %267 = vadd.xlane.f32.xlu1 %v258_v37  ;;  %v343_v25 = vmul.f32 1.442695, %v335_v24 }
 0x223   :  { %3882 = vpow2.f32 %v343_v25 }
 0x228   :  { %v3877_v28 = vpop.eup %3876 }
 0x22c   :  { %v3879_v33 = vpop.eup %3878 }
 0x22d   :  { %v3881_v37 = vpop.eup %3880 }
 0x230   :  { %v3883_v44 = vpop.eup %3882 }
 0x26f   :  { %v313_v26 = vpop.permute.xlu1 %312 }
 0x270   :  { %v327_v27 = vsub.f32 %v4190_v2, %v313_v26 }
 0x272   :  { %v4305_v30 = vmul.f32 %v3877_v28, %v327_v27 }
 0x273   :  { %v315_v31 = vpop.permute.xlu0 %314 }
 0x274   :  { %v328_v32 = vsub.f32 %v4201_v4, %v315_v31  ;;  %361 = vperm.xlu0 %3776, %v4305_v30  }
 0x276   :  { %v4310_v35 = vmul.f32 %v3879_v33, %v328_v32 }
 0x277   :  { %v317_v36 = vpop.permute.xlu0 %316 }
 0x278   :  { %v329_v2 = vsub.f32 %v4195_v3, %v317_v36  ;;  %366 = vperm.xlu0 %3776, %v4310_v35   ;;  %v440_v36 = vrot.slane %v4332_v53, %v4250_v50 }
 0x27a   :  { %v4315_v39 = vmul.f32 %v3881_v37, %v329_v2 }
 0x27b   :  { %v319_v4 = vpop.permute.xlu0 %318 }
 0x27c   :  { %v330_v43 = vsub.f32 %v4207_v5, %v319_v4  ;;  %371 = vperm.xlu0 %3776, %v4315_v39   ;;  %v563_v4 = vrot.slane %v4332_v53, %v4260_v12 }
 0x27e   :  { %v4320_v45 = vmul.f32 %v3883_v44, %v330_v43 }
 0x280   :  { %376 = vperm.xlu0 %3776, %v4320_v45  }
 0x283   :  { %v321_v5 = vpop.permute.xlu0 %320 }
 0x284   :  { %v331_v49 = vsub.f32 %v4214_v8, %v321_v5 }
 0x2aa   :  { %v268_v3 = vpop.xlane.xlu1 %267 }
 0x2ab   :  { %v277_v46 = vadd.f32 %v4271_v42, %v268_v3  ;;  %v387_v42 = vrot.slane %v4332_v53, %v4232_v17 }
 0x2ad   :  { %3884 = vtanh.f32 %v277_v46 }
 0x2ba   :  { %v4324_v16 = vpop.eup %3884 }
 0x2bb   :  { %v336_v47 = vsub.f32 0.0, %v4324_v16 }
 0x2bd   :  { %v345_v48 = vmul.f32 1.442695, %v336_v47 }
 0x2bf   :  { %3886 = vpow2.f32 %v345_v48 }
 0x2cc   :  { %v3887_v18 = vpop.eup %3886 }
 0x2cd   :  { %v4328_v51 = vmul.f32 %v3887_v18, %v331_v49 }
 0x2cf   :  { %381 = vperm.xlu1 %3777, %v4328_v51  }
 0x2d3   :  { %3778 = vset.pattern.permute.xlu1 %v4145_v0 }
 0x2ef   :  { %v362_v55 = vpop.permute.xlu0 %361 }
 0x2f0   :  { %v388_v56 = vmul.f32 %v387_v42, %v362_v55 }
 0x2f2   :  { %v397_v57 = vadd.f32 %v396_v54, %v388_v56 }
 0x2f3   :  { %v367_v58 = vpop.permute.xlu0 %366 }
 0x2f4   :  { %v389_v8 = vmul.f32 %v387_v42, %v367_v58  ;;  %v407_v59 = vmul.f32 0.01, %v397_v57  ;;  %vm402_vm11 = vcmp.gt.f32.partialorder %v397_v57, 0.0  ;;  %v4350_v58 = vrot.slane %v4332_v53, %v4255_v52 }
 0x2f6   :  { %v398_v60 = vadd.f32 %v396_v54, %v389_v8  ;;  %v412_v9 = vsel %vm402_vm11, %v397_v57, %v407_v59 }
 0x2f7   :  { %v372_v61 = vpop.permute.xlu0 %371 }
 0x2f8   :  { %v408_v62 = vmul.f32 0.01, %v398_v60  ;;  %v390_v63 = vmul.f32 %v387_v42, %v372_v61  ;;  %vm403_vm12 = vcmp.gt.f32.partialorder %v398_v60, 0.0 }
 0x2fa   :  { %v399_v7 = vadd.f32 %v396_v54, %v390_v63  ;;  %v413_v11 = vsel %vm403_vm12, %v398_v60, %v408_v62 }
 0x2fb   :  { %v377_v13 = vpop.permute.xlu0 %376  ;;  %v417_v14 = vpack.c.bf16 %v413_v11, %v412_v9 }
 0x2fc   :  { %v391_v20 = vmul.f32 %v387_v42, %v377_v13  ;;  %v409_v21 = vmul.f32 0.01, %v399_v7  ;;  %vm404_vm13 = vcmp.gt.f32.partialorder %v399_v7, 0.0 }
 0x2fd   :  { %3524 = vmatmul.mubr.bf16.vlgmr.msra.gmra.mxu1 %v417_v14 }
 0x2fe   :  { %v400_v23 = vadd.f32 %v396_v54, %v391_v20  ;;  %3527 = vmatprep.mubr.msk.bf16.mxu1 %vm4147_vm0, %v4146_v1  ;;  %v414_v25 = vsel %vm404_vm13, %v399_v7, %v409_v21 }
 0x300   :  { %v410_v24 = vmul.f32 0.01, %v400_v23  ;;  %vm405_vm14 = vcmp.gt.f32.partialorder %v400_v23, 0.0 }
 0x302   :  { %v415_v26 = vsel %vm405_vm14, %v400_v23, %v410_v24 }
 0x303   :  { %v418_v27 = vpack.c.bf16 %v415_v26, %v414_v25 }
 0x305   :  { %3528 = vmatmul.mubr.bf16.gmra.mxu1 %v418_v27 }
 0x306   :  { %3531 = vmatprep.mubr.msk.bf16.mxu1 %vm4147_vm0, %v4146_v1 }
 0x34a   :  { %v382_v28 = vpop.permute.xlu1 %381 }
 0x34b   :  { %v392_v29 = vmul.f32 %v387_v42, %v382_v28 }
 0x34d   :  { %v401_v31 = vadd.f32 %v396_v54, %v392_v29  ;;  %v4358_v29 = vrot.slane %v4332_v53, %v4265_v40 }
 0x34f   :  { %v411_v32 = vmul.f32 0.01, %v401_v31  ;;  %vm406_vm15 = vcmp.gt.f32.partialorder %v401_v31, 0.0 }
 0x351   :  { %v416_v33 = vsel %vm406_vm15, %v401_v31, %v411_v32 }
 0x352   :  { %v419_v34 = vpack.c.bf16 %v416_v33, %v416_v33 }
 0x354   :  { %3532 = vmatmul.mubr.bf16.gmra.mxu1 %v419_v34 }
 0x355   :  { %3579 = vmatprep.mubr.msk.bf16.mxu1 %vm4147_vm0, %v4146_v1 }
 0x3bd   :  { %v523_v2 = vpop.f32.mrf.mxu1 }
 0x3be   :  { %v524_v37 = vadd.f32 %v523_v2, %v440_v36 }
 0x3bf   :  { %v3525_v38 = vpop.f32.mrf.mxu1 }
 0x3c0   :  { %v550_v43 = vmul.f32 0.01, %v524_v37  ;;  %vm545_vm1 = vcmp.gt.f32.partialorder %v524_v37, 0.0 }
 0x3c1   :  { %v526_v44 = vpop.f32.mrf.mxu1 }
 0x3c2   :  { %v527_v3 = vadd.f32 %v526_v44, %v440_v36  ;;  %v555_v46 = vsel %vm545_vm1, %v524_v37, %v550_v43 }
 0x3c3   :  { %v3526_v47 = vpop.f32.mrf.mxu1  ;;  %v564_v48 = vmul.f32 %v563_v4, %v555_v46  ;;  %v597_v26 = vmul.f32 %v4350_v58, %v555_v46 }
 0x3c4   :  { %v551_v5 = vmul.f32 0.01, %v527_v3  ;;  %vm546_vm2 = vcmp.gt.f32.partialorder %v527_v3, 0.0 }
 0x3c5   :  { %569 = vadd.xlane.f32.xlu0 %v564_v48  ;;  %v531_v49 = vpop.f32.mrf.mxu1 }
 0x3c6   :  { %v532_v18 = vadd.f32 %v531_v49, %v440_v36  ;;  %v556_v42 = vsel %vm546_vm2, %v527_v3, %v551_v5 }
 0x3c7   :  { %v3529_v54 = vpop.f32.mrf.mxu1  ;;  %v565_v55 = vmul.f32 %v563_v4, %v556_v42  ;;  %v598_v27 = vmul.f32 %v4350_v58, %v556_v42 }
 0x3c8   :  { %v552_v56 = vmul.f32 0.01, %v532_v18  ;;  %vm547_vm3 = vcmp.gt.f32.partialorder %v532_v18, 0.0 }
 0x3c9   :  { %571 = vadd.xlane.f32.xlu1 %v565_v55  ;;  %v534_v57 = vpop.f32.mrf.mxu1 }
 0x3ca   :  { %v535_v8 = vadd.f32 %v534_v57, %v440_v36  ;;  %v557_v59 = vsel %vm547_vm3, %v532_v18, %v552_v56 }
 0x3cb   :  { %v3530_v60 = vpop.f32.mrf.mxu1  ;;  %v599_v61 = vmul.f32 %v4350_v58, %v557_v59  ;;  %v566_v62 = vmul.f32 %v563_v4, %v557_v59 }
 0x3cc   :  { %v553_v63 = vmul.f32 0.01, %v535_v8  ;;  %vm548_vm4 = vcmp.gt.f32.partialorder %v535_v8, 0.0 }
 0x3cd   :  { %606 = vadd.xlane.f32.xlu1 %v599_v61  ;;  %573 = vadd.xlane.f32.xlu0 %v566_v62 }
 0x3ce   :  { %v558_v7 = vsel %vm548_vm4, %v535_v8, %v553_v63 }
 0x3cf   :  { %v567_v9 = vmul.f32 %v563_v4, %v558_v7  ;;  %v600_v28 = vmul.f32 %v4350_v58, %v558_v7  ;;  %v3804_v7 = vld [vmem:[#allocation5 + $0xb8] sm:$0xff]  }
 0x3d0   :  { %3536 = vmatpush3.bf16.msra.mxu0 %v3804_v7  ;;  %v4430_v7 = vld [vmem:[#allocation2 + $0x10] sm:$0xff] }
 0x3d1   :  { %575 = vadd.xlane.f32.xlu0 %v567_v9  ;;  %v3805_v9 = vld [vmem:[#allocation5 + $0xb0] sm:$0xff]   ;;  %3537 = vmatprep.subr.bf16.mxu0 %v4146_v1 }
 0x3d4   :  { %3538 = vmatpush3.bf16.msra.mxu0 %v3805_v9  ;;  %v697_v9 = vrot.slane %v4430_v7, %v4232_v17 }
 0x3d5   :  { %3539 = vmatprep.subr.bf16.mxu0 %v4146_v1 }
 0x414   :  { %v539_v11 = vpop.f32.mrf.mxu1 }
 0x415   :  { %v540_v13 = vadd.f32 %v539_v11, %v440_v36  ;;  %v3806_v11 = vld [vmem:[#allocation5 + $0xa8] sm:$0xff]  }
 0x416   :  { %v3533_v14 = vpop.f32.mrf.mxu1  ;;  %3540 = vmatpush3.bf16.msra.mxu0 %v3806_v11 }
 0x417   :  { %v554_v20 = vmul.f32 0.01, %v540_v13  ;;  %vm549_vm5 = vcmp.gt.f32.partialorder %v540_v13, 0.0  ;;  %3541 = vmatprep.subr.bf16.mxu0 %v4146_v1  ;;  %v3808_v14 = vld [vmem:[#allocation5 + $0x98] sm:$0xff]  }
 0x418   :  { %v542_v21 = vpop.f32.mrf.mxu1 }
 0x419   :  { %v559_v23 = vsel %vm549_vm5, %v540_v13, %v554_v20  ;;  %v3807_v13 = vld [vmem:[#allocation5 + $0xa0] sm:$0xff]  }
 0x41a   :  { %v3534_v24 = vpop.f32.mrf.mxu1  ;;  %v568_v25 = vmul.f32 %v563_v4, %v559_v23  ;;  %v601_v8 = vmul.f32 %v4350_v58, %v559_v23  ;;  %3542 = vmatpush3.bf16.msra.mxu0 %v3807_v13 }
 0x41b   :  { %3543 = vmatprep.subr.bf16.mxu0 %v4146_v1 }
 0x41c   :  { %577 = vadd.xlane.f32.xlu0 %v568_v25 }
 0x41e   :  { %3544 = vmatpush3.bf16.msra.mxu0 %v3808_v14 }
 0x41f   :  { %3545 = vmatprep.subr.bf16.mxu0 %v4146_v1 }
 0x420   :  { %602 = vadd.xlane.f32.xlu0 %v597_v26  ;;  %v4068_v26 = vld [vmem:[%s5076_s0] sm:$0xff] }
 0x424   :  { %604 = vadd.xlane.f32.xlu0 %v598_v27 }
 0x428   :  { %608 = vadd.xlane.f32.xlu0 %v600_v28 }
 0x44e   :  { %v570_v31 = vpop.xlane.xlu0 %569 }
 0x44f   :  { %v583_v32 = vadd.f32 %v4358_v29, %v570_v31 }
 0x451   :  { %3888 = vtanh.f32 %v583_v32  ;;  %v3809_v32 = vld [vmem:[#allocation5 + $0x90] sm:$0xff]  }
 0x452   :  { %v572_v33 = vpop.xlane.xlu1 %571  ;;  %3546 = vmatpush3.bf16.msra.mxu0 %v3809_v32 }
 0x453   :  { %v584_v34 = vadd.f32 %v4358_v29, %v572_v33  ;;  %3547 = vmatprep.subr.bf16.mxu0 %v4146_v1 }
 0x455   :  { %3890 = vtanh.f32 %v584_v34 }
 0x456   :  { %v574_v36 = vpop.xlane.xlu0 %573  ;;  %v607_v24 = vpop.xlane.xlu1 %606 }
 0x457   :  { %v585_v2 = vadd.f32 %v4358_v29, %v574_v36  ;;  %v614_v34 = vadd.f32 %v607_v24, %v4358_v29  ;;  %v4069_v36 = vld [vmem:[%s5076_s0 + $0x8] sm:$0xff] }
 0x459   :  { %3892 = vtanh.f32 %v585_v2 }
 0x45a   :  { %v576_v37 = vpop.xlane.xlu0 %575 }
 0x45b   :  { %v586_v38 = vadd.f32 %v4358_v29, %v576_v37 }
 0x45d   :  { %3894 = vtanh.f32 %v586_v38  ;;  %v3810_v38 = vld [vmem:[#allocation5 + $0x88] sm:$0xff]  }
 0x45e   :  { %v4364_v4 = vpop.eup %3888  ;;  %3548 = vmatpush3.bf16.msra.mxu0 %v3810_v38 }
 0x45f   :  { %v622_v53 = vsub.f32 0.0, %v4364_v4  ;;  %3549 = vmatprep.subr.bf16.mxu0 %v4146_v1 }
 0x461   :  { %v627_v43 = vmul.f32 1.442695, %v622_v53 }
 0x462   :  { %v4367_v44 = vpop.eup %3890 }
 0x463   :  { %3896 = vpow2.f32 %v627_v43  ;;  %v623_v3 = vsub.f32 0.0, %v4367_v44 }
 0x465   :  { %v629_v46 = vmul.f32 1.442695, %v623_v3  ;;  %v4070_v3 = vld [vmem:[%s5076_s0 + $0x10] sm:$0xff] }
 0x466   :  { %v4370_v47 = vpop.eup %3892 }
 0x467   :  { %3898 = vpow2.f32 %v629_v46  ;;  %v624_v48 = vsub.f32 0.0, %v4370_v47  ;;  %v619_v46 = vsub.f32 %v4070_v3, %v614_v34 }
 0x469   :  { %v631_v5 = vmul.f32 1.442695, %v624_v48 }
 0x46a   :  { %v4373_v49 = vpop.eup %3894 }
 0x46b   :  { %3900 = vpow2.f32 %v631_v5  ;;  %v625_v18 = vsub.f32 0.0, %v4373_v49  ;;  %v3811_v5 = vld [vmem:[#allocation5 + $0x80] sm:$0xff]  }
 0x46c   :  { %3550 = vmatpush3.bf16.msra.mxu0 %v3811_v5 }
 0x46d   :  { %v633_v42 = vmul.f32 1.442695, %v625_v18  ;;  %3591 = vmatprep.subr.bf16.mxu0 %v4146_v1 }
 0x46f   :  { %3902 = vpow2.f32 %v633_v42  ;;  %v4071_v42 = vld [vmem:[%s5076_s0 + $0x18] sm:$0xff] }
 0x470   :  { %v3897_v54 = vpop.eup %3896 }
 0x471   :  { %642 = vrot.lane.b32.xlu1 %v3897_v54, %s4150_s8 }
 0x474   :  { %v3899_v55 = vpop.eup %3898 }
 0x475   :  { %644 = vrot.lane.b32.xlu0 %v3899_v55, %s4150_s8 }
 0x478   :  { %v3901_v56 = vpop.eup %3900 }
 0x479   :  { %646 = vrot.lane.b32.xlu1 %v3901_v56, %s4150_s8 }
 0x47c   :  { %v3903_v57 = vpop.eup %3902 }
 0x47d   :  { %648 = vrot.lane.b32.xlu1 %v3903_v57, %s4150_s8 }
 0x494   :  { %610 = vadd.xlane.f32.xlu0 %v601_v8 }
 0x4a5   :  { %v578_v59 = vpop.xlane.xlu0 %577 }
 0x4a6   :  { %v587_v60 = vadd.f32 %v4358_v29, %v578_v59  ;;  %v4072_v59 = vld [vmem:[%s5076_s0 + $0x20] sm:$0xff]  ;;  %s4151_s0 = smov 2  }
 0x4a8   :  { %3904 = vtanh.f32 %v587_v60 }
 0x4a9   :  { %v603_v20 = vpop.xlane.xlu0 %602 }
 0x4aa   :  { %v612_v23 = vadd.f32 %v603_v20, %v4358_v29 }
 0x4ac   :  { %v617_v27 = vsub.f32 %v4068_v26, %v612_v23 }
 0x4ad   :  { %v605_v21 = vpop.xlane.xlu0 %604 }
 0x4ae   :  { %v613_v25 = vadd.f32 %v605_v21, %v4358_v29 }
 0x4b0   :  { %v618_v2 = vsub.f32 %v4069_v36, %v613_v25 }
 0x4b1   :  { %v609_v28 = vpop.xlane.xlu0 %608 }
 0x4b2   :  { %v615_v43 = vadd.f32 %v609_v28, %v4358_v29 }
 0x4b4   :  { %v620_v54 = vsub.f32 %v4071_v42, %v615_v43 }
 0x4b5   :  { %v4382_v61 = vpop.eup %3904 }
 0x4b6   :  { %v626_v62 = vsub.f32 0.0, %v4382_v61 }
 0x4b8   :  { %v635_v63 = vmul.f32 1.442695, %v626_v62 }
 0x4ba   :  { %3906 = vpow2.f32 %v635_v63 }
 0x4c7   :  { %v3907_v58 = vpop.eup %3906 }
 0x4c8   :  { %650 = vrot.lane.b32.xlu1 %v3907_v58, %s4150_s8 }
 0x4e3   :  { %v643_v31 = vpop.permute.xlu1 %642 }
 0x4e4   :  { %v4396_v33 = vmul.f32 %v643_v31, %v617_v27 }
 0x4e6   :  { %671 = vperm.xlu1 %3778, %v4396_v33  }
 0x4e7   :  { %v645_v37 = vpop.permute.xlu0 %644 }
 0x4e8   :  { %v4404_v53 = vmul.f32 %v645_v37, %v618_v2 }
 0x4ea   :  { %676 = vperm.xlu1 %3778, %v4404_v53  }
 0x4eb   :  { %v647_v48 = vpop.permute.xlu1 %646 }
 0x4ec   :  { %v4412_v18 = vmul.f32 %v647_v48, %v619_v46 }
 0x4ee   :  { %681 = vperm.xlu1 %3778, %v4412_v18  }
 0x4ef   :  { %v649_v55 = vpop.permute.xlu1 %648 }
 0x4f0   :  { %v4419_v56 = vmul.f32 %v649_v55, %v620_v54 }
 0x4f2   :  { %686 = vperm.xlu1 %3778, %v4419_v56  }
 0x51d   :  { %v611_v57 = vpop.xlane.xlu0 %610 }
 0x51e   :  { %v616_v8 = vadd.f32 %v611_v57, %v4358_v29  ;;  %v706_v29 = vrot.slane %v4430_v7, %v4237_v19 }
 0x520   :  { %v621_v60 = vsub.f32 %v4072_v59, %v616_v8  ;;  %v750_v8 = vrot.slane %v4430_v7, %v4250_v50 }
 0x53a   :  { %v651_v62 = vpop.permute.xlu1 %650 }
 0x53b   :  { %v4426_v63 = vmul.f32 %v651_v62, %v621_v60 }
 0x53d   :  { %691 = vperm.xlu1 %3778, %v4426_v63  }
 0x541   :  { %3779 = vset.pattern.permute.xlu1 %v4148_v41 }
 0x561   :  { %v672_v11 = vpop.permute.xlu1 %671 }
 0x562   :  { %v698_v58 = vmul.f32 %v697_v9, %v672_v11  ;;  %v906_v11 = vrot.slane %v4430_v7, %v4255_v52 }
 0x564   :  { %v707_v13 = vadd.f32 %v706_v29, %v698_v58 }
 0x565   :  { %v677_v14 = vpop.permute.xlu1 %676 }
 0x566   :  { %v699_v20 = vmul.f32 %v697_v9, %v677_v14  ;;  %v717_v21 = vmul.f32 0.01, %v707_v13  ;;  %vm712_vm6 = vcmp.gt.f32.partialorder %v707_v13, 0.0 }
 0x568   :  { %v708_v23 = vadd.f32 %v706_v29, %v699_v20  ;;  %v722_v27 = vsel %vm712_vm6, %v707_v13, %v717_v21 }
 0x569   :  { %v682_v24 = vpop.permute.xlu1 %681 }
 0x56a   :  { %vm713_vm7 = vcmp.gt.f32.partialorder %v708_v23, 0.0  ;;  %v718_v25 = vmul.f32 0.01, %v708_v23  ;;  %v700_v26 = vmul.f32 %v697_v9, %v682_v24 }
 0x56c   :  { %v723_v28 = vsel %vm713_vm7, %v708_v23, %v718_v25  ;;  %v709_v31 = vadd.f32 %v706_v29, %v700_v26 }
 0x56d   :  { %v727_v32 = vpack.c.bf16 %v723_v28, %v722_v27  ;;  %v687_v34 = vpop.permute.xlu1 %686 }
 0x56e   :  { %v701_v36 = vmul.f32 %v697_v9, %v687_v34  ;;  %v719_v2 = vmul.f32 0.01, %v709_v31  ;;  %vm714_vm8 = vcmp.gt.f32.partialorder %v709_v31, 0.0 }
 0x56f   :  { %3552 = vmatmul.mubr.bf16.vlgmr.msra.gmra.mxu0 %v727_v32 }
 0x570   :  { %v710_v37 = vadd.f32 %v706_v29, %v701_v36  ;;  %3555 = vmatprep.mubr.msk.bf16.mxu0 %vm4147_vm0, %v4146_v1  ;;  %v724_v43 = vsel %vm714_vm8, %v709_v31, %v719_v2 }
 0x572   :  { %v720_v38 = vmul.f32 0.01, %v710_v37  ;;  %vm715_vm9 = vcmp.gt.f32.partialorder %v710_v37, 0.0 }
 0x574   :  { %v725_v3 = vsel %vm715_vm9, %v710_v37, %v720_v38 }
 0x575   :  { %v728_v46 = vpack.c.bf16 %v725_v3, %v724_v43  ;;  %v873_v3 = vrot.slane %v4430_v7, %v4260_v12 }
 0x577   :  { %3556 = vmatmul.mubr.bf16.gmra.mxu0 %v728_v46 }
 0x578   :  { %3559 = vmatprep.mubr.msk.bf16.mxu0 %vm4147_vm0, %v4146_v1 }
 0x5b8   :  { %v692_v48 = vpop.permute.xlu1 %691 }
 0x5b9   :  { %v702_v5 = vmul.f32 %v697_v9, %v692_v48 }
 0x5bb   :  { %v711_v42 = vadd.f32 %v706_v29, %v702_v5 }
 0x5bd   :  { %v721_v54 = vmul.f32 0.01, %v711_v42  ;;  %vm716_vm10 = vcmp.gt.f32.partialorder %v711_v42, 0.0 }
 0x5bf   :  { %v726_v55 = vsel %vm716_vm10, %v711_v42, %v721_v54 }
 0x5c0   :  { %v729_v57 = vpack.c.bf16 %v726_v55, %v726_v55 }
 0x5c2   :  { %3560 = vmatmul.mubr.bf16.gmra.mxu0 %v729_v57 }
 0x5c3   :  { %3607 = vmatprep.mubr.msk.bf16.mxu0 %vm4147_vm0, %v4146_v1 }
 0x62f   :  { %v833_v59 = vpop.f32.mrf.mxu0 }
 0x630   :  { %v834_v60 = vadd.f32 %v833_v59, %v750_v8 }
 0x631   :  { %v3553_v62 = vpop.f32.mrf.mxu0 }
 0x632   :  { %v860_v58 = vmul.f32 0.01, %v834_v60  ;;  %vm855_vm11 = vcmp.gt.f32.partialorder %v834_v60, 0.0 }
 0x633   :  { %v836_v9 = vpop.f32.mrf.mxu0 }
 0x634   :  { %v837_v29 = vadd.f32 %v836_v9, %v750_v8  ;;  %v865_v13 = vsel %vm855_vm11, %v834_v60, %v860_v58 }
 0x635   :  { %v3554_v14 = vpop.f32.mrf.mxu0  ;;  %v907_v20 = vmul.f32 %v906_v11, %v865_v13  ;;  %v874_v46 = vmul.f32 %v873_v3, %v865_v13  ;;  %v892_v13 = vrot.slane %v4430_v7, %v4265_v40 }
 0x636   :  { %v861_v21 = vmul.f32 0.01, %v837_v29  ;;  %vm856_vm12 = vcmp.gt.f32.partialorder %v837_v29, 0.0 }
 0x637   :  { %v841_v23 = vpop.f32.mrf.mxu0  ;;  %912 = vadd.xlane.f32.xlu1 %v907_v20 }
 0x638   :  { %v842_v24 = vadd.f32 %v841_v23, %v750_v8  ;;  %v866_v25 = vsel %vm856_vm12, %v837_v29, %v861_v21 }
 0x639   :  { %v3557_v26 = vpop.f32.mrf.mxu0  ;;  %v908_v27 = vmul.f32 %v906_v11, %v866_v25  ;;  %v875_v48 = vmul.f32 %v873_v3, %v866_v25 }
 0x63a   :  { %v862_v28 = vmul.f32 0.01, %v842_v24  ;;  %vm857_vm13 = vcmp.gt.f32.partialorder %v842_v24, 0.0 }
 0x63b   :  { %914 = vadd.xlane.f32.xlu0 %v908_v27  ;;  %v844_v31 = vpop.f32.mrf.mxu0 }
 0x63c   :  { %v845_v32 = vadd.f32 %v844_v31, %v750_v8  ;;  %v867_v34 = vsel %vm857_vm13, %v842_v24, %v862_v28 }
 0x63d   :  { %v3558_v36 = vpop.f32.mrf.mxu0  ;;  %v909_v2 = vmul.f32 %v906_v11, %v867_v34  ;;  %v876_v5 = vmul.f32 %v873_v3, %v867_v34 }
 0x63e   :  { %v863_v37 = vmul.f32 0.01, %v845_v32  ;;  %vm858_vm14 = vcmp.gt.f32.partialorder %v845_v32, 0.0 }
 0x63f   :  { %916 = vadd.xlane.f32.xlu0 %v909_v2  ;;  %v662_v2 = vadd.f32 %v4364_v4, %v4289_v6 }
 0x640   :  { %v868_v38 = vsel %vm858_vm14, %v845_v32, %v863_v37 }
 0x641   :  { %v910_v43 = vmul.f32 %v906_v11, %v868_v38  ;;  %v877_v42 = vmul.f32 %v873_v3, %v868_v38 }
 0x643   :  { %918 = vadd.xlane.f32.xlu0 %v910_v43  ;;  %v663_v43 = vadd.f32 %v4367_v44, %v4293_v10 }
 0x647   :  { %879 = vadd.xlane.f32.xlu0 %v874_v46 }
 0x64b   :  { %881 = vadd.xlane.f32.xlu0 %v875_v48  ;;  %v664_v48 = vadd.f32 %v4370_v47, %v4297_v15  ;;  %v3816_v47 = vld [vmem:[#allocation5 + $0xd8] sm:$0xff]  }
 0x64f   :  { %883 = vadd.xlane.f32.xlu0 %v876_v5 }
 0x653   :  { %885 = vadd.xlane.f32.xlu0 %v877_v42 }
 0x682   :  { %v849_v54 = vpop.f32.mrf.mxu0 }
 0x683   :  { %v850_v55 = vadd.f32 %v849_v54, %v750_v8  ;;  %v665_v54 = vadd.f32 %v4373_v49, %v4301_v22  ;;  %v3815_v22 = vld [vmem:[#allocation5 + $0xe0] sm:$0xff]   ;;  %v666_v49 = vadd.f32 %v4382_v61, %v4324_v16  ;;  %v3817_v16 = vld [vmem:[#allocation5 + $0xd0] sm:$0xff]  }
 0x684   :  { %v3561_v57 = vpop.f32.mrf.mxu0 }
 0x685   :  { %v864_v59 = vmul.f32 0.01, %v850_v55  ;;  %vm859_vm15 = vcmp.gt.f32.partialorder %v850_v55, 0.0  ;;  %v3813_v57 = vld [vmem:[#allocation5 + $0xf0] sm:$0xff]  }
 0x686   :  { %v852_v60 = vpop.f32.mrf.mxu0 }
 0x687   :  { %v869_v62 = vsel %vm859_vm15, %v850_v55, %v864_v59  ;;  %v3812_v55 = vld [vmem:[#allocation5 + $0xf8] sm:$0xff]   ;;  %v3814_v59 = vld [vmem:[#allocation5 + $0xe8] sm:$0xff]  }
 0x688   :  { %v3562_v58 = vpop.f32.mrf.mxu0  ;;  %v911_v9 = vmul.f32 %v906_v11, %v869_v62  ;;  %v878_v29 = vmul.f32 %v873_v3, %v869_v62  ;;  %3564 = vmatpush3.bf16.msra.mxu1 %v3812_v55 }
 0x689   :  { %3565 = vmatprep.subr.bf16.mxu1 %v4146_v1 }
 0x68a   :  { %920 = vadd.xlane.f32.xlu0 %v911_v9  ;;  %887 = vadd.xlane.f32.xlu1 %v878_v29 }
 0x68c   :  { %3566 = vmatpush3.bf16.msra.mxu1 %v3813_v57 }
 0x68d   :  { %3567 = vmatprep.subr.bf16.mxu1 %v4146_v1 }
 0x690   :  { %3568 = vmatpush3.bf16.msra.mxu1 %v3814_v59 }
 0x691   :  { %3569 = vmatprep.subr.bf16.mxu1 %v4146_v1 }
 0x694   :  { %3570 = vmatpush3.bf16.msra.mxu1 %v3815_v22 }
 0x695   :  { %3571 = vmatprep.subr.bf16.mxu1 %v4146_v1 }
 0x698   :  { %3572 = vmatpush3.bf16.msra.mxu1 %v3816_v47 }
 0x699   :  { %3573 = vmatprep.subr.bf16.mxu1 %v4146_v1 }
 0x69c   :  { %3574 = vmatpush3.bf16.msra.mxu1 %v3817_v16 }
 0x69d   :  { %3575 = vmatprep.subr.bf16.mxu1 %v4146_v1 }
 0x6c0   :  { %v913_v14 = vpop.xlane.xlu1 %912 }
 0x6c1   :  { %v922_v20 = vadd.f32 %v913_v14, %v892_v13 }
 0x6c3   :  { %932 = vrot.lane.b32.xlu0 %v922_v20, %s4149_s7 }
 0x6c4   :  { %v915_v21 = vpop.xlane.xlu0 %914 }
 0x6c5   :  { %v923_v23 = vadd.f32 %v915_v21, %v892_v13 }
 0x6c7   :  { %934 = vrot.lane.b32.xlu1 %v923_v23, %s4149_s7 }
 0x6c8   :  { %v917_v8 = vpop.xlane.xlu0 %916 }
 0x6c9   :  { %v924_v24 = vadd.f32 %v917_v8, %v892_v13 }
 0x6cb   :  { %936 = vrot.lane.b32.xlu1 %v924_v24, %s4149_s7 }
 0x6cc   :  { %v919_v25 = vpop.xlane.xlu0 %918 }
 0x6cd   :  { %v925_v11 = vadd.f32 %v919_v25, %v892_v13 }
 0x6cf   :  { %938 = vrot.lane.b32.xlu0 %v925_v11, %s4149_s7 }
 0x6d0   :  { %v880_v26 = vpop.xlane.xlu0 %879 }
 0x6d1   :  { %v893_v27 = vadd.f32 %v892_v13, %v880_v26 }
 0x6d3   :  { %3908 = vtanh.f32 %v893_v27 }
 0x6d4   :  { %v882_v7 = vpop.xlane.xlu0 %881 }
 0x6d5   :  { %v894_v28 = vadd.f32 %v892_v13, %v882_v7 }
 0x6d7   :  { %3910 = vtanh.f32 %v894_v28  ;;  %v3818_v28 = vld [vmem:[#allocation5 + $0xc8] sm:$0xff]  }
 0x6d8   :  { %v884_v31 = vpop.xlane.xlu0 %883  ;;  %3576 = vmatpush3.bf16.msra.mxu1 %v3818_v28 }
 0x6d9   :  { %v895_v32 = vadd.f32 %v892_v13, %v884_v31  ;;  %3577 = vmatprep.subr.bf16.mxu1 %v4146_v1 }
 0x6db   :  { %3912 = vtanh.f32 %v895_v32 }
 0x6dc   :  { %v886_v34 = vpop.xlane.xlu0 %885 }
 0x6dd   :  { %v896_v36 = vadd.f32 %v892_v13, %v886_v34 }
 0x6df   :  { %3914 = vtanh.f32 %v896_v36  ;;  %v3819_v36 = vld [vmem:[#allocation5 + $0xc0] sm:$0xff]  }
 0x6e0   :  { %v3909_v37 = vpop.eup %3908  ;;  %3578 = vmatpush3.bf16.msra.mxu1 %v3819_v36 }
 0x6e1   :  { %v4456_v38 = vadd.f32 %v3909_v37, %v662_v2  ;;  %v952_v62 = vsub.f32 0.0, %v3909_v37  ;;  %3619 = vmatprep.subr.bf16.mxu1 %v4146_v1 }
 0x6e3   :  { %v957_v29 = vmul.f32 1.442695, %v952_v62 }
 0x6e4   :  { %v3911_v3 = vpop.eup %3910 }
 0x6e5   :  { %v4460_v46 = vadd.f32 %v3911_v3, %v663_v43 }
 0x6e8   :  { %v3913_v5 = vpop.eup %3912 }
 0x6e9   :  { %v4464_v42 = vadd.f32 %v3913_v5, %v664_v48  ;;  %v954_v20 = vsub.f32 0.0, %v3913_v5 }
 0x6eb   :  { %v961_v21 = vmul.f32 1.442695, %v954_v20 }
 0x6ec   :  { %v3915_v6 = vpop.eup %3914 }
 0x6ed   :  { %v4468_v4 = vadd.f32 %v3915_v6, %v665_v54  ;;  %v955_v23 = vsub.f32 0.0, %v3915_v6 }
 0x6ef   :  { %v963_v8 = vmul.f32 1.442695, %v955_v23 }
 0x713   :  { %v888_v10 = vpop.xlane.xlu1 %887  ;;  %v921_v44 = vpop.xlane.xlu0 %920 }
 0x714   :  { %v897_v60 = vadd.f32 %v892_v13, %v888_v10  ;;  %v926_v15 = vadd.f32 %v921_v44, %v892_v13  ;;  %v953_v13 = vsub.f32 0.0, %v3911_v3 }
 0x716   :  { %3916 = vtanh.f32 %v897_v60  ;;  %940 = vrot.lane.b32.xlu1 %v926_v15, %s4149_s7  ;;  %v959_v14 = vmul.f32 1.442695, %v953_v13 }
 0x717   :  { %3918 = vpow2.f32 %v957_v29 }
 0x718   :  { %3920 = vpow2.f32 %v959_v14 }
 0x719   :  { %3922 = vpow2.f32 %v961_v21 }
 0x71a   :  { %3924 = vpow2.f32 %v963_v8 }
 0x723   :  { %v3917_v58 = vpop.eup %3916 }
 0x724   :  { %v4478_v9 = vadd.f32 %v3917_v58, %v666_v49  ;;  %v3919_v11 = vpop.eup %3918 }
 0x725   :  { %v3921_v7 = vpop.eup %3920 }
 0x726   :  { %v3923_v34 = vpop.eup %3922 }
 0x727   :  { %v3925_v43 = vpop.eup %3924 }
 0x735   :  { %v933_v24 = vpop.permute.xlu0 %932 }
 0x736   :  { %v947_v25 = vsub.f32 %v4305_v30, %v933_v24 }
 0x738   :  { %v4481_v61 = vmul.f32 %v3919_v11, %v947_v25 }
 0x739   :  { %v935_v26 = vpop.permute.xlu1 %934 }
 0x73a   :  { %v948_v27 = vsub.f32 %v4310_v35, %v935_v26  ;;  %981 = vperm.xlu0 %3776, %v4481_v61  }
 0x73c   :  { %v4486_v31 = vmul.f32 %v3921_v7, %v948_v27 }
 0x73d   :  { %v937_v32 = vpop.permute.xlu1 %936 }
 0x73e   :  { %v949_v30 = vsub.f32 %v4315_v39, %v937_v32  ;;  %986 = vperm.xlu1 %3779, %v4486_v31   ;;  %v956_v39 = vsub.f32 0.0, %v3917_v58 }
 0x740   :  { %v4491_v2 = vmul.f32 %v3923_v34, %v949_v30  ;;  %v965_v48 = vmul.f32 1.442695, %v956_v39 }
 0x741   :  { %v939_v35 = vpop.permute.xlu0 %938 }
 0x742   :  { %v950_v37 = vsub.f32 %v4320_v45, %v939_v35  ;;  %991 = vperm.xlu0 %3776, %v4491_v2   ;;  %3926 = vpow2.f32 %v965_v48  ;;  %v4504_v45 = vld [vmem:[#allocation2 + $0x18] sm:$0xff] }
 0x743   :  { %v1007_v57 = vrot.slane %v4504_v45, %v4232_v17  ;;  %v1016_v10 = vrot.slane %v4504_v45, %v4237_v19  ;;  %v1060_v36 = vrot.slane %v4504_v45, %v4250_v50  ;;  %v1183_v39 = vrot.slane %v4504_v45, %v4260_v12 }
 0x744   :  { %v4496_v3 = vmul.f32 %v3925_v43, %v950_v37 }
 0x746   :  { %996 = vperm.xlu1 %3779, %v4496_v3  }
 0x74a   :  { %3780 = vset.pattern.permute.xlu1 %v4145_v0 }
 0x74f   :  { %v3927_v6 = vpop.eup %3926 }
 0x788   :  { %v941_v5 = vpop.permute.xlu1 %940 }
 0x789   :  { %v951_v54 = vsub.f32 %v4328_v51, %v941_v5 }
 0x78b   :  { %v4501_v55 = vmul.f32 %v3927_v6, %v951_v54 }
 0x78d   :  { %1001 = vperm.xlu0 %3776, %v4501_v55  }
 0x7b5   :  { %v982_v44 = vpop.permute.xlu0 %981 }
 0x7b6   :  { %v1008_v59 = vmul.f32 %v1007_v57, %v982_v44 }
 0x7b8   :  { %v1017_v60 = vadd.f32 %v1016_v10, %v1008_v59 }
 0x7b9   :  { %v987_v15 = vpop.permute.xlu1 %986 }
 0x7ba   :  { %v1009_v22 = vmul.f32 %v1007_v57, %v987_v15  ;;  %v1027_v47 = vmul.f32 0.01, %v1017_v60  ;;  %vm1022_vm1 = vcmp.gt.f32.partialorder %v1017_v60, 0.0 }
 0x7bc   :  { %v1018_v51 = vadd.f32 %v1016_v10, %v1009_v22  ;;  %v1032_v29 = vsel %vm1022_vm1, %v1017_v60, %v1027_v47 }
 0x7bd   :  { %v992_v49 = vpop.permute.xlu0 %991 }
 0x7be   :  { %vm1023_vm2 = vcmp.gt.f32.partialorder %v1018_v51, 0.0  ;;  %v1028_v62 = vmul.f32 0.01, %v1018_v51  ;;  %v1010_v58 = vmul.f32 %v1007_v57, %v992_v49 }
 0x7c0   :  { %v1033_v13 = vsel %vm1023_vm2, %v1018_v51, %v1028_v62  ;;  %v1019_v14 = vadd.f32 %v1016_v10, %v1010_v58 }
 0x7c1   :  { %v1037_v20 = vpack.c.bf16 %v1033_v13, %v1032_v29  ;;  %v997_v21 = vpop.permute.xlu1 %996 }
 0x7c2   :  { %v1011_v23 = vmul.f32 %v1007_v57, %v997_v21  ;;  %v1029_v8 = vmul.f32 0.01, %v1019_v14  ;;  %vm1024_vm3 = vcmp.gt.f32.partialorder %v1019_v14, 0.0 }
 0x7c3   :  { %3580 = vmatmul.mubr.bf16.vlgmr.msra.gmra.mxu1 %v1037_v20 }
 0x7c4   :  { %v1020_v24 = vadd.f32 %v1016_v10, %v1011_v23  ;;  %3583 = vmatprep.mubr.msk.bf16.mxu1 %vm4147_vm0, %v4146_v1  ;;  %v1034_v11 = vsel %vm1024_vm3, %v1019_v14, %v1029_v8  ;;  %v1216_v23 = vrot.slane %v4504_v45, %v4255_v52 }
 0x7c6   :  { %v1030_v25 = vmul.f32 0.01, %v1020_v24  ;;  %vm1025_vm4 = vcmp.gt.f32.partialorder %v1020_v24, 0.0 }
 0x7c8   :  { %v1035_v16 = vsel %vm1025_vm4, %v1020_v24, %v1030_v25 }
 0x7c9   :  { %v1038_v26 = vpack.c.bf16 %v1035_v16, %v1034_v11 }
 0x7cb   :  { %3584 = vmatmul.mubr.bf16.gmra.mxu1 %v1038_v26 }
 0x7cc   :  { %3587 = vmatprep.mubr.msk.bf16.mxu1 %vm4147_vm0, %v4146_v1 }
 0x808   :  { %v1002_v27 = vpop.permute.xlu0 %1001 }
 0x809   :  { %v1012_v7 = vmul.f32 %v1007_v57, %v1002_v27 }
 0x80b   :  { %v1021_v28 = vadd.f32 %v1016_v10, %v1012_v7 }
 0x80d   :  { %v1031_v32 = vmul.f32 0.01, %v1021_v28  ;;  %vm1026_vm5 = vcmp.gt.f32.partialorder %v1021_v28, 0.0 }
 0x80f   :  { %v1036_v30 = vsel %vm1026_vm5, %v1021_v28, %v1031_v32 }
 0x810   :  { %v1039_v34 = vpack.c.bf16 %v1036_v30, %v1036_v30 }
 0x812   :  { %3588 = vmatmul.mubr.bf16.gmra.mxu1 %v1039_v34 }
 0x813   :  { %3635 = vmatprep.mubr.msk.bf16.mxu1 %vm4147_vm0, %v4146_v1 }
 0x883   :  { %v1143_v35 = vpop.f32.mrf.mxu1 }
 0x884   :  { %v1144_v37 = vadd.f32 %v1143_v35, %v1060_v36  ;;  %v4524_v35 = vrot.slane %v4504_v45, %v4265_v40 }
 0x885   :  { %v3581_v43 = vpop.f32.mrf.mxu1 }
 0x886   :  { %v1170_v48 = vmul.f32 0.01, %v1144_v37  ;;  %vm1165_vm6 = vcmp.gt.f32.partialorder %v1144_v37, 0.0 }
 0x887   :  { %v1146_v5 = vpop.f32.mrf.mxu1 }
 0x888   :  { %v1147_v54 = vadd.f32 %v1146_v5, %v1060_v36  ;;  %v1175_v6 = vsel %vm1165_vm6, %v1144_v37, %v1170_v48 }
 0x889   :  { %v3582_v57 = vpop.f32.mrf.mxu1  ;;  %v1184_v10 = vmul.f32 %v1183_v39, %v1175_v6  ;;  %v1217_v8 = vmul.f32 %v1216_v23, %v1175_v6 }
 0x88a   :  { %v1171_v44 = vmul.f32 0.01, %v1147_v54  ;;  %vm1166_vm7 = vcmp.gt.f32.partialorder %v1147_v54, 0.0 }
 0x88b   :  { %1189 = vadd.xlane.f32.xlu1 %v1184_v10  ;;  %v1151_v59 = vpop.f32.mrf.mxu1 }
 0x88c   :  { %v1152_v60 = vadd.f32 %v1151_v59, %v1060_v36  ;;  %v1176_v15 = vsel %vm1166_vm7, %v1147_v54, %v1171_v44 }
 0x88d   :  { %v3585_v22 = vpop.f32.mrf.mxu1  ;;  %v1185_v47 = vmul.f32 %v1183_v39, %v1176_v15  ;;  %v1218_v30 = vmul.f32 %v1216_v23, %v1176_v15 }
 0x88e   :  { %v1172_v51 = vmul.f32 0.01, %v1152_v60  ;;  %vm1167_vm8 = vcmp.gt.f32.partialorder %v1152_v60, 0.0 }
 0x88f   :  { %1191 = vadd.xlane.f32.xlu0 %v1185_v47  ;;  %v1154_v49 = vpop.f32.mrf.mxu1 }
 0x890   :  { %v1155_v62 = vadd.f32 %v1154_v49, %v1060_v36  ;;  %v1177_v58 = vsel %vm1167_vm8, %v1152_v60, %v1172_v51 }
 0x891   :  { %v3586_v29 = vpop.f32.mrf.mxu1  ;;  %v1186_v13 = vmul.f32 %v1183_v39, %v1177_v58  ;;  %v1219_v24 = vmul.f32 %v1216_v23, %v1177_v58 }
 0x892   :  { %v1173_v14 = vmul.f32 0.01, %v1155_v62  ;;  %vm1168_vm9 = vcmp.gt.f32.partialorder %v1155_v62, 0.0 }
 0x893   :  { %1193 = vadd.xlane.f32.xlu0 %v1186_v13 }
 0x894   :  { %v1178_v20 = vsel %vm1168_vm9, %v1155_v62, %v1173_v14 }
 0x895   :  { %v1187_v21 = vmul.f32 %v1183_v39, %v1178_v20  ;;  %v1220_v34 = vmul.f32 %v1216_v23, %v1178_v20 }
 0x897   :  { %1195 = vadd.xlane.f32.xlu1 %v1187_v21 }
 0x89b   :  { %1222 = vadd.xlane.f32.xlu1 %v1217_v8 }
 0x89f   :  { %1226 = vadd.xlane.f32.xlu1 %v1219_v24 }
 0x8d2   :  { %v1159_v25 = vpop.f32.mrf.mxu1 }
 0x8d3   :  { %v1160_v11 = vadd.f32 %v1159_v25, %v1060_v36 }
 0x8d4   :  { %v3589_v16 = vpop.f32.mrf.mxu1 }
 0x8d5   :  { %v1174_v26 = vmul.f32 0.01, %v1160_v11  ;;  %vm1169_vm10 = vcmp.gt.f32.partialorder %v1160_v11, 0.0 }
 0x8d6   :  { %v1162_v27 = vpop.f32.mrf.mxu1 }
 0x8d7   :  { %v1179_v7 = vsel %vm1169_vm10, %v1160_v11, %v1174_v26  ;;  %v3820_v26 = vld [vmem:[#allocation5 + $0x138] sm:$0xff]   ;;  %v3821_v27 = vld [vmem:[#allocation5 + $0x130] sm:$0xff]  }
 0x8d8   :  { %v3590_v28 = vpop.f32.mrf.mxu1  ;;  %v1188_v32 = vmul.f32 %v1183_v39, %v1179_v7  ;;  %v1221_v21 = vmul.f32 %v1216_v23, %v1179_v7  ;;  %3592 = vmatpush3.bf16.msra.mxu0 %v3820_v26  ;;  %v3823_v7 = vld [vmem:[#allocation5 + $0x120] sm:$0xff]  }
 0x8d9   :  { %3593 = vmatprep.subr.bf16.mxu0 %v4146_v1  ;;  %v3822_v28 = vld [vmem:[#allocation5 + $0x128] sm:$0xff]  }
 0x8da   :  { %1197 = vadd.xlane.f32.xlu0 %v1188_v32 }
 0x8dc   :  { %3594 = vmatpush3.bf16.msra.mxu0 %v3821_v27 }
 0x8dd   :  { %3595 = vmatprep.subr.bf16.mxu0 %v4146_v1 }
 0x8de   :  { %1224 = vadd.xlane.f32.xlu0 %v1218_v30 }
 0x8e0   :  { %3596 = vmatpush3.bf16.msra.mxu0 %v3822_v28 }
 0x8e1   :  { %3597 = vmatprep.subr.bf16.mxu0 %v4146_v1 }
 0x8e2   :  { %1228 = vadd.xlane.f32.xlu0 %v1220_v34 }
 0x8e4   :  { %3598 = vmatpush3.bf16.msra.mxu0 %v3823_v7 }
 0x8e5   :  { %3599 = vmatprep.subr.bf16.mxu0 %v4146_v1 }
 0x914   :  { %v1190_v37 = vpop.xlane.xlu1 %1189 }
 0x915   :  { %v1203_v43 = vadd.f32 %v4524_v35, %v1190_v37 }
 0x917   :  { %3928 = vtanh.f32 %v1203_v43 }
 0x918   :  { %v1192_v36 = vpop.xlane.xlu0 %1191 }
 0x919   :  { %v1204_v48 = vadd.f32 %v4524_v35, %v1192_v36 }
 0x91b   :  { %3930 = vtanh.f32 %v1204_v48 }
 0x91c   :  { %v1194_v5 = vpop.xlane.xlu0 %1193 }
 0x91d   :  { %v1205_v39 = vadd.f32 %v4524_v35, %v1194_v5 }
 0x91f   :  { %3932 = vtanh.f32 %v1205_v39  ;;  %v3825_v39 = vld [vmem:[#allocation5 + $0x110] sm:$0xff]  }
 0x920   :  { %v1196_v54 = vpop.xlane.xlu1 %1195 }
 0x921   :  { %v1206_v6 = vadd.f32 %v4524_v35, %v1196_v54 }
 0x923   :  { %3934 = vtanh.f32 %v1206_v6 }
 0x924   :  { %v3929_v57 = vpop.eup %3928  ;;  %v1223_v32 = vpop.xlane.xlu1 %1222 }
 0x925   :  { %v1242_v10 = vsub.f32 0.0, %v3929_v57  ;;  %v4531_v45 = vadd.f32 %v3929_v57, %v4456_v38  ;;  %v1232_v34 = vadd.f32 %v1223_v32, %v4524_v35 }
 0x927   :  { %v1247_v44 = vmul.f32 1.442695, %v1242_v10  ;;  %v1237_v36 = vsub.f32 %v4396_v33, %v1232_v34 }
 0x928   :  { %v3931_v59 = vpop.eup %3930  ;;  %v1227_v37 = vpop.xlane.xlu1 %1226 }
 0x929   :  { %3936 = vpow2.f32 %v1247_v44  ;;  %v1243_v60 = vsub.f32 0.0, %v3931_v59  ;;  %v4534_v15 = vadd.f32 %v3931_v59, %v4460_v46  ;;  %v1234_v6 = vadd.f32 %v1227_v37, %v4524_v35  ;;  %v3826_v44 = vld [vmem:[#allocation5 + $0x108] sm:$0xff]  }
 0x92b   :  { %v1249_v22 = vmul.f32 1.442695, %v1243_v60  ;;  %v1239_v60 = vsub.f32 %v4412_v18, %v1234_v6 }
 0x92c   :  { %v3933_v47 = vpop.eup %3932 }
 0x92d   :  { %3938 = vpow2.f32 %v1249_v22  ;;  %v1244_v51 = vsub.f32 0.0, %v3933_v47  ;;  %v4537_v49 = vadd.f32 %v3933_v47, %v4464_v42  ;;  %v3827_v47 = vld [vmem:[#allocation5 + $0x100] sm:$0xff]  }
 0x92f   :  { %v1251_v62 = vmul.f32 1.442695, %v1244_v51 }
 0x930   :  { %v3935_v58 = vpop.eup %3934 }
 0x931   :  { %3940 = vpow2.f32 %v1251_v62  ;;  %v1245_v29 = vsub.f32 0.0, %v3935_v58  ;;  %v4540_v38 = vadd.f32 %v3935_v58, %v4468_v4 }
 0x933   :  { %v1253_v13 = vmul.f32 1.442695, %v1245_v29 }
 0x935   :  { %3942 = vpow2.f32 %v1253_v13 }
 0x936   :  { %v3937_v14 = vpop.eup %3936 }
 0x937   :  { %1262 = vrot.lane.b32.xlu1 %v3937_v14, %s4150_s8 }
 0x93a   :  { %v3939_v46 = vpop.eup %3938 }
 0x93b   :  { %1264 = vrot.lane.b32.xlu0 %v3939_v46, %s4150_s8 }
 0x93e   :  { %v3941_v20 = vpop.eup %3940 }
 0x93f   :  { %1266 = vrot.lane.b32.xlu1 %v3941_v20, %s4150_s8 }
 0x942   :  { %v3943_v42 = vpop.eup %3942 }
 0x943   :  { %1268 = vrot.lane.b32.xlu1 %v3943_v42, %s4150_s8 }
 0x95a   :  { %1230 = vadd.xlane.f32.xlu0 %v1221_v21 }
 0x963   :  { %v1198_v8 = vpop.xlane.xlu0 %1197 }
 0x964   :  { %v1207_v4 = vadd.f32 %v4524_v35, %v1198_v8 }
 0x966   :  { %3944 = vtanh.f32 %v1207_v4 }
 0x967   :  { %v1225_v30 = vpop.xlane.xlu0 %1224 }
 0x968   :  { %v1233_v43 = vadd.f32 %v1225_v30, %v4524_v35 }
 0x96a   :  { %v1238_v57 = vsub.f32 %v4404_v53, %v1233_v43 }
 0x96b   :  { %v1229_v48 = vpop.xlane.xlu0 %1228 }
 0x96c   :  { %v1235_v33 = vadd.f32 %v1229_v48, %v4524_v35 }
 0x96e   :  { %v1240_v53 = vsub.f32 %v4419_v56, %v1235_v33  ;;  %v4585_v56 = vld [vmem:[#allocation2 + $0x20] sm:$0xff] }
 0x96f   :  { %v1317_v20 = vrot.slane %v4585_v56, %v4232_v17  ;;  %v1326_v42 = vrot.slane %v4585_v56, %v4237_v19 }
 0x973   :  { %v3945_v24 = vpop.eup %3944 }
 0x974   :  { %v1246_v25 = vsub.f32 0.0, %v3945_v24  ;;  %v4548_v11 = vadd.f32 %v3945_v24, %v4478_v9  ;;  %v3824_v9 = vld [vmem:[#allocation5 + $0x118] sm:$0xff]  }
 0x975   :  { %3600 = vmatpush3.bf16.msra.mxu0 %v3824_v9 }
 0x976   :  { %v1255_v16 = vmul.f32 1.442695, %v1246_v25  ;;  %3601 = vmatprep.subr.bf16.mxu0 %v4146_v1 }
 0x978   :  { %3946 = vpow2.f32 %v1255_v16 }
 0x979   :  { %3602 = vmatpush3.bf16.msra.mxu0 %v3825_v39 }
 0x97a   :  { %3603 = vmatprep.subr.bf16.mxu0 %v4146_v1 }
 0x97d   :  { %3604 = vmatpush3.bf16.msra.mxu0 %v3826_v44 }
 0x97e   :  { %3605 = vmatprep.subr.bf16.mxu0 %v4146_v1 }
 0x981   :  { %3606 = vmatpush3.bf16.msra.mxu0 %v3827_v47 }
 0x982   :  { %3647 = vmatprep.subr.bf16.mxu0 %v4146_v1 }
 0x985   :  { %v3947_v23 = vpop.eup %3946 }
 0x986   :  { %1270 = vrot.lane.b32.xlu1 %v3947_v23, %s4150_s8 }
 0x9a9   :  { %v1263_v5 = vpop.permute.xlu1 %1262 }
 0x9aa   :  { %v4559_v54 = vmul.f32 %v1263_v5, %v1237_v36 }
 0x9ac   :  { %1291 = vperm.xlu1 %3780, %v4559_v54  }
 0x9ad   :  { %v1265_v10 = vpop.permute.xlu0 %1264 }
 0x9ae   :  { %v4565_v59 = vmul.f32 %v1265_v10, %v1238_v57 }
 0x9b0   :  { %1296 = vperm.xlu1 %3780, %v4565_v59  }
 0x9b1   :  { %v1267_v22 = vpop.permute.xlu1 %1266 }
 0x9b2   :  { %v4571_v51 = vmul.f32 %v1267_v22, %v1239_v60  ;;  %v1370_v60 = vrot.slane %v4585_v56, %v4250_v50 }
 0x9b4   :  { %1301 = vperm.xlu1 %3780, %v4571_v51  }
 0x9b5   :  { %v1269_v62 = vpop.permute.xlu1 %1268 }
 0x9b6   :  { %v4576_v58 = vmul.f32 %v1269_v62, %v1240_v53  ;;  %v1526_v62 = vrot.slane %v4585_v56, %v4255_v52 }
 0x9b8   :  { %1306 = vperm.xlu1 %3780, %v4576_v58  }
 0x9e3   :  { %v1231_v29 = vpop.xlane.xlu0 %1230 }
 0x9e4   :  { %v1236_v18 = vadd.f32 %v1231_v29, %v4524_v35 }
 0x9e6   :  { %v1241_v13 = vsub.f32 %v4426_v63, %v1236_v18 }
 0x9f8   :  { %v1271_v14 = vpop.permute.xlu1 %1270 }
 0x9f9   :  { %v4581_v46 = vmul.f32 %v1271_v14, %v1241_v13 }
 0x9fb   :  { %1311 = vperm.xlu1 %3780, %v4581_v46  }
 0x9ff   :  { %3781 = vset.pattern.permute.xlu1 %v4148_v41 }
 0xa27   :  { %v1292_v21 = vpop.permute.xlu1 %1291 }
 0xa28   :  { %v1318_v8 = vmul.f32 %v1317_v20, %v1292_v21 }
 0xa2a   :  { %v1327_v35 = vadd.f32 %v1326_v42, %v1318_v8 }
 0xa2b   :  { %v1297_v4 = vpop.permute.xlu1 %1296 }
 0xa2c   :  { %v1319_v63 = vmul.f32 %v1317_v20, %v1297_v4  ;;  %v1337_v24 = vmul.f32 0.01, %v1327_v35  ;;  %vm1332_vm11 = vcmp.gt.f32.partialorder %v1327_v35, 0.0 }
 0xa2e   :  { %v1328_v25 = vadd.f32 %v1326_v42, %v1319_v63  ;;  %v1342_v28 = vsel %vm1332_vm11, %v1327_v35, %v1337_v24 }
 0xa2f   :  { %v1302_v16 = vpop.permute.xlu1 %1301 }
 0xa30   :  { %vm1333_vm12 = vcmp.gt.f32.partialorder %v1328_v25, 0.0  ;;  %v1338_v26 = vmul.f32 0.01, %v1328_v25  ;;  %v1320_v27 = vmul.f32 %v1317_v20, %v1302_v16 }
 0xa32   :  { %v1343_v23 = vsel %vm1333_vm12, %v1328_v25, %v1338_v26  ;;  %v1329_v7 = vadd.f32 %v1326_v42, %v1320_v27 }
 0xa33   :  { %v1347_v9 = vpack.c.bf16 %v1343_v23, %v1342_v28  ;;  %v1307_v32 = vpop.permute.xlu1 %1306 }
 0xa34   :  { %v1321_v30 = vmul.f32 %v1317_v20, %v1307_v32  ;;  %v1339_v34 = vmul.f32 0.01, %v1329_v7  ;;  %vm1334_vm13 = vcmp.gt.f32.partialorder %v1329_v7, 0.0 }
 0xa35   :  { %3608 = vmatmul.mubr.bf16.vlgmr.msra.gmra.mxu0 %v1347_v9  ;;  %v1493_v9 = vrot.slane %v4585_v56, %v4260_v12 }
 0xa36   :  { %v1330_v37 = vadd.f32 %v1326_v42, %v1321_v30  ;;  %3611 = vmatprep.mubr.msk.bf16.mxu0 %vm4147_vm0, %v4146_v1  ;;  %v1344_v36 = vsel %vm1334_vm13, %v1329_v7, %v1339_v34 }
 0xa38   :  { %v1340_v43 = vmul.f32 0.01, %v1330_v37  ;;  %vm1335_vm14 = vcmp.gt.f32.partialorder %v1330_v37, 0.0 }
 0xa3a   :  { %v1345_v48 = vsel %vm1335_vm14, %v1330_v37, %v1340_v43 }
 0xa3b   :  { %v1348_v5 = vpack.c.bf16 %v1345_v48, %v1344_v36 }
 0xa3d   :  { %3612 = vmatmul.mubr.bf16.gmra.mxu0 %v1348_v5 }
 0xa3e   :  { %3615 = vmatprep.mubr.msk.bf16.mxu0 %vm4147_vm0, %v4146_v1 }
 0xa76   :  { %v1312_v39 = vpop.permute.xlu1 %1311 }
 0xa77   :  { %v1322_v6 = vmul.f32 %v1317_v20, %v1312_v39 }
 0xa79   :  { %v1331_v57 = vadd.f32 %v1326_v42, %v1322_v6 }
 0xa7b   :  { %v1341_v10 = vmul.f32 0.01, %v1331_v57  ;;  %vm1336_vm15 = vcmp.gt.f32.partialorder %v1331_v57, 0.0 }
 0xa7d   :  { %v1346_v44 = vsel %vm1336_vm15, %v1331_v57, %v1341_v10 }
 0xa7e   :  { %v1349_v33 = vpack.c.bf16 %v1346_v44, %v1346_v44 }
 0xa80   :  { %3616 = vmatmul.mubr.bf16.gmra.mxu0 %v1349_v33 }
 0xa81   :  { %3663 = vmatprep.mubr.msk.bf16.mxu0 %vm4147_vm0, %v4146_v1 }
 0xaf5   :  { %v1453_v22 = vpop.f32.mrf.mxu0 }
 0xaf6   :  { %v1454_v47 = vadd.f32 %v1453_v22, %v1370_v60 }
 0xaf7   :  { %v3609_v53 = vpop.f32.mrf.mxu0 }
 0xaf8   :  { %v1480_v29 = vmul.f32 0.01, %v1454_v47  ;;  %vm1475_vm1 = vcmp.gt.f32.partialorder %v1454_v47, 0.0 }
 0xaf9   :  { %v1456_v18 = vpop.f32.mrf.mxu0 }
 0xafa   :  { %v1457_v13 = vadd.f32 %v1456_v18, %v1370_v60  ;;  %v1485_v14 = vsel %vm1475_vm1, %v1454_v47, %v1480_v29  ;;  %v1512_v47 = vrot.slane %v4585_v56, %v4265_v40 }
 0xafb   :  { %v3610_v20 = vpop.f32.mrf.mxu0  ;;  %v1527_v42 = vmul.f32 %v1526_v62, %v1485_v14  ;;  %v1494_v37 = vmul.f32 %v1493_v9, %v1485_v14 }
 0xafc   :  { %v1481_v21 = vmul.f32 0.01, %v1457_v13  ;;  %vm1476_vm2 = vcmp.gt.f32.partialorder %v1457_v13, 0.0 }
 0xafd   :  { %v1461_v8 = vpop.f32.mrf.mxu0  ;;  %1532 = vadd.xlane.f32.xlu1 %v1527_v42 }
 0xafe   :  { %v1462_v35 = vadd.f32 %v1461_v8, %v1370_v60  ;;  %v1486_v4 = vsel %vm1476_vm2, %v1457_v13, %v1481_v21 }
 0xaff   :  { %v3613_v63 = vpop.f32.mrf.mxu0  ;;  %v1528_v24 = vmul.f32 %v1526_v62, %v1486_v4  ;;  %v1495_v43 = vmul.f32 %v1493_v9, %v1486_v4 }
 0xb00   :  { %v1482_v25 = vmul.f32 0.01, %v1462_v35  ;;  %vm1477_vm3 = vcmp.gt.f32.partialorder %v1462_v35, 0.0 }
 0xb01   :  { %1534 = vadd.xlane.f32.xlu0 %v1528_v24  ;;  %v1464_v16 = vpop.f32.mrf.mxu0 }
 0xb02   :  { %v1465_v26 = vadd.f32 %v1464_v16, %v1370_v60  ;;  %v1487_v27 = vsel %vm1477_vm3, %v1462_v35, %v1482_v25 }
 0xb03   :  { %v3614_v28 = vpop.f32.mrf.mxu0  ;;  %v1529_v23 = vmul.f32 %v1526_v62, %v1487_v27  ;;  %v1496_v36 = vmul.f32 %v1493_v9, %v1487_v27 }
 0xb04   :  { %v1483_v7 = vmul.f32 0.01, %v1465_v26  ;;  %vm1478_vm4 = vcmp.gt.f32.partialorder %v1465_v26, 0.0  ;;  %v3828_v28 = vld [vmem:[#allocation5 + $0x178] sm:$0xff]  }
 0xb05   :  { %1536 = vadd.xlane.f32.xlu0 %v1529_v23  ;;  %3620 = vmatpush3.bf16.msra.mxu1 %v3828_v28  ;;  %v3829_v23 = vld [vmem:[#allocation5 + $0x170] sm:$0xff]  }
 0xb06   :  { %v1488_v32 = vsel %vm1478_vm4, %v1465_v26, %v1483_v7  ;;  %3621 = vmatprep.subr.bf16.mxu1 %v4146_v1 }
 0xb07   :  { %v1530_v30 = vmul.f32 %v1526_v62, %v1488_v32  ;;  %v1497_v34 = vmul.f32 %v1493_v9, %v1488_v32  ;;  %v3830_v32 = vld [vmem:[#allocation5 + $0x168] sm:$0xff]  }
 0xb09   :  { %1538 = vadd.xlane.f32.xlu0 %v1530_v30  ;;  %3622 = vmatpush3.bf16.msra.mxu1 %v3829_v23 }
 0xb0a   :  { %3623 = vmatprep.subr.bf16.mxu1 %v4146_v1 }
 0xb0d   :  { %1499 = vadd.xlane.f32.xlu0 %v1494_v37  ;;  %3624 = vmatpush3.bf16.msra.mxu1 %v3830_v32  ;;  %v3832_v37 = vld [vmem:[#allocation5 + $0x158] sm:$0xff]  }
 0xb0e   :  { %3625 = vmatprep.subr.bf16.mxu1 %v4146_v1 }
 0xb11   :  { %1501 = vadd.xlane.f32.xlu0 %v1495_v43 }
 0xb15   :  { %1503 = vadd.xlane.f32.xlu0 %v1496_v36 }
 0xb40   :  { %v1469_v48 = vpop.f32.mrf.mxu0 }
 0xb41   :  { %v1470_v5 = vadd.f32 %v1469_v48, %v1370_v60 }
 0xb42   :  { %v3617_v39 = vpop.f32.mrf.mxu0 }
 0xb43   :  { %vm1479_vm5 = vcmp.gt.f32.partialorder %v1470_v5, 0.0  ;;  %v1484_v6 = vmul.f32 0.01, %v1470_v5 }
 0xb44   :  { %v1472_v57 = vpop.f32.mrf.mxu0 }
 0xb45   :  { %v1489_v10 = vsel %vm1479_vm5, %v1470_v5, %v1484_v6 }
 0xb46   :  { %v3618_v44 = vpop.f32.mrf.mxu0  ;;  %v1531_v33 = vmul.f32 %v1526_v62, %v1489_v10  ;;  %v1498_v22 = vmul.f32 %v1493_v9, %v1489_v10 }
 0xb48   :  { %1540 = vadd.xlane.f32.xlu0 %v1531_v33  ;;  %1507 = vadd.xlane.f32.xlu1 %v1498_v22 }
 0xb4c   :  { %1505 = vadd.xlane.f32.xlu0 %v1497_v34 }
 0xb86   :  { %v1533_v53 = vpop.xlane.xlu1 %1532 }
 0xb87   :  { %v1542_v29 = vadd.f32 %v1533_v53, %v1512_v47 }
 0xb89   :  { %1552 = vrot.lane.b32.xlu0 %v1542_v29, %s4149_s7 }
 0xb8a   :  { %v1535_v18 = vpop.xlane.xlu0 %1534 }
 0xb8b   :  { %v1543_v60 = vadd.f32 %v1535_v18, %v1512_v47  ;;  %v3833_v18 = vld [vmem:[#allocation5 + $0x150] sm:$0xff]  }
 0xb8d   :  { %1554 = vrot.lane.b32.xlu1 %v1543_v60, %s4149_s7 }
 0xb8e   :  { %v1537_v13 = vpop.xlane.xlu0 %1536 }
 0xb8f   :  { %v1544_v14 = vadd.f32 %v1537_v13, %v1512_v47 }
 0xb91   :  { %1556 = vrot.lane.b32.xlu1 %v1544_v14, %s4149_s7 }
 0xb92   :  { %v1539_v62 = vpop.xlane.xlu0 %1538 }
 0xb93   :  { %v1545_v20 = vadd.f32 %v1539_v62, %v1512_v47  ;;  %v3834_v62 = vld [vmem:[#allocation5 + $0x148] sm:$0xff]  }
 0xb95   :  { %1558 = vrot.lane.b32.xlu0 %v1545_v20, %s4149_s7 }
 0xb96   :  { %v1500_v42 = vpop.xlane.xlu0 %1499 }
 0xb97   :  { %v1513_v21 = vadd.f32 %v1512_v47, %v1500_v42 }
 0xb99   :  { %3948 = vtanh.f32 %v1513_v21 }
 0xb9a   :  { %v1502_v56 = vpop.xlane.xlu0 %1501 }
 0xb9b   :  { %v1514_v8 = vadd.f32 %v1512_v47, %v1502_v56  ;;  %v3835_v56 = vld [vmem:[#allocation5 + $0x140] sm:$0xff]  }
 0xb9d   :  { %3950 = vtanh.f32 %v1514_v8 }
 0xb9e   :  { %v1504_v35 = vpop.xlane.xlu0 %1503 }
 0xb9f   :  { %v1515_v4 = vadd.f32 %v1512_v47, %v1504_v35 }
 0xba1   :  { %3952 = vtanh.f32 %v1515_v4 }
 0xba6   :  { %v3949_v63 = vpop.eup %3948 }
 0xba7   :  { %v4610_v24 = vadd.f32 %v3949_v63, %v4531_v45  ;;  %v1572_v39 = vsub.f32 0.0, %v3949_v63 }
 0xba9   :  { %v1577_v6 = vmul.f32 1.442695, %v1572_v39 }
 0xbaa   :  { %v3951_v25 = vpop.eup %3950 }
 0xbab   :  { %v4613_v16 = vadd.f32 %v3951_v25, %v4534_v15  ;;  %v1573_v57 = vsub.f32 0.0, %v3951_v25 }
 0xbad   :  { %v1579_v10 = vmul.f32 1.442695, %v1573_v57 }
 0xbae   :  { %v3953_v26 = vpop.eup %3952 }
 0xbaf   :  { %v4616_v27 = vadd.f32 %v3953_v26, %v4537_v49  ;;  %v3831_v49 = vld [vmem:[#allocation5 + $0x160] sm:$0xff]   ;;  %v1574_v44 = vsub.f32 0.0, %v3953_v26 }
 0xbb0   :  { %3626 = vmatpush3.bf16.msra.mxu1 %v3831_v49 }
 0xbb1   :  { %3627 = vmatprep.subr.bf16.mxu1 %v4146_v1  ;;  %v1581_v33 = vmul.f32 1.442695, %v1574_v44 }
 0xbb4   :  { %3628 = vmatpush3.bf16.msra.mxu1 %v3832_v37 }
 0xbb5   :  { %3629 = vmatprep.subr.bf16.mxu1 %v4146_v1 }
 0xbb8   :  { %3630 = vmatpush3.bf16.msra.mxu1 %v3833_v18 }
 0xbb9   :  { %3631 = vmatprep.subr.bf16.mxu1 %v4146_v1 }
 0xbbc   :  { %3632 = vmatpush3.bf16.msra.mxu1 %v3834_v62 }
 0xbbd   :  { %3633 = vmatprep.subr.bf16.mxu1 %v4146_v1 }
 0xbc0   :  { %3634 = vmatpush3.bf16.msra.mxu1 %v3835_v56 }
 0xbc1   :  { %3675 = vmatprep.subr.bf16.mxu1 %v4146_v1 }
 0xbd1   :  { %v1508_v7 = vpop.xlane.xlu1 %1507  ;;  %v1541_v9 = vpop.xlane.xlu0 %1540 }
 0xbd2   :  { %v1517_v30 = vadd.f32 %v1512_v47, %v1508_v7  ;;  %v1546_v45 = vadd.f32 %v1541_v9, %v1512_v47 }
 0xbd4   :  { %3954 = vtanh.f32 %v1517_v30  ;;  %1560 = vrot.lane.b32.xlu1 %v1546_v45, %s4149_s7 }
 0xbd5   :  { %v1506_v15 = vpop.xlane.xlu0 %1505 }
 0xbd6   :  { %v1516_v34 = vadd.f32 %v1512_v47, %v1506_v15 }
 0xbd8   :  { %3956 = vtanh.f32 %v1516_v34 }
 0xbd9   :  { %3958 = vpow2.f32 %v1577_v6 }
 0xbda   :  { %3960 = vpow2.f32 %v1579_v10 }
 0xbdb   :  { %3962 = vpow2.f32 %v1581_v33 }
 0xbe1   :  { %v3955_v43 = vpop.eup %3954 }
 0xbe2   :  { %v4625_v36 = vadd.f32 %v3955_v43, %v4548_v11 }
 0xbe5   :  { %v3957_v48 = vpop.eup %3956 }
 0xbe6   :  { %v4628_v5 = vadd.f32 %v3957_v48, %v4540_v38  ;;  %v1575_v22 = vsub.f32 0.0, %v3957_v48  ;;  %v3959_v29 = vpop.eup %3958 }
 0xbe7   :  { %v3961_v14 = vpop.eup %3960 }
 0xbe8   :  { %v1583_v47 = vmul.f32 1.442695, %v1575_v22  ;;  %v3963_v21 = vpop.eup %3962 }
 0xbea   :  { %3964 = vpow2.f32 %v1583_v47 }
 0xbf7   :  { %v3965_v4 = vpop.eup %3964 }
 0xbfb   :  { %v1553_v53 = vpop.permute.xlu0 %1552 }
 0xbfc   :  { %v1567_v11 = vsub.f32 %v4481_v61, %v1553_v53 }
 0xbfe   :  { %v4631_v60 = vmul.f32 %v3959_v29, %v1567_v11 }
 0xbff   :  { %v1555_v38 = vpop.permute.xlu1 %1554 }
 0xc00   :  { %v1568_v13 = vsub.f32 %v4486_v31, %v1555_v38  ;;  %1601 = vperm.xlu0 %3776, %v4631_v60  }
 0xc02   :  { %v4636_v20 = vmul.f32 %v3961_v14, %v1568_v13 }
 0xc03   :  { %v1557_v42 = vpop.permute.xlu1 %1556 }
 0xc04   :  { %v1569_v61 = vsub.f32 %v4491_v2, %v1557_v42  ;;  %1606 = vperm.xlu1 %3781, %v4636_v20   ;;  %v1576_v2 = vsub.f32 0.0, %v3955_v43 }
 0xc06   :  { %v4641_v8 = vmul.f32 %v3963_v21, %v1569_v61  ;;  %v1585_v25 = vmul.f32 1.442695, %v1576_v2 }
 0xc07   :  { %v1559_v31 = vpop.permute.xlu0 %1558 }
 0xc08   :  { %v1570_v35 = vsub.f32 %v4496_v3, %v1559_v31  ;;  %1611 = vperm.xlu0 %3776, %v4641_v8   ;;  %3966 = vpow2.f32 %v1585_v25  ;;  %v4654_v3 = vld [vmem:[#allocation2 + $0x28] sm:$0xff] }
 0xc09   :  { %v1627_v9 = vrot.slane %v4654_v3, %v4232_v17  ;;  %v1636_v32 = vrot.slane %v4654_v3, %v4237_v19  ;;  %v1680_v56 = vrot.slane %v4654_v3, %v4250_v50  ;;  %v1803_v2 = vrot.slane %v4654_v3, %v4260_v12 }
 0xc0a   :  { %v4646_v63 = vmul.f32 %v3965_v4, %v1570_v35 }
 0xc0c   :  { %1616 = vperm.xlu1 %3781, %v4646_v63  }
 0xc10   :  { %3782 = vset.pattern.permute.xlu1 %v4145_v0 }
 0xc15   :  { %v3967_v23 = vpop.eup %3966 }
 0xc46   :  { %v1561_v26 = vpop.permute.xlu1 %1560 }
 0xc47   :  { %v1571_v28 = vsub.f32 %v4501_v55, %v1561_v26 }
 0xc49   :  { %v4651_v7 = vmul.f32 %v3967_v23, %v1571_v28 }
 0xc4b   :  { %1621 = vperm.xlu0 %3776, %v4651_v7  }
 0xc7b   :  { %v1602_v30 = vpop.permute.xlu0 %1601 }
 0xc7c   :  { %v1628_v45 = vmul.f32 %v1627_v9, %v1602_v30 }
 0xc7e   :  { %v1637_v15 = vadd.f32 %v1636_v32, %v1628_v45 }
 0xc7f   :  { %v1607_v49 = vpop.permute.xlu1 %1606 }
 0xc80   :  { %v1629_v34 = vmul.f32 %v1627_v9, %v1607_v49  ;;  %v1647_v37 = vmul.f32 0.01, %v1637_v15  ;;  %vm1642_vm6 = vcmp.gt.f32.partialorder %v1637_v15, 0.0 }
 0xc82   :  { %v1638_v55 = vadd.f32 %v1636_v32, %v1629_v34  ;;  %v1652_v6 = vsel %vm1642_vm6, %v1637_v15, %v1647_v37 }
 0xc83   :  { %v1612_v43 = vpop.permute.xlu0 %1611 }
 0xc84   :  { %vm1643_vm7 = vcmp.gt.f32.partialorder %v1638_v55, 0.0  ;;  %v1648_v48 = vmul.f32 0.01, %v1638_v55  ;;  %v1630_v39 = vmul.f32 %v1627_v9, %v1612_v43 }
 0xc86   :  { %v1653_v57 = vsel %vm1643_vm7, %v1638_v55, %v1648_v48  ;;  %v1639_v10 = vadd.f32 %v1636_v32, %v1630_v39 }
 0xc87   :  { %v1657_v44 = vpack.c.bf16 %v1653_v57, %v1652_v6  ;;  %v1617_v33 = vpop.permute.xlu1 %1616 }
 0xc88   :  { %v1631_v22 = vmul.f32 %v1627_v9, %v1617_v33  ;;  %v1649_v47 = vmul.f32 0.01, %v1639_v10  ;;  %vm1644_vm8 = vcmp.gt.f32.partialorder %v1639_v10, 0.0  ;;  %v1836_v33 = vrot.slane %v4654_v3, %v4255_v52 }
 0xc89   :  { %3636 = vmatmul.mubr.bf16.vlgmr.msra.gmra.mxu1 %v1657_v44 }
 0xc8a   :  { %v1640_v53 = vadd.f32 %v1636_v32, %v1631_v22  ;;  %3639 = vmatprep.mubr.msk.bf16.mxu1 %vm4147_vm0, %v4146_v1  ;;  %v1654_v29 = vsel %vm1644_vm8, %v1639_v10, %v1649_v47 }
 0xc8c   :  { %v1650_v11 = vmul.f32 0.01, %v1640_v53  ;;  %vm1645_vm9 = vcmp.gt.f32.partialorder %v1640_v53, 0.0 }
 0xc8e   :  { %v1655_v18 = vsel %vm1645_vm9, %v1640_v53, %v1650_v11 }
 0xc8f   :  { %v1658_v38 = vpack.c.bf16 %v1655_v18, %v1654_v29 }
 0xc91   :  { %3640 = vmatmul.mubr.bf16.gmra.mxu1 %v1658_v38 }
 0xc92   :  { %3643 = vmatprep.mubr.msk.bf16.mxu1 %vm4147_vm0, %v4146_v1 }
 0xcc6   :  { %v1622_v13 = vpop.permute.xlu0 %1621 }
 0xcc7   :  { %v1632_v14 = vmul.f32 %v1627_v9, %v1622_v13 }
 0xcc9   :  { %v1641_v62 = vadd.f32 %v1636_v32, %v1632_v14 }
 0xccb   :  { %v1651_v42 = vmul.f32 0.01, %v1641_v62  ;;  %vm1646_vm10 = vcmp.gt.f32.partialorder %v1641_v62, 0.0 }
 0xccd   :  { %v1656_v61 = vsel %vm1646_vm10, %v1641_v62, %v1651_v42 }
 0xcce   :  { %v1659_v21 = vpack.c.bf16 %v1656_v61, %v1656_v61 }
 0xcd0   :  { %3644 = vmatmul.mubr.bf16.gmra.mxu1 %v1659_v21 }
 0xcd1   :  { %3691 = vmatprep.mubr.msk.bf16.mxu1 %vm4147_vm0, %v4146_v1 }
 0xd49   :  { %v1763_v31 = vpop.f32.mrf.mxu1 }
 0xd4a   :  { %v1764_v35 = vadd.f32 %v1763_v31, %v1680_v56  ;;  %v4674_v31 = vrot.slane %v4654_v3, %v4265_v40 }
 0xd4b   :  { %v3637_v4 = vpop.f32.mrf.mxu1 }
 0xd4c   :  { %v1790_v25 = vmul.f32 0.01, %v1764_v35  ;;  %vm1785_vm11 = vcmp.gt.f32.partialorder %v1764_v35, 0.0 }
 0xd4d   :  { %v1766_v26 = vpop.f32.mrf.mxu1 }
 0xd4e   :  { %v1767_v28 = vadd.f32 %v1766_v26, %v1680_v56  ;;  %v1795_v23 = vsel %vm1785_vm11, %v1764_v35, %v1790_v25 }
 0xd4f   :  { %v3638_v9 = vpop.f32.mrf.mxu1  ;;  %v1804_v32 = vmul.f32 %v1803_v2, %v1795_v23  ;;  %v1837_v47 = vmul.f32 %v1836_v33, %v1795_v23 }
 0xd50   :  { %vm1786_vm12 = vcmp.gt.f32.partialorder %v1767_v28, 0.0  ;;  %v1791_v30 = vmul.f32 0.01, %v1767_v28 }
 0xd51   :  { %1809 = vadd.xlane.f32.xlu1 %v1804_v32  ;;  %v1771_v45 = vpop.f32.mrf.mxu1 }
 0xd52   :  { %v1772_v15 = vadd.f32 %v1771_v45, %v1680_v56  ;;  %v1796_v49 = vsel %vm1786_vm12, %v1767_v28, %v1791_v30 }
 0xd53   :  { %v3641_v34 = vpop.f32.mrf.mxu1  ;;  %v1805_v37 = vmul.f32 %v1803_v2, %v1796_v49  ;;  %v1838_v61 = vmul.f32 %v1836_v33, %v1796_v49 }
 0xd54   :  { %vm1787_vm13 = vcmp.gt.f32.partialorder %v1772_v15, 0.0  ;;  %v1792_v55 = vmul.f32 0.01, %v1772_v15 }
 0xd55   :  { %1811 = vadd.xlane.f32.xlu0 %v1805_v37  ;;  %v1774_v43 = vpop.f32.mrf.mxu1 }
 0xd56   :  { %v1775_v48 = vadd.f32 %v1774_v43, %v1680_v56  ;;  %v1797_v39 = vsel %vm1787_vm13, %v1772_v15, %v1792_v55 }
 0xd57   :  { %v3642_v6 = vpop.f32.mrf.mxu1  ;;  %v1806_v57 = vmul.f32 %v1803_v2, %v1797_v39  ;;  %v1839_v53 = vmul.f32 %v1836_v33, %v1797_v39 }
 0xd58   :  { %v1793_v10 = vmul.f32 0.01, %v1775_v48  ;;  %vm1788_vm14 = vcmp.gt.f32.partialorder %v1775_v48, 0.0 }
 0xd59   :  { %1813 = vadd.xlane.f32.xlu0 %v1806_v57 }
 0xd5a   :  { %v1798_v44 = vsel %vm1788_vm14, %v1775_v48, %v1793_v10 }
 0xd5b   :  { %v1807_v22 = vmul.f32 %v1803_v2, %v1798_v44  ;;  %v1840_v21 = vmul.f32 %v1836_v33, %v1798_v44 }
 0xd5d   :  { %1815 = vadd.xlane.f32.xlu1 %v1807_v22 }
 0xd61   :  { %1842 = vadd.xlane.f32.xlu1 %v1837_v47 }
 0xd65   :  { %1846 = vadd.xlane.f32.xlu1 %v1839_v53 }
 0xd90   :  { %v1779_v11 = vpop.f32.mrf.mxu1 }
 0xd91   :  { %v1780_v29 = vadd.f32 %v1779_v11, %v1680_v56 }
 0xd92   :  { %v3645_v18 = vpop.f32.mrf.mxu1 }
 0xd93   :  { %vm1789_vm15 = vcmp.gt.f32.partialorder %v1780_v29, 0.0  ;;  %v1794_v38 = vmul.f32 0.01, %v1780_v29 }
 0xd94   :  { %v1782_v13 = vpop.f32.mrf.mxu1 }
 0xd95   :  { %v1799_v14 = vsel %vm1789_vm15, %v1780_v29, %v1794_v38  ;;  %v3836_v38 = vld [vmem:[#allocation5 + $0x1b8] sm:$0xff]   ;;  %v3837_v13 = vld [vmem:[#allocation5 + $0x1b0] sm:$0xff]  }
 0xd96   :  { %v3646_v62 = vpop.f32.mrf.mxu1  ;;  %v1808_v42 = vmul.f32 %v1803_v2, %v1799_v14  ;;  %v1841_v22 = vmul.f32 %v1836_v33, %v1799_v14  ;;  %3648 = vmatpush3.bf16.msra.mxu0 %v3836_v38  ;;  %v3839_v14 = vld [vmem:[#allocation5 + $0x1a0] sm:$0xff]  }
 0xd97   :  { %3649 = vmatprep.subr.bf16.mxu0 %v4146_v1  ;;  %v3838_v62 = vld [vmem:[#allocation5 + $0x1a8] sm:$0xff]  }
 0xd98   :  { %1817 = vadd.xlane.f32.xlu0 %v1808_v42 }
 0xd9a   :  { %3650 = vmatpush3.bf16.msra.mxu0 %v3837_v13 }
 0xd9b   :  { %3651 = vmatprep.subr.bf16.mxu0 %v4146_v1 }
 0xd9c   :  { %1844 = vadd.xlane.f32.xlu0 %v1838_v61 }
 0xd9e   :  { %3652 = vmatpush3.bf16.msra.mxu0 %v3838_v62 }
 0xd9f   :  { %3653 = vmatprep.subr.bf16.mxu0 %v4146_v1 }
 0xda0   :  { %1848 = vadd.xlane.f32.xlu0 %v1840_v21 }
 0xda2   :  { %3654 = vmatpush3.bf16.msra.mxu0 %v3839_v14 }
 0xda3   :  { %3655 = vmatprep.subr.bf16.mxu0 %v4146_v1 }
 0xdda   :  { %v1810_v35 = vpop.xlane.xlu1 %1809 }
 0xddb   :  { %v1823_v4 = vadd.f32 %v4674_v31, %v1810_v35 }
 0xddd   :  { %3968 = vtanh.f32 %v1823_v4 }
 0xdde   :  { %v1812_v56 = vpop.xlane.xlu0 %1811 }
 0xddf   :  { %v1824_v25 = vadd.f32 %v4674_v31, %v1812_v56 }
 0xde1   :  { %3970 = vtanh.f32 %v1824_v25 }
 0xde2   :  { %v1814_v26 = vpop.xlane.xlu0 %1813 }
 0xde3   :  { %v1825_v2 = vadd.f32 %v4674_v31, %v1814_v26 }
 0xde5   :  { %3972 = vtanh.f32 %v1825_v2  ;;  %v3841_v2 = vld [vmem:[#allocation5 + $0x190] sm:$0xff]  }
 0xde6   :  { %v1816_v28 = vpop.xlane.xlu1 %1815 }
 0xde7   :  { %v1826_v23 = vadd.f32 %v4674_v31, %v1816_v28 }
 0xde9   :  { %3974 = vtanh.f32 %v1826_v23 }
 0xdea   :  { %v3969_v9 = vpop.eup %3968  ;;  %v1843_v42 = vpop.xlane.xlu1 %1842 }
 0xdeb   :  { %v1862_v32 = vsub.f32 0.0, %v3969_v9  ;;  %v4681_v3 = vadd.f32 %v3969_v9, %v4610_v24  ;;  %v1852_v21 = vadd.f32 %v1843_v42, %v4674_v31 }
 0xded   :  { %v1867_v30 = vmul.f32 1.442695, %v1862_v32  ;;  %v1857_v56 = vsub.f32 %v4559_v54, %v1852_v21 }
 0xdee   :  { %v3971_v45 = vpop.eup %3970  ;;  %v1847_v35 = vpop.xlane.xlu1 %1846 }
 0xdef   :  { %3976 = vpow2.f32 %v1867_v30  ;;  %v1863_v15 = vsub.f32 0.0, %v3971_v45  ;;  %v4684_v49 = vadd.f32 %v3971_v45, %v4613_v16  ;;  %v1854_v23 = vadd.f32 %v1847_v35, %v4674_v31  ;;  %v3842_v30 = vld [vmem:[#allocation5 + $0x188] sm:$0xff]  }
 0xdf1   :  { %v1869_v34 = vmul.f32 1.442695, %v1863_v15  ;;  %v1859_v15 = vsub.f32 %v4571_v51, %v1854_v23 }
 0xdf2   :  { %v3973_v37 = vpop.eup %3972 }
 0xdf3   :  { %3978 = vpow2.f32 %v1869_v34  ;;  %v1864_v55 = vsub.f32 0.0, %v3973_v37  ;;  %v4687_v43 = vadd.f32 %v3973_v37, %v4616_v27  ;;  %v3843_v37 = vld [vmem:[#allocation5 + $0x180] sm:$0xff]  }
 0xdf5   :  { %v1871_v48 = vmul.f32 1.442695, %v1864_v55 }
 0xdf6   :  { %v3975_v39 = vpop.eup %3974 }
 0xdf7   :  { %3980 = vpow2.f32 %v1871_v48  ;;  %v1865_v6 = vsub.f32 0.0, %v3975_v39  ;;  %v4690_v24 = vadd.f32 %v3975_v39, %v4628_v5 }
 0xdf9   :  { %v1873_v57 = vmul.f32 1.442695, %v1865_v6 }
 0xdfb   :  { %3982 = vpow2.f32 %v1873_v57 }
 0xdfc   :  { %v3977_v10 = vpop.eup %3976 }
 0xdfd   :  { %1882 = vrot.lane.b32.xlu1 %v3977_v10, %s4150_s8 }
 0xe00   :  { %v3979_v16 = vpop.eup %3978 }
 0xe01   :  { %1884 = vrot.lane.b32.xlu0 %v3979_v16, %s4150_s8 }
 0xe04   :  { %v3981_v44 = vpop.eup %3980 }
 0xe05   :  { %1886 = vrot.lane.b32.xlu1 %v3981_v44, %s4150_s8 }
 0xe08   :  { %v3983_v27 = vpop.eup %3982 }
 0xe09   :  { %1888 = vrot.lane.b32.xlu1 %v3983_v27, %s4150_s8 }
 0xe20   :  { %1850 = vadd.xlane.f32.xlu0 %v1841_v22 }
 0xe21   :  { %v1818_v47 = vpop.xlane.xlu0 %1817 }
 0xe22   :  { %v1827_v5 = vadd.f32 %v4674_v31, %v1818_v47 }
 0xe24   :  { %3984 = vtanh.f32 %v1827_v5 }
 0xe25   :  { %v1845_v61 = vpop.xlane.xlu0 %1844 }
 0xe26   :  { %v1853_v4 = vadd.f32 %v1845_v61, %v4674_v31 }
 0xe28   :  { %v1858_v9 = vsub.f32 %v4565_v59, %v1853_v4 }
 0xe29   :  { %v1849_v25 = vpop.xlane.xlu0 %1848 }
 0xe2a   :  { %v1855_v54 = vadd.f32 %v1849_v25, %v4674_v31 }
 0xe2c   :  { %v1860_v59 = vsub.f32 %v4576_v58, %v1855_v54  ;;  %v4735_v58 = vld [vmem:[#allocation2 + $0x30] sm:$0xff] }
 0xe2d   :  { %v1937_v44 = vrot.slane %v4735_v58, %v4232_v17  ;;  %v1946_v27 = vrot.slane %v4735_v58, %v4237_v19 }
 0xe31   :  { %v3985_v53 = vpop.eup %3984 }
 0xe32   :  { %v1866_v11 = vsub.f32 0.0, %v3985_v53  ;;  %v4698_v29 = vadd.f32 %v3985_v53, %v4625_v36  ;;  %v3840_v36 = vld [vmem:[#allocation5 + $0x198] sm:$0xff]  }
 0xe33   :  { %3656 = vmatpush3.bf16.msra.mxu0 %v3840_v36 }
 0xe34   :  { %v1875_v18 = vmul.f32 1.442695, %v1866_v11  ;;  %3657 = vmatprep.subr.bf16.mxu0 %v4146_v1 }
 0xe36   :  { %3986 = vpow2.f32 %v1875_v18 }
 0xe37   :  { %3658 = vmatpush3.bf16.msra.mxu0 %v3841_v2 }
 0xe38   :  { %3659 = vmatprep.subr.bf16.mxu0 %v4146_v1 }
 0xe3b   :  { %3660 = vmatpush3.bf16.msra.mxu0 %v3842_v30 }
 0xe3c   :  { %3661 = vmatprep.subr.bf16.mxu0 %v4146_v1 }
 0xe3f   :  { %3662 = vmatpush3.bf16.msra.mxu0 %v3843_v37 }
 0xe40   :  { %3703 = vmatprep.subr.bf16.mxu0 %v4146_v1 }
 0xe43   :  { %v3987_v33 = vpop.eup %3986 }
 0xe44   :  { %1890 = vrot.lane.b32.xlu1 %v3987_v33, %s4150_s8 }
 0xe6f   :  { %v1883_v26 = vpop.permute.xlu1 %1882 }
 0xe70   :  { %v4709_v28 = vmul.f32 %v1883_v26, %v1857_v56 }
 0xe72   :  { %1911 = vperm.xlu1 %3782, %v4709_v28  }
 0xe73   :  { %v1885_v32 = vpop.permute.xlu0 %1884 }
 0xe74   :  { %v4715_v45 = vmul.f32 %v1885_v32, %v1858_v9 }
 0xe76   :  { %1916 = vperm.xlu1 %3782, %v4715_v45  }
 0xe77   :  { %v1887_v34 = vpop.permute.xlu1 %1886 }
 0xe78   :  { %v4721_v55 = vmul.f32 %v1887_v34, %v1859_v15  ;;  %v1990_v15 = vrot.slane %v4735_v58, %v4250_v50 }
 0xe7a   :  { %1921 = vperm.xlu1 %3782, %v4721_v55  }
 0xe7b   :  { %v1889_v48 = vpop.permute.xlu1 %1888 }
 0xe7c   :  { %v4726_v39 = vmul.f32 %v1889_v48, %v1860_v59  ;;  %v2146_v48 = vrot.slane %v4735_v58, %v4255_v52 }
 0xe7e   :  { %1926 = vperm.xlu1 %3782, %v4726_v39  }
 0xea9   :  { %v1851_v6 = vpop.xlane.xlu0 %1850 }
 0xeaa   :  { %v1856_v51 = vadd.f32 %v1851_v6, %v4674_v31 }
 0xeac   :  { %v1861_v57 = vsub.f32 %v4581_v46, %v1856_v51 }
 0xeb6   :  { %v1891_v10 = vpop.permute.xlu1 %1890 }
 0xeb7   :  { %v4731_v16 = vmul.f32 %v1891_v10, %v1861_v57 }
 0xeb9   :  { %1931 = vperm.xlu1 %3782, %v4731_v16  }
 0xebd   :  { %3783 = vset.pattern.permute.xlu1 %v4148_v41 }
 0xeed   :  { %v1912_v22 = vpop.permute.xlu1 %1911 }
 0xeee   :  { %v1938_v47 = vmul.f32 %v1937_v44, %v1912_v22 }
 0xef0   :  { %v1947_v31 = vadd.f32 %v1946_v27, %v1938_v47 }
 0xef1   :  { %v1917_v5 = vpop.permute.xlu1 %1916 }
 0xef2   :  { %v1939_v46 = vmul.f32 %v1937_v44, %v1917_v5  ;;  %v1957_v53 = vmul.f32 0.01, %v1947_v31  ;;  %vm1952_vm1 = vcmp.gt.f32.partialorder %v1947_v31, 0.0 }
 0xef4   :  { %v1948_v11 = vadd.f32 %v1946_v27, %v1939_v46  ;;  %v1962_v62 = vsel %vm1952_vm1, %v1947_v31, %v1957_v53 }
 0xef5   :  { %v1922_v18 = vpop.permute.xlu1 %1921 }
 0xef6   :  { %vm1953_vm2 = vcmp.gt.f32.partialorder %v1948_v11, 0.0  ;;  %v1958_v38 = vmul.f32 0.01, %v1948_v11  ;;  %v1940_v13 = vmul.f32 %v1937_v44, %v1922_v18 }
 0xef8   :  { %v1963_v33 = vsel %vm1953_vm2, %v1948_v11, %v1958_v38  ;;  %v1949_v14 = vadd.f32 %v1946_v27, %v1940_v13 }
 0xef9   :  { %v1967_v36 = vpack.c.bf16 %v1963_v33, %v1962_v62  ;;  %v1927_v42 = vpop.permute.xlu1 %1926 }
 0xefa   :  { %v1941_v61 = vmul.f32 %v1937_v44, %v1927_v42  ;;  %v1959_v21 = vmul.f32 0.01, %v1949_v14  ;;  %vm1954_vm3 = vcmp.gt.f32.partialorder %v1949_v14, 0.0 }
 0xefb   :  { %3664 = vmatmul.mubr.bf16.vlgmr.msra.gmra.mxu0 %v1967_v36  ;;  %v2113_v36 = vrot.slane %v4735_v58, %v4260_v12 }
 0xefc   :  { %v1950_v35 = vadd.f32 %v1946_v27, %v1941_v61  ;;  %3667 = vmatprep.mubr.msk.bf16.mxu0 %vm4147_vm0, %v4146_v1  ;;  %v1964_v56 = vsel %vm1954_vm3, %v1949_v14, %v1959_v21 }
 0xefe   :  { %vm1955_vm4 = vcmp.gt.f32.partialorder %v1950_v35, 0.0  ;;  %v1960_v4 = vmul.f32 0.01, %v1950_v35 }
 0xf00   :  { %v1965_v25 = vsel %vm1955_vm4, %v1950_v35, %v1960_v4 }
 0xf01   :  { %v1968_v26 = vpack.c.bf16 %v1965_v25, %v1964_v56 }
 0xf03   :  { %3668 = vmatmul.mubr.bf16.gmra.mxu0 %v1968_v26 }
 0xf04   :  { %3671 = vmatprep.mubr.msk.bf16.mxu0 %vm4147_vm0, %v4146_v1 }
 0xf34   :  { %v1932_v2 = vpop.permute.xlu1 %1931 }
 0xf35   :  { %v1942_v23 = vmul.f32 %v1937_v44, %v1932_v2 }
 0xf37   :  { %v1951_v9 = vadd.f32 %v1946_v27, %v1942_v23 }
 0xf39   :  { %v1961_v32 = vmul.f32 0.01, %v1951_v9  ;;  %vm1956_vm5 = vcmp.gt.f32.partialorder %v1951_v9, 0.0 }
 0xf3b   :  { %v1966_v30 = vsel %vm1956_vm5, %v1951_v9, %v1961_v32 }
 0xf3c   :  { %v1969_v54 = vpack.c.bf16 %v1966_v30, %v1966_v30 }
 0xf3e   :  { %3672 = vmatmul.mubr.bf16.gmra.mxu0 %v1969_v54 }
 0xf3f   :  { %3719 = vmatprep.mubr.msk.bf16.mxu0 %vm4147_vm0, %v4146_v1 }
 0xfbb   :  { %v2073_v34 = vpop.f32.mrf.mxu0 }
 0xfbc   :  { %v2074_v37 = vadd.f32 %v2073_v34, %v1990_v15 }
 0xfbd   :  { %v3665_v59 = vpop.f32.mrf.mxu0 }
 0xfbe   :  { %vm2095_vm6 = vcmp.gt.f32.partialorder %v2074_v37, 0.0  ;;  %v2100_v6 = vmul.f32 0.01, %v2074_v37 }
 0xfbf   :  { %v2076_v51 = vpop.f32.mrf.mxu0 }
 0xfc0   :  { %v2077_v57 = vadd.f32 %v2076_v51, %v1990_v15  ;;  %v2105_v10 = vsel %vm2095_vm6, %v2074_v37, %v2100_v6  ;;  %v2132_v37 = vrot.slane %v4735_v58, %v4265_v40 }
 0xfc1   :  { %v3666_v44 = vpop.f32.mrf.mxu0  ;;  %v2147_v27 = vmul.f32 %v2146_v48, %v2105_v10  ;;  %v2114_v35 = vmul.f32 %v2113_v36, %v2105_v10 }
 0xfc2   :  { %vm2096_vm7 = vcmp.gt.f32.partialorder %v2077_v57, 0.0  ;;  %v2101_v22 = vmul.f32 0.01, %v2077_v57 }
 0xfc3   :  { %v2081_v47 = vpop.f32.mrf.mxu0  ;;  %2152 = vadd.xlane.f32.xlu1 %v2147_v27 }
 0xfc4   :  { %v2082_v31 = vadd.f32 %v2081_v47, %v1990_v15  ;;  %v2106_v5 = vsel %vm2096_vm7, %v2077_v57, %v2101_v22 }
 0xfc5   :  { %v3669_v46 = vpop.f32.mrf.mxu0  ;;  %v2148_v53 = vmul.f32 %v2146_v48, %v2106_v5  ;;  %v2115_v54 = vmul.f32 %v2113_v36, %v2106_v5  ;;  %v3845_v5 = vld [vmem:[#allocation5 + $0x1f0] sm:$0xff]  }
 0xfc6   :  { %vm2097_vm8 = vcmp.gt.f32.partialorder %v2082_v31, 0.0  ;;  %v2102_v11 = vmul.f32 0.01, %v2082_v31 }
 0xfc7   :  { %2154 = vadd.xlane.f32.xlu0 %v2148_v53  ;;  %v2084_v18 = vpop.f32.mrf.mxu0 }
 0xfc8   :  { %v2085_v38 = vadd.f32 %v2084_v18, %v1990_v15  ;;  %v2107_v13 = vsel %vm2097_vm8, %v2082_v31, %v2102_v11  ;;  %v3844_v31 = vld [vmem:[#allocation5 + $0x1f8] sm:$0xff]   ;;  %v3846_v11 = vld [vmem:[#allocation5 + $0x1e8] sm:$0xff]  }
 0xfc9   :  { %v3670_v62 = vpop.f32.mrf.mxu0  ;;  %v2149_v33 = vmul.f32 %v2146_v48, %v2107_v13  ;;  %v2116_v34 = vmul.f32 %v2113_v36, %v2107_v13  ;;  %3676 = vmatpush3.bf16.msra.mxu1 %v3844_v31 }
 0xfca   :  { %vm2098_vm9 = vcmp.gt.f32.partialorder %v2085_v38, 0.0  ;;  %v2103_v14 = vmul.f32 0.01, %v2085_v38  ;;  %3677 = vmatprep.subr.bf16.mxu1 %v4146_v1 }
 0xfcb   :  { %2156 = vadd.xlane.f32.xlu0 %v2149_v33 }
 0xfcc   :  { %v2108_v42 = vsel %vm2098_vm9, %v2085_v38, %v2103_v14  ;;  %v3848_v14 = vld [vmem:[#allocation5 + $0x1d8] sm:$0xff]  }
 0xfcd   :  { %v2150_v61 = vmul.f32 %v2146_v48, %v2108_v42  ;;  %v2117_v21 = vmul.f32 %v2113_v36, %v2108_v42  ;;  %3678 = vmatpush3.bf16.msra.mxu1 %v3845_v5 }
 0xfce   :  { %3679 = vmatprep.subr.bf16.mxu1 %v4146_v1 }
 0xfcf   :  { %2158 = vadd.xlane.f32.xlu0 %v2150_v61 }
 0xfd1   :  { %3680 = vmatpush3.bf16.msra.mxu1 %v3846_v11 }
 0xfd2   :  { %3681 = vmatprep.subr.bf16.mxu1 %v4146_v1 }
 0xfd3   :  { %2119 = vadd.xlane.f32.xlu0 %v2114_v35 }
 0xffe   :  { %v2089_v4 = vpop.f32.mrf.mxu0 }
 0xfff   :  { %v2090_v56 = vadd.f32 %v2089_v4, %v1990_v15 }
0x1000   :  { %v3673_v25 = vpop.f32.mrf.mxu0 }
0x1001   :  { %vm2099_vm10 = vcmp.gt.f32.partialorder %v2090_v56, 0.0  ;;  %v2104_v26 = vmul.f32 0.01, %v2090_v56 }
0x1002   :  { %v2092_v2 = vpop.f32.mrf.mxu0 }
0x1003   :  { %v2109_v23 = vsel %vm2099_vm10, %v2090_v56, %v2104_v26 }
0x1004   :  { %v3674_v9 = vpop.f32.mrf.mxu0  ;;  %v2151_v32 = vmul.f32 %v2146_v48, %v2109_v23  ;;  %v2118_v30 = vmul.f32 %v2113_v36, %v2109_v23 }
0x1006   :  { %2160 = vadd.xlane.f32.xlu0 %v2151_v32  ;;  %2127 = vadd.xlane.f32.xlu1 %v2118_v30 }
0x100a   :  { %2121 = vadd.xlane.f32.xlu0 %v2115_v54 }
0x100e   :  { %2123 = vadd.xlane.f32.xlu0 %v2116_v34 }
0x1012   :  { %2125 = vadd.xlane.f32.xlu0 %v2117_v21 }
0x104c   :  { %v2153_v59 = vpop.xlane.xlu1 %2152 }
0x104d   :  { %v2162_v15 = vadd.f32 %v2153_v59, %v2132_v37 }
0x104f   :  { %2172 = vrot.lane.b32.xlu0 %v2162_v15, %s4149_s7 }
0x1050   :  { %v2155_v6 = vpop.xlane.xlu0 %2154 }
0x1051   :  { %v2163_v51 = vadd.f32 %v2155_v6, %v2132_v37  ;;  %v3849_v6 = vld [vmem:[#allocation5 + $0x1d0] sm:$0xff]  }
0x1053   :  { %2174 = vrot.lane.b32.xlu1 %v2163_v51, %s4149_s7 }
0x1054   :  { %v2157_v48 = vpop.xlane.xlu0 %2156 }
0x1055   :  { %v2164_v57 = vadd.f32 %v2157_v48, %v2132_v37 }
0x1057   :  { %2176 = vrot.lane.b32.xlu1 %v2164_v57, %s4149_s7 }
0x1058   :  { %v2159_v10 = vpop.xlane.xlu0 %2158 }
0x1059   :  { %v2165_v44 = vadd.f32 %v2159_v10, %v2132_v37  ;;  %v3850_v10 = vld [vmem:[#allocation5 + $0x1c8] sm:$0xff]  }
0x105b   :  { %2178 = vrot.lane.b32.xlu0 %v2165_v44, %s4149_s7 }
0x105c   :  { %v2120_v27 = vpop.xlane.xlu0 %2119 }
0x105d   :  { %v2133_v22 = vadd.f32 %v2132_v37, %v2120_v27 }
0x105f   :  { %3988 = vtanh.f32 %v2133_v22 }
0x106c   :  { %v3989_v58 = vpop.eup %3988 }
0x106d   :  { %v4760_v47 = vadd.f32 %v3989_v58, %v4681_v3  ;;  %v3847_v3 = vld [vmem:[#allocation5 + $0x1e0] sm:$0xff]   ;;  %v2192_v9 = vsub.f32 0.0, %v3989_v58 }
0x106e   :  { %3682 = vmatpush3.bf16.msra.mxu1 %v3847_v3  ;;  %v3851_v58 = vld [vmem:[#allocation5 + $0x1c0] sm:$0xff]  }
0x106f   :  { %3683 = vmatprep.subr.bf16.mxu1 %v4146_v1  ;;  %v2197_v32 = vmul.f32 1.442695, %v2192_v9 }
0x1072   :  { %3684 = vmatpush3.bf16.msra.mxu1 %v3848_v14 }
0x1073   :  { %3685 = vmatprep.subr.bf16.mxu1 %v4146_v1 }
0x1076   :  { %3686 = vmatpush3.bf16.msra.mxu1 %v3849_v6 }
0x1077   :  { %3687 = vmatprep.subr.bf16.mxu1 %v4146_v1 }
0x107a   :  { %3688 = vmatpush3.bf16.msra.mxu1 %v3850_v10 }
0x107b   :  { %3689 = vmatprep.subr.bf16.mxu1 %v4146_v1 }
0x107e   :  { %3690 = vmatpush3.bf16.msra.mxu1 %v3851_v58 }
0x107f   :  { %3731 = vmatprep.subr.bf16.mxu1 %v4146_v1 }
0x108f   :  { %v2128_v46 = vpop.xlane.xlu1 %2127  ;;  %v2161_v53 = vpop.xlane.xlu0 %2160 }
0x1090   :  { %v2137_v18 = vadd.f32 %v2132_v37, %v2128_v46  ;;  %v2166_v38 = vadd.f32 %v2161_v53, %v2132_v37 }
0x1092   :  { %3990 = vtanh.f32 %v2137_v18  ;;  %2180 = vrot.lane.b32.xlu1 %v2166_v38, %s4149_s7 }
0x1093   :  { %v2122_v13 = vpop.xlane.xlu0 %2121 }
0x1094   :  { %v2134_v62 = vadd.f32 %v2132_v37, %v2122_v13 }
0x1096   :  { %3992 = vtanh.f32 %v2134_v62 }
0x1097   :  { %v2124_v33 = vpop.xlane.xlu0 %2123 }
0x1098   :  { %v2135_v36 = vadd.f32 %v2132_v37, %v2124_v33 }
0x109a   :  { %3994 = vtanh.f32 %v2135_v36 }
0x109b   :  { %v2126_v42 = vpop.xlane.xlu0 %2125 }
0x109c   :  { %v2136_v61 = vadd.f32 %v2132_v37, %v2126_v42 }
0x109e   :  { %3996 = vtanh.f32 %v2136_v61 }
0x109f   :  { %v3991_v21 = vpop.eup %3990  ;;  %3998 = vpow2.f32 %v2197_v32 }
0x10a0   :  { %v4769_v35 = vadd.f32 %v3991_v21, %v4698_v29 }
0x10a3   :  { %v3993_v4 = vpop.eup %3992 }
0x10a4   :  { %v4772_v56 = vadd.f32 %v3993_v4, %v4684_v49  ;;  %v2193_v30 = vsub.f32 0.0, %v3993_v4 }
0x10a6   :  { %v2199_v54 = vmul.f32 1.442695, %v2193_v30 }
0x10a7   :  { %v3995_v25 = vpop.eup %3994 }
0x10a8   :  { %v4775_v26 = vadd.f32 %v3995_v25, %v4687_v43  ;;  %v2194_v34 = vsub.f32 0.0, %v3995_v25  ;;  %4000 = vpow2.f32 %v2199_v54 }
0x10aa   :  { %v2201_v29 = vmul.f32 1.442695, %v2194_v34 }
0x10ab   :  { %v3997_v2 = vpop.eup %3996 }
0x10ac   :  { %v4778_v23 = vadd.f32 %v3997_v2, %v4690_v24  ;;  %v2195_v37 = vsub.f32 0.0, %v3997_v2  ;;  %4002 = vpow2.f32 %v2201_v29  ;;  %v3999_v15 = vpop.eup %3998 }
0x10ae   :  { %v2203_v49 = vmul.f32 1.442695, %v2195_v37 }
0x10b0   :  { %4004 = vpow2.f32 %v2203_v49 }
0x10b5   :  { %v4001_v57 = vpop.eup %4000 }
0x10b9   :  { %v4003_v22 = vpop.eup %4002 }
0x10bd   :  { %v4005_v46 = vpop.eup %4004 }
0x10c1   :  { %v2173_v59 = vpop.permute.xlu0 %2172 }
0x10c2   :  { %v2187_v43 = vsub.f32 %v4631_v60, %v2173_v59 }
0x10c4   :  { %v4781_v51 = vmul.f32 %v3999_v15, %v2187_v43 }
0x10c5   :  { %v2175_v24 = vpop.permute.xlu1 %2174 }
0x10c6   :  { %v2188_v48 = vsub.f32 %v4636_v20, %v2175_v24  ;;  %2221 = vperm.xlu0 %3776, %v4781_v51  }
0x10c8   :  { %v4786_v44 = vmul.f32 %v4001_v57, %v2188_v48 }
0x10c9   :  { %v2177_v27 = vpop.permute.xlu1 %2176 }
0x10ca   :  { %v2189_v60 = vsub.f32 %v4641_v8, %v2177_v27  ;;  %2226 = vperm.xlu1 %3783, %v4786_v44   ;;  %v2196_v8 = vsub.f32 0.0, %v3991_v21 }
0x10cc   :  { %v4791_v31 = vmul.f32 %v4003_v22, %v2189_v60  ;;  %v2205_v11 = vmul.f32 1.442695, %v2196_v8 }
0x10cd   :  { %v2179_v20 = vpop.permute.xlu0 %2178 }
0x10ce   :  { %v2190_v5 = vsub.f32 %v4646_v63, %v2179_v20  ;;  %2231 = vperm.xlu0 %3776, %v4791_v31   ;;  %4006 = vpow2.f32 %v2205_v11  ;;  %v4805_v63 = vld [vmem:[#allocation2 + $0x38] sm:$0xff] }
0x10cf   :  { %v2247_v62 = vrot.slane %v4805_v63, %v4232_v17  ;;  %v2256_v33 = vrot.slane %v4805_v63, %v4237_v19  ;;  %v2300_v22 = vrot.slane %v4805_v63, %v4250_v50 }
0x10d0   :  { %v4796_v53 = vmul.f32 %v4005_v46, %v2190_v5  ;;  %v2423_v46 = vrot.slane %v4805_v63, %v4260_v12 }
0x10d2   :  { %2236 = vperm.xlu1 %3783, %v4796_v53  }
0x10d6   :  { %3785 = vset.pattern.permute.xlu1 %v4145_v0 }
0x10db   :  { %v4007_v13 = vpop.eup %4006 }
0x1104   :  { %v2181_v18 = vpop.permute.xlu1 %2180 }
0x1105   :  { %v2191_v38 = vsub.f32 %v4651_v7, %v2181_v18 }
0x1107   :  { %v4801_v3 = vmul.f32 %v4007_v13, %v2191_v38 }
0x1109   :  { %2241 = vperm.xlu0 %3776, %v4801_v3  }
0x110d   :  { %3784 = vset.pattern.permute.xlu0 %v4145_v0 }
0x1141   :  { %v2222_v14 = vpop.permute.xlu0 %2221 }
0x1142   :  { %v2248_v36 = vmul.f32 %v2247_v62, %v2222_v14 }
0x1144   :  { %v2257_v42 = vadd.f32 %v2256_v33, %v2248_v36 }
0x1145   :  { %v2227_v61 = vpop.permute.xlu1 %2226 }
0x1146   :  { %v2249_v7 = vmul.f32 %v2247_v62, %v2227_v61  ;;  %v2267_v21 = vmul.f32 0.01, %v2257_v42  ;;  %vm2262_vm11 = vcmp.gt.f32.partialorder %v2257_v42, 0.0 }
0x1148   :  { %v2258_v4 = vadd.f32 %v2256_v33, %v2249_v7  ;;  %v2272_v9 = vsel %vm2262_vm11, %v2257_v42, %v2267_v21 }
0x1149   :  { %v2232_v25 = vpop.permute.xlu0 %2231 }
0x114a   :  { %vm2263_vm12 = vcmp.gt.f32.partialorder %v2258_v4, 0.0  ;;  %v2268_v2 = vmul.f32 0.01, %v2258_v4  ;;  %v2250_v0 = vmul.f32 %v2247_v62, %v2232_v25 }
0x114c   :  { %v2273_v32 = vsel %vm2263_vm12, %v2258_v4, %v2268_v2  ;;  %v2259_v30 = vadd.f32 %v2256_v33, %v2250_v0 }
0x114d   :  { %v2277_v54 = vpack.c.bf16 %v2273_v32, %v2272_v9  ;;  %v2237_v34 = vpop.permute.xlu1 %2236 }
0x114e   :  { %v2251_v29 = vmul.f32 %v2247_v62, %v2237_v34  ;;  %v2269_v37 = vmul.f32 0.01, %v2259_v30  ;;  %vm2264_vm13 = vcmp.gt.f32.partialorder %v2259_v30, 0.0  ;;  %v2456_v34 = vrot.slane %v4805_v63, %v4255_v52 }
0x114f   :  { %3692 = vmatmul.mubr.bf16.vlgmr.msra.gmra.mxu1 %v2277_v54 }
0x1150   :  { %v2260_v49 = vadd.f32 %v2256_v33, %v2251_v29  ;;  %3695 = vmatprep.mubr.msk.bf16.mxu1 %vm4147_vm0, %v4146_v1  ;;  %v2274_v43 = vsel %vm2264_vm13, %v2259_v30, %v2269_v37 }
0x1152   :  { %vm2265_vm14 = vcmp.gt.f32.partialorder %v2260_v49, 0.0  ;;  %v2270_v59 = vmul.f32 0.01, %v2260_v49 }
0x1154   :  { %v2275_v15 = vsel %vm2265_vm14, %v2260_v49, %v2270_v59 }
0x1155   :  { %v2278_v6 = vpack.c.bf16 %v2275_v15, %v2274_v43 }
0x1157   :  { %3696 = vmatmul.mubr.bf16.gmra.mxu1 %v2278_v6 }
0x1158   :  { %3699 = vmatprep.mubr.msk.bf16.mxu1 %vm4147_vm0, %v4146_v1 }
0x1184   :  { %v2242_v24 = vpop.permute.xlu0 %2241 }
0x1185   :  { %v2252_v48 = vmul.f32 %v2247_v62, %v2242_v24 }
0x1187   :  { %v2261_v57 = vadd.f32 %v2256_v33, %v2252_v48 }
0x1189   :  { %v2271_v10 = vmul.f32 0.01, %v2261_v57  ;;  %vm2266_vm15 = vcmp.gt.f32.partialorder %v2261_v57, 0.0 }
0x118b   :  { %v2276_v27 = vsel %vm2266_vm15, %v2261_v57, %v2271_v10 }
0x118c   :  { %v2279_v60 = vpack.c.bf16 %v2276_v27, %v2276_v27 }
0x118e   :  { %3700 = vmatmul.mubr.bf16.gmra.mxu1 %v2279_v60 }
0x118f   :  { %3747 = vmatprep.mubr.msk.bf16.mxu1 %vm4147_vm0, %v4146_v1 }
0x120f   :  { %v2383_v58 = vpop.f32.mrf.mxu1 }
0x1210   :  { %v2384_v20 = vadd.f32 %v2383_v58, %v2300_v22  ;;  %v4825_v58 = vrot.slane %v4805_v63, %v4265_v40 }
0x1211   :  { %v3693_v5 = vpop.f32.mrf.mxu1 }
0x1212   :  { %vm2405_vm1 = vcmp.gt.f32.partialorder %v2384_v20, 0.0  ;;  %v2410_v8 = vmul.f32 0.01, %v2384_v20 }
0x1213   :  { %v2386_v11 = vpop.f32.mrf.mxu1 }
0x1214   :  { %v2387_v18 = vadd.f32 %v2386_v11, %v2300_v22  ;;  %v2415_v38 = vsel %vm2405_vm1, %v2384_v20, %v2410_v8 }
0x1215   :  { %v3694_v13 = vpop.f32.mrf.mxu1  ;;  %v2424_v62 = vmul.f32 %v2423_v46, %v2415_v38  ;;  %v2457_v29 = vmul.f32 %v2456_v34, %v2415_v38 }
0x1216   :  { %vm2406_vm2 = vcmp.gt.f32.partialorder %v2387_v18, 0.0  ;;  %v2411_v33 = vmul.f32 0.01, %v2387_v18 }
0x1217   :  { %2429 = vadd.xlane.f32.xlu1 %v2424_v62  ;;  %v2391_v14 = vpop.f32.mrf.mxu1 }
0x1218   :  { %v2392_v36 = vadd.f32 %v2391_v14, %v2300_v22  ;;  %v2416_v42 = vsel %vm2406_vm2, %v2387_v18, %v2411_v33 }
0x1219   :  { %v3697_v61 = vpop.f32.mrf.mxu1  ;;  %v2425_v7 = vmul.f32 %v2423_v46, %v2416_v42  ;;  %v2458_v27 = vmul.f32 %v2456_v34, %v2416_v42 }
0x121a   :  { %vm2407_vm3 = vcmp.gt.f32.partialorder %v2392_v36, 0.0  ;;  %v2412_v21 = vmul.f32 0.01, %v2392_v36 }
0x121b   :  { %2431 = vadd.xlane.f32.xlu0 %v2425_v7  ;;  %v2394_v4 = vpop.f32.mrf.mxu1 }
0x121c   :  { %v2395_v25 = vadd.f32 %v2394_v4, %v2300_v22  ;;  %v2417_v2 = vsel %vm2407_vm3, %v2392_v36, %v2412_v21 }
0x121d   :  { %v3698_v0 = vpop.f32.mrf.mxu1  ;;  %v2426_v9 = vmul.f32 %v2423_v46, %v2417_v2  ;;  %v2459_v37 = vmul.f32 %v2456_v34, %v2417_v2 }
0x121e   :  { %vm2408_vm4 = vcmp.gt.f32.partialorder %v2395_v25, 0.0  ;;  %v2413_v32 = vmul.f32 0.01, %v2395_v25 }
0x121f   :  { %2433 = vadd.xlane.f32.xlu0 %v2426_v9 }
0x1220   :  { %v2418_v30 = vsel %vm2408_vm4, %v2395_v25, %v2413_v32 }
0x1221   :  { %v2427_v54 = vmul.f32 %v2423_v46, %v2418_v30  ;;  %v2460_v60 = vmul.f32 %v2456_v34, %v2418_v30 }
0x1223   :  { %2435 = vadd.xlane.f32.xlu1 %v2427_v54 }
0x1227   :  { %2462 = vadd.xlane.f32.xlu1 %v2457_v29 }
0x122b   :  { %2466 = vadd.xlane.f32.xlu1 %v2459_v37 }
0x124e   :  { %v2399_v49 = vpop.f32.mrf.mxu1 }
0x124f   :  { %v2400_v59 = vadd.f32 %v2399_v49, %v2300_v22 }
0x1250   :  { %v3701_v43 = vpop.f32.mrf.mxu1 }
0x1251   :  { %vm2409_vm5 = vcmp.gt.f32.partialorder %v2400_v59, 0.0  ;;  %v2414_v15 = vmul.f32 0.01, %v2400_v59  ;;  %v3853_v43 = vld [vmem:[#allocation5 + $0x230] sm:$0xff]  }
0x1252   :  { %v2402_v6 = vpop.f32.mrf.mxu1 }
0x1253   :  { %v2419_v24 = vsel %vm2409_vm5, %v2400_v59, %v2414_v15  ;;  %v3852_v59 = vld [vmem:[#allocation5 + $0x238] sm:$0xff]   ;;  %v3854_v15 = vld [vmem:[#allocation5 + $0x228] sm:$0xff]  }
0x1254   :  { %v3702_v48 = vpop.f32.mrf.mxu1  ;;  %v2428_v57 = vmul.f32 %v2423_v46, %v2419_v24  ;;  %v2461_v10 = vmul.f32 %v2456_v34, %v2419_v24  ;;  %3704 = vmatpush3.bf16.msra.mxu0 %v3852_v59  ;;  %v3855_v24 = vld [vmem:[#allocation5 + $0x220] sm:$0xff]  }
0x1255   :  { %3705 = vmatprep.subr.bf16.mxu0 %v4146_v1 }
0x1256   :  { %2437 = vadd.xlane.f32.xlu0 %v2428_v57 }
0x1258   :  { %3706 = vmatpush3.bf16.msra.mxu0 %v3853_v43 }
0x1259   :  { %3707 = vmatprep.subr.bf16.mxu0 %v4146_v1 }
0x125a   :  { %2464 = vadd.xlane.f32.xlu0 %v2458_v27 }
0x125c   :  { %3708 = vmatpush3.bf16.msra.mxu0 %v3854_v15 }
0x125d   :  { %3709 = vmatprep.subr.bf16.mxu0 %v4146_v1 }
0x125e   :  { %2468 = vadd.xlane.f32.xlu0 %v2460_v60 }
0x1260   :  { %3710 = vmatpush3.bf16.msra.mxu0 %v3855_v24 }
0x1261   :  { %3711 = vmatprep.subr.bf16.mxu0 %v4146_v1 }
0x12a0   :  { %v2430_v20 = vpop.xlane.xlu1 %2429 }
0x12a1   :  { %v2443_v22 = vadd.f32 %v4825_v58, %v2430_v20 }
0x12a3   :  { %4008 = vtanh.f32 %v2443_v22 }
0x12a4   :  { %v2432_v5 = vpop.xlane.xlu0 %2431 }
0x12a5   :  { %v2444_v8 = vadd.f32 %v4825_v58, %v2432_v5 }
0x12a7   :  { %4010 = vtanh.f32 %v2444_v8  ;;  %v3857_v8 = vld [vmem:[#allocation5 + $0x210] sm:$0xff]  }
0x12a8   :  { %v2434_v11 = vpop.xlane.xlu0 %2433 }
0x12a9   :  { %v2445_v46 = vadd.f32 %v4825_v58, %v2434_v11 }
0x12ab   :  { %4012 = vtanh.f32 %v2445_v46 }
0x12ac   :  { %v2436_v18 = vpop.xlane.xlu1 %2435 }
0x12ad   :  { %v2446_v38 = vadd.f32 %v4825_v58, %v2436_v18 }
0x12af   :  { %4014 = vtanh.f32 %v2446_v38 }
0x12b0   :  { %v4009_v13 = vpop.eup %4008  ;;  %v2463_v48 = vpop.xlane.xlu1 %2462 }
0x12b1   :  { %v2482_v62 = vsub.f32 0.0, %v4009_v13  ;;  %v4832_v63 = vadd.f32 %v4009_v13, %v4760_v47  ;;  %v3858_v13 = vld [vmem:[#allocation5 + $0x208] sm:$0xff]  }
0x12b3   :  { %v2487_v33 = vmul.f32 1.442695, %v2482_v62 }
0x12b4   :  { %v4011_v14 = vpop.eup %4010  ;;  %v2467_v27 = vpop.xlane.xlu1 %2466 }
0x12b5   :  { %4016 = vpow2.f32 %v2487_v33  ;;  %v2483_v36 = vsub.f32 0.0, %v4011_v14  ;;  %v4835_v42 = vadd.f32 %v4011_v14, %v4772_v56  ;;  %v2474_v46 = vadd.f32 %v2467_v27, %v4825_v58 }
0x12b7   :  { %v2489_v61 = vmul.f32 1.442695, %v2483_v36  ;;  %v2479_v33 = vsub.f32 %v4721_v55, %v2474_v46  ;;  %v3859_v36 = vld [vmem:[#allocation5 + $0x200] sm:$0xff]  }
0x12b8   :  { %v4013_v7 = vpop.eup %4012 }
0x12b9   :  { %4018 = vpow2.f32 %v2489_v61  ;;  %v2484_v21 = vsub.f32 0.0, %v4013_v7  ;;  %v4838_v4 = vadd.f32 %v4013_v7, %v4775_v26 }
0x12bb   :  { %v2491_v25 = vmul.f32 1.442695, %v2484_v21 }
0x12bc   :  { %v4015_v2 = vpop.eup %4014 }
0x12bd   :  { %4020 = vpow2.f32 %v2491_v25  ;;  %v2485_v0 = vsub.f32 0.0, %v4015_v2  ;;  %v4841_v47 = vadd.f32 %v4015_v2, %v4778_v23 }
0x12bf   :  { %v2493_v9 = vmul.f32 1.442695, %v2485_v0 }
0x12c1   :  { %4022 = vpow2.f32 %v2493_v9 }
0x12c2   :  { %v4017_v32 = vpop.eup %4016 }
0x12c3   :  { %2502 = vrot.lane.b32.xlu1 %v4017_v32, %s4150_s8 }
0x12c6   :  { %v4019_v56 = vpop.eup %4018 }
0x12c7   :  { %2504 = vrot.lane.b32.xlu0 %v4019_v56, %s4150_s8 }
0x12ca   :  { %v4021_v30 = vpop.eup %4020 }
0x12cb   :  { %2506 = vrot.lane.b32.xlu0 %v4021_v30, %s4150_s8 }
0x12ce   :  { %v4023_v26 = vpop.eup %4022 }
0x12cf   :  { %2508 = vrot.lane.b32.xlu0 %v4023_v26, %s4150_s8 }
0x12df   :  { %v2438_v54 = vpop.xlane.xlu0 %2437 }
0x12e0   :  { %v2447_v34 = vadd.f32 %v4825_v58, %v2438_v54 }
0x12e2   :  { %4024 = vtanh.f32 %v2447_v34 }
0x12e3   :  { %v2465_v57 = vpop.xlane.xlu0 %2464 }
0x12e4   :  { %v2473_v60 = vadd.f32 %v2465_v57, %v4825_v58 }
0x12e6   :  { %v2478_v18 = vsub.f32 %v4715_v45, %v2473_v60 }
0x12e7   :  { %2470 = vadd.xlane.f32.xlu1 %v2461_v10  ;;  %v2472_v10 = vadd.f32 %v2463_v48, %v4825_v58  ;;  %v2469_v22 = vpop.xlane.xlu0 %2468 }
0x12e9   :  { %v2477_v20 = vsub.f32 %v4709_v28, %v2472_v10  ;;  %v2475_v28 = vadd.f32 %v2469_v22, %v4825_v58 }
0x12eb   :  { %v2480_v45 = vsub.f32 %v4726_v39, %v2475_v28  ;;  %v4886_v39 = vld [vmem:[#allocation2 + $0x40] sm:$0xff] }
0x12ec   :  { %v2557_v32 = vrot.slane %v4886_v39, %v4232_v17  ;;  %v2566_v56 = vrot.slane %v4886_v39, %v4237_v19 }
0x12ef   :  { %v4025_v23 = vpop.eup %4024 }
0x12f0   :  { %v2486_v29 = vsub.f32 0.0, %v4025_v23  ;;  %v4849_v37 = vadd.f32 %v4025_v23, %v4769_v35  ;;  %v3856_v35 = vld [vmem:[#allocation5 + $0x218] sm:$0xff]  }
0x12f1   :  { %3712 = vmatpush3.bf16.msra.mxu0 %v3856_v35 }
0x12f2   :  { %v2495_v49 = vmul.f32 1.442695, %v2486_v29  ;;  %3713 = vmatprep.subr.bf16.mxu0 %v4146_v1 }
0x12f4   :  { %4026 = vpow2.f32 %v2495_v49 }
0x12f5   :  { %3714 = vmatpush3.bf16.msra.mxu0 %v3857_v8 }
0x12f6   :  { %3715 = vmatprep.subr.bf16.mxu0 %v4146_v1 }
0x12f9   :  { %3716 = vmatpush3.bf16.msra.mxu0 %v3858_v13  ;;  %v2610_v13 = vrot.slane %v4886_v39, %v4250_v50 }
0x12fa   :  { %3717 = vmatprep.subr.bf16.mxu0 %v4146_v1 }
0x12fd   :  { %3718 = vmatpush3.bf16.msra.mxu0 %v3859_v36  ;;  %v2766_v36 = vrot.slane %v4886_v39, %v4255_v52 }
0x1301   :  { %v4027_v6 = vpop.eup %4026 }
0x1302   :  { %2510 = vrot.lane.b32.xlu0 %v4027_v6, %s4150_s8 }
0x1335   :  { %v2503_v5 = vpop.permute.xlu1 %2502 }
0x1336   :  { %v4860_v11 = vmul.f32 %v2503_v5, %v2477_v20 }
0x1338   :  { %2531 = vperm.xlu0 %3784, %v4860_v11  }
0x1339   :  { %v2505_v38 = vpop.permute.xlu0 %2504 }
0x133a   :  { %v4866_v62 = vmul.f32 %v2505_v38, %v2478_v18 }
0x133c   :  { %2536 = vperm.xlu0 %3784, %v4866_v62  }
0x133d   :  { %v2507_v14 = vpop.permute.xlu0 %2506 }
0x133e   :  { %v4872_v61 = vmul.f32 %v2507_v14, %v2479_v33 }
0x1340   :  { %2541 = vperm.xlu0 %3784, %v4872_v61  }
0x1341   :  { %v2509_v7 = vpop.permute.xlu0 %2508 }
0x1342   :  { %v4876_v21 = vmul.f32 %v2509_v7, %v2480_v45 }
0x1344   :  { %2546 = vperm.xlu0 %3784, %v4876_v21  }
0x1348   :  { %3786 = vset.pattern.permute.xlu0 %v4148_v41 }
0x1370   :  { %v2471_v25 = vpop.xlane.xlu1 %2470 }
0x1371   :  { %v2476_v55 = vadd.f32 %v2471_v25, %v4825_v58 }
0x1373   :  { %v2481_v2 = vsub.f32 %v4731_v16, %v2476_v55 }
0x1374   :  { %v2511_v0 = vpop.permute.xlu0 %2510 }
0x1375   :  { %v4882_v9 = vmul.f32 %v2511_v0, %v2481_v2 }
0x1377   :  { %2551 = vperm.xlu1 %3785, %v4882_v9  }
0x137b   :  { %3787 = vset.pattern.permute.xlu1 %v4148_v41 }
0x13b3   :  { %v2532_v30 = vpop.permute.xlu0 %2531 }
0x13b4   :  { %v2558_v26 = vmul.f32 %v2557_v32, %v2532_v30 }
0x13b6   :  { %v2567_v58 = vadd.f32 %v2566_v56, %v2558_v26 }
0x13b7   :  { %v2537_v54 = vpop.permute.xlu0 %2536 }
0x13b8   :  { %v2559_v16 = vmul.f32 %v2557_v32, %v2537_v54  ;;  %v2577_v34 = vmul.f32 0.01, %v2567_v58  ;;  %vm2572_vm6 = vcmp.gt.f32.partialorder %v2567_v58, 0.0 }
0x13ba   :  { %v2568_v23 = vadd.f32 %v2566_v56, %v2559_v16  ;;  %v2582_v59 = vsel %vm2572_vm6, %v2567_v58, %v2577_v34 }
0x13bb   :  { %v2542_v29 = vpop.permute.xlu0 %2541 }
0x13bc   :  { %vm2573_vm7 = vcmp.gt.f32.partialorder %v2568_v23, 0.0  ;;  %v2578_v49 = vmul.f32 0.01, %v2568_v23  ;;  %v2560_v41 = vmul.f32 %v2557_v32, %v2542_v29 }
0x13be   :  { %v2583_v43 = vsel %vm2573_vm7, %v2568_v23, %v2578_v49  ;;  %v2569_v15 = vadd.f32 %v2566_v56, %v2560_v41  ;;  %v2733_v23 = vrot.slane %v4886_v39, %v4260_v12 }
0x13bf   :  { %v2587_v6 = vpack.c.bf16 %v2583_v43, %v2582_v59  ;;  %v2547_v24 = vpop.permute.xlu0 %2546 }
0x13c0   :  { %v2561_v35 = vmul.f32 %v2557_v32, %v2547_v24  ;;  %v2579_v48 = vmul.f32 0.01, %v2569_v15  ;;  %vm2574_vm8 = vcmp.gt.f32.partialorder %v2569_v15, 0.0 }
0x13c1   :  { %3720 = vmatmul.mubr.bf16.vlgmr.msra.gmra.mxu0 %v2587_v6 }
0x13c2   :  { %v2570_v57 = vadd.f32 %v2566_v56, %v2561_v35  ;;  %3723 = vmatprep.mubr.msk.bf16.mxu0 %vm4147_vm0, %v4146_v1  ;;  %v2584_v27 = vsel %vm2574_vm8, %v2569_v15, %v2579_v48 }
0x13c4   :  { %vm2575_vm9 = vcmp.gt.f32.partialorder %v2570_v57, 0.0  ;;  %v2580_v10 = vmul.f32 0.01, %v2570_v57 }
0x13c6   :  { %v2585_v60 = vsel %vm2575_vm9, %v2570_v57, %v2580_v10 }
0x13c7   :  { %v2588_v20 = vpack.c.bf16 %v2585_v60, %v2584_v27 }
0x13c9   :  { %3724 = vmatmul.mubr.bf16.gmra.mxu0 %v2588_v20 }
0x13ca   :  { %3727 = vmatprep.mubr.msk.bf16.mxu0 %vm4147_vm0, %v4146_v1 }
0x13f2   :  { %v2552_v22 = vpop.permute.xlu1 %2551 }
0x13f3   :  { %v2562_v5 = vmul.f32 %v2557_v32, %v2552_v22 }
0x13f5   :  { %v2571_v8 = vadd.f32 %v2566_v56, %v2562_v5 }
0x13f7   :  { %v2581_v46 = vmul.f32 0.01, %v2571_v8  ;;  %vm2576_vm10 = vcmp.gt.f32.partialorder %v2571_v8, 0.0 }
0x13f9   :  { %v2586_v18 = vsel %vm2576_vm10, %v2571_v8, %v2581_v46  ;;  %vm3237_vm10 = vcmask 7168  }
0x13fa   :  { %v2589_v38 = vpack.c.bf16 %v2586_v18, %v2586_v18 }
0x13fc   :  { %3728 = vmatmul.mubr.bf16.gmra.mxu0 %v2589_v38  ;;  %v2752_v38 = vrot.slane %v4886_v39, %v4265_v40 }
0x1481   :  { %v2693_v28 = vpop.f32.mrf.mxu0 }
0x1482   :  { %v2694_v33 = vadd.f32 %v2693_v28, %v2610_v13 }
0x1483   :  { %v3721_v14 = vpop.f32.mrf.mxu0 }
0x1484   :  { %vm2715_vm11 = vcmp.gt.f32.partialorder %v2694_v33, 0.0  ;;  %v2720_v45 = vmul.f32 0.01, %v2694_v33 }
0x1485   :  { %v2696_v7 = vpop.f32.mrf.mxu0 }
0x1486   :  { %v2697_v25 = vadd.f32 %v2696_v7, %v2610_v13  ;;  %v2725_v55 = vsel %vm2715_vm11, %v2694_v33, %v2720_v45  ;;  %vm3243_vm11 = vcmask 15360  }
0x1487   :  { %v3722_v2 = vpop.f32.mrf.mxu0  ;;  %v2767_v0 = vmul.f32 %v2766_v36, %v2725_v55  ;;  %v2734_v8 = vmul.f32 %v2733_v23, %v2725_v55 }
0x1488   :  { %vm2716_vm12 = vcmp.gt.f32.partialorder %v2697_v25, 0.0  ;;  %v2721_v32 = vmul.f32 0.01, %v2697_v25 }
0x1489   :  { %2772 = vadd.xlane.f32.xlu0 %v2767_v0  ;;  %v2701_v56 = vpop.f32.mrf.mxu0 }
0x148a   :  { %v2702_v30 = vadd.f32 %v2701_v56, %v2610_v13  ;;  %v2726_v26 = vsel %vm2716_vm12, %v2697_v25, %v2721_v32  ;;  %v3860_v32 = vld [vmem:[#allocation5 + $0x278] sm:$0xff]   ;;  %v3861_v56 = vld [vmem:[#allocation5 + $0x270] sm:$0xff]   ;;  %vm3249_vm12 = vcmask 23552  }
0x148b   :  { %v3725_v58 = vpop.f32.mrf.mxu0  ;;  %v2768_v54 = vmul.f32 %v2766_v36, %v2726_v26  ;;  %v2735_v46 = vmul.f32 %v2733_v23, %v2726_v26  ;;  %3732 = vmatpush3.bf16.msra.mxu1 %v3860_v32 }
0x148c   :  { %vm2717_vm13 = vcmp.gt.f32.partialorder %v2702_v30, 0.0  ;;  %v2722_v16 = vmul.f32 0.01, %v2702_v30  ;;  %3733 = vmatprep.subr.bf16.mxu1 %v4146_v1  ;;  %v3862_v58 = vld [vmem:[#allocation5 + $0x268] sm:$0xff]  }
0x148d   :  { %2774 = vadd.xlane.f32.xlu1 %v2768_v54  ;;  %v2704_v34 = vpop.f32.mrf.mxu0 }
0x148e   :  { %v2705_v29 = vadd.f32 %v2704_v34, %v2610_v13  ;;  %v2727_v49 = vsel %vm2717_vm13, %v2702_v30, %v2722_v16  ;;  %vm3255_vm13 = vcmask 31744  }
0x148f   :  { %v3726_v41 = vpop.f32.mrf.mxu0  ;;  %v2769_v59 = vmul.f32 %v2766_v36, %v2727_v49  ;;  %v2736_v43 = vmul.f32 %v2733_v23, %v2727_v49  ;;  %3734 = vmatpush3.bf16.msra.mxu1 %v3861_v56  ;;  %v3864_v49 = vld [vmem:[#allocation5 + $0x258] sm:$0xff]  }
0x1490   :  { %vm2718_vm14 = vcmp.gt.f32.partialorder %v2705_v29, 0.0  ;;  %v2723_v15 = vmul.f32 0.01, %v2705_v29  ;;  %3735 = vmatprep.subr.bf16.mxu1 %v4146_v1 }
0x1491   :  { %2776 = vadd.xlane.f32.xlu0 %v2769_v59  ;;  %2743 = vadd.xlane.f32.xlu1 %v2736_v43 }
0x1492   :  { %v2728_v6 = vsel %vm2718_vm14, %v2705_v29, %v2723_v15 }
0x1493   :  { %v2770_v24 = vmul.f32 %v2766_v36, %v2728_v6  ;;  %v2737_v18 = vmul.f32 %v2733_v23, %v2728_v6  ;;  %3736 = vmatpush3.bf16.msra.mxu1 %v3862_v58 }
0x1494   :  { %3737 = vmatprep.subr.bf16.mxu1 %v4146_v1 }
0x1495   :  { %2778 = vadd.xlane.f32.xlu0 %v2770_v24 }
0x14bc   :  { %v2709_v35 = vpop.f32.mrf.mxu0 }
0x14bd   :  { %v2710_v48 = vadd.f32 %v2709_v35, %v2610_v13 }
0x14be   :  { %v3729_v57 = vpop.f32.mrf.mxu0 }
0x14bf   :  { %vm2719_vm15 = vcmp.gt.f32.partialorder %v2710_v48, 0.0  ;;  %v2724_v10 = vmul.f32 0.01, %v2710_v48 }
0x14c0   :  { %v2712_v27 = vpop.f32.mrf.mxu0 }
0x14c1   :  { %v2729_v60 = vsel %vm2719_vm15, %v2710_v48, %v2724_v10 }
0x14c2   :  { %v3730_v20 = vpop.f32.mrf.mxu0  ;;  %v2771_v22 = vmul.f32 %v2766_v36, %v2729_v60  ;;  %v2738_v5 = vmul.f32 %v2733_v23, %v2729_v60 }
0x14c4   :  { %2780 = vadd.xlane.f32.xlu0 %v2771_v22  ;;  %2747 = vadd.xlane.f32.xlu1 %v2738_v5 }
0x14c8   :  { %2739 = vadd.xlane.f32.xlu0 %v2734_v8 }
0x14cc   :  { %2741 = vadd.xlane.f32.xlu0 %v2735_v46 }
0x14d0   :  { %2745 = vadd.xlane.f32.xlu0 %v2737_v18 }
0x1512   :  { %v2773_v13 = vpop.xlane.xlu0 %2772 }
0x1513   :  { %v2782_v28 = vadd.f32 %v2773_v13, %v2752_v38  ;;  %v3865_v13 = vld [vmem:[#allocation5 + $0x250] sm:$0xff]  }
0x1515   :  { %2792 = vrot.lane.b32.xlu0 %v2782_v28, %s4149_s7 }
0x1516   :  { %v2775_v33 = vpop.xlane.xlu1 %2774 }
0x1517   :  { %v2783_v14 = vadd.f32 %v2775_v33, %v2752_v38 }
0x1519   :  { %2794 = vrot.lane.b32.xlu1 %v2783_v14, %s4149_s7 }
0x151a   :  { %v2744_v36 = vpop.xlane.xlu1 %2743  ;;  %v2777_v45 = vpop.xlane.xlu0 %2776 }
0x151b   :  { %v2755_v7 = vadd.f32 %v2752_v38, %v2744_v36  ;;  %v2784_v25 = vadd.f32 %v2777_v45, %v2752_v38  ;;  %v3866_v36 = vld [vmem:[#allocation5 + $0x248] sm:$0xff]  }
0x151d   :  { %4028 = vtanh.f32 %v2755_v7  ;;  %2796 = vrot.lane.b32.xlu1 %v2784_v25, %s4149_s7 }
0x151e   :  { %v2779_v55 = vpop.xlane.xlu0 %2778 }
0x151f   :  { %v2785_v2 = vadd.f32 %v2779_v55, %v2752_v38  ;;  %v3867_v55 = vld [vmem:[#allocation5 + $0x240] sm:$0xff]  }
0x1521   :  { %2798 = vrot.lane.b32.xlu0 %v2785_v2, %s4149_s7 }
0x152a   :  { %v4029_v39 = vpop.eup %4028 }
0x152b   :  { %v4909_v0 = vadd.f32 %v4029_v39, %v4838_v4  ;;  %v3863_v4 = vld [vmem:[#allocation5 + $0x260] sm:$0xff]   ;;  %v2814_v5 = vsub.f32 0.0, %v4029_v39 }
0x152c   :  { %3738 = vmatpush3.bf16.msra.mxu1 %v3863_v4 }
0x152d   :  { %3739 = vmatprep.subr.bf16.mxu1 %v4146_v1 }
0x1530   :  { %3740 = vmatpush3.bf16.msra.mxu1 %v3864_v49 }
0x1531   :  { %3741 = vmatprep.subr.bf16.mxu1 %v4146_v1 }
0x1534   :  { %3742 = vmatpush3.bf16.msra.mxu1 %v3865_v13 }
0x1535   :  { %3743 = vmatprep.subr.bf16.mxu1 %v4146_v1 }
0x1538   :  { %3744 = vmatpush3.bf16.msra.mxu1 %v3866_v36 }
0x1539   :  { %3745 = vmatprep.subr.bf16.mxu1 %v4146_v1 }
0x153c   :  { %3746 = vmatpush3.bf16.msra.mxu1 %v3867_v55 }
0x154d   :  { %v2748_v30 = vpop.xlane.xlu1 %2747  ;;  %v2781_v26 = vpop.xlane.xlu0 %2780 }
0x154e   :  { %v2757_v54 = vadd.f32 %v2752_v38, %v2748_v30  ;;  %v2786_v16 = vadd.f32 %v2781_v26, %v2752_v38 }
0x1550   :  { %4030 = vtanh.f32 %v2757_v54  ;;  %2800 = vrot.lane.b32.xlu1 %v2786_v16, %s4149_s7 }
0x1551   :  { %v2740_v34 = vpop.xlane.xlu0 %2739 }
0x1552   :  { %v2753_v23 = vadd.f32 %v2752_v38, %v2740_v34  ;;  %v4951_v34 = vld [vmem:[#allocation2 + $0x48] sm:$0xff] }
0x1553   :  { %v2876_v4 = vrot.slane %v4951_v34, %v4237_v19  ;;  %v2920_v36 = vrot.slane %v4951_v34, %v4250_v50  ;;  %v3043_v55 = vrot.slane %v4951_v34, %v4260_v12 }
0x1554   :  { %4032 = vtanh.f32 %v2753_v23 }
0x1555   :  { %v2742_v29 = vpop.xlane.xlu0 %2741 }
0x1556   :  { %v2754_v41 = vadd.f32 %v2752_v38, %v2742_v29 }
0x1558   :  { %4034 = vtanh.f32 %v2754_v41 }
0x1559   :  { %v2746_v59 = vpop.xlane.xlu0 %2745 }
0x155a   :  { %v2756_v43 = vadd.f32 %v2752_v38, %v2746_v59 }
0x155c   :  { %4036 = vtanh.f32 %v2756_v43 }
0x155d   :  { %v4031_v15 = vpop.eup %4030 }
0x155e   :  { %v4918_v6 = vadd.f32 %v4031_v15, %v4849_v37  ;;  %v2821_v37 = vmul.f32 1.442695, %v2814_v5 }
0x1561   :  { %v4033_v24 = vpop.eup %4032 }
0x1562   :  { %v4921_v35 = vadd.f32 %v4033_v24, %v4832_v63  ;;  %v2812_v60 = vsub.f32 0.0, %v4033_v24 }
0x1564   :  { %v2817_v20 = vmul.f32 1.442695, %v2812_v60 }
0x1565   :  { %v4035_v48 = vpop.eup %4034 }
0x1566   :  { %v4924_v57 = vadd.f32 %v4035_v48, %v4835_v42  ;;  %v2813_v22 = vsub.f32 0.0, %v4035_v48  ;;  %4038 = vpow2.f32 %v2817_v20 }
0x1568   :  { %v2819_v8 = vmul.f32 1.442695, %v2813_v22 }
0x1569   :  { %v4037_v10 = vpop.eup %4036 }
0x156a   :  { %v4927_v27 = vadd.f32 %v4037_v10, %v4841_v47  ;;  %4040 = vpow2.f32 %v2819_v8  ;;  %v2815_v46 = vsub.f32 0.0, %v4037_v10 }
0x156b   :  { %4042 = vpow2.f32 %v2821_v37 }
0x156c   :  { %v2823_v63 = vmul.f32 1.442695, %v2815_v46 }
0x156e   :  { %4044 = vpow2.f32 %v2823_v63 }
0x1573   :  { %v4039_v38 = vpop.eup %4038 }
0x1577   :  { %v4041_v14 = vpop.eup %4040 }
0x1578   :  { %v4043_v25 = vpop.eup %4042 }
0x157b   :  { %v4045_v32 = vpop.eup %4044 }
0x1587   :  { %v2793_v18 = vpop.permute.xlu0 %2792 }
0x1588   :  { %v2807_v42 = vsub.f32 %v4781_v51, %v2793_v18 }
0x158a   :  { %v4930_v28 = vmul.f32 %v4039_v38, %v2807_v42 }
0x158b   :  { %v2795_v47 = vpop.permute.xlu1 %2794 }
0x158c   :  { %v2808_v33 = vsub.f32 %v4786_v44, %v2795_v47  ;;  %2841 = vperm.xlu0 %3786, %v4930_v28  }
0x158e   :  { %v4935_v45 = vmul.f32 %v4041_v14, %v2808_v33 }
0x158f   :  { %v2797_v7 = vpop.permute.xlu1 %2796 }
0x1590   :  { %v2809_v51 = vsub.f32 %v4791_v31, %v2797_v7  ;;  %2846 = vperm.xlu1 %3787, %v4935_v45   ;;  %v2816_v31 = vsub.f32 0.0, %v4031_v15 }
0x1592   :  { %v4940_v2 = vmul.f32 %v4043_v25, %v2809_v51  ;;  %v2825_v30 = vmul.f32 1.442695, %v2816_v31 }
0x1593   :  { %v2799_v44 = vpop.permute.xlu0 %2798 }
0x1594   :  { %v2810_v39 = vsub.f32 %v4796_v53, %v2799_v44  ;;  %2851 = vperm.xlu1 %3787, %v4940_v2   ;;  %4046 = vpow2.f32 %v2825_v30  ;;  %v2867_v53 = vrot.slane %v4951_v34, %v4232_v17 }
0x1596   :  { %v4944_v56 = vmul.f32 %v4045_v32, %v2810_v39 }
0x1598   :  { %2856 = vperm.xlu0 %3786, %v4944_v56  }
0x15a1   :  { %v4047_v54 = vpop.eup %4046 }
0x15c2   :  { %v2801_v26 = vpop.permute.xlu1 %2800 }
0x15c3   :  { %v2811_v58 = vsub.f32 %v4801_v3, %v2801_v26 }
0x15c5   :  { %v4948_v16 = vmul.f32 %v4047_v54, %v2811_v58 }
0x15c7   :  { %2861 = vperm.xlu1 %3787, %v4948_v16  }
0x1607   :  { %v2842_v23 = vpop.permute.xlu0 %2841 }
0x1608   :  { %v2868_v29 = vmul.f32 %v2867_v53, %v2842_v23 }
0x160a   :  { %v2877_v49 = vadd.f32 %v2876_v4, %v2868_v29 }
0x160b   :  { %v2847_v41 = vpop.permute.xlu1 %2846 }
0x160c   :  { %v2869_v59 = vmul.f32 %v2867_v53, %v2847_v41  ;;  %v2887_v43 = vmul.f32 0.01, %v2877_v49  ;;  %vm2882_vm1 = vcmp.gt.f32.partialorder %v2877_v49, 0.0 }
0x160e   :  { %v2878_v3 = vadd.f32 %v2876_v4, %v2869_v59  ;;  %v2892_v10 = vsel %vm2882_vm1, %v2877_v49, %v2887_v43 }
0x160f   :  { %v2852_v15 = vpop.permute.xlu1 %2851 }
0x1610   :  { %vm2883_vm2 = vcmp.gt.f32.partialorder %v2878_v3, 0.0  ;;  %v2888_v24 = vmul.f32 0.01, %v2878_v3  ;;  %v2870_v48 = vmul.f32 %v2867_v53, %v2852_v15 }
0x1612   :  { %v2893_v60 = vsel %vm2883_vm2, %v2878_v3, %v2888_v24  ;;  %v2879_v20 = vadd.f32 %v2876_v4, %v2870_v48  ;;  %v3076_v24 = vrot.slane %v4951_v34, %v4255_v52 }
0x1613   :  { %v2897_v22 = vpack.c.bf16 %v2893_v60, %v2892_v10  ;;  %v2857_v17 = vpop.permute.xlu0 %2856 }
0x1614   :  { %v2871_v5 = vmul.f32 %v2867_v53, %v2857_v17  ;;  %v2889_v19 = vmul.f32 0.01, %v2879_v20  ;;  %vm2884_vm3 = vcmp.gt.f32.partialorder %v2879_v20, 0.0 }
0x1615   :  { %3748 = vmatmul.mubr.bf16.vlgmr.msra.gmra.mxu1 %v2897_v22 }
0x1616   :  { %v2880_v8 = vadd.f32 %v2876_v4, %v2871_v5  ;;  %3751 = vmatprep.mubr.msk.bf16.mxu1 %vm4147_vm0, %v4146_v1  ;;  %v2894_v46 = vsel %vm2884_vm3, %v2879_v20, %v2889_v19 }
0x1618   :  { %vm2885_vm4 = vcmp.gt.f32.partialorder %v2880_v8, 0.0  ;;  %v2890_v37 = vmul.f32 0.01, %v2880_v8 }
0x161a   :  { %v2895_v63 = vsel %vm2885_vm4, %v2880_v8, %v2890_v37 }
0x161b   :  { %v2898_v18 = vpack.c.bf16 %v2895_v63, %v2894_v46 }
0x161d   :  { %3752 = vmatmul.mubr.bf16.gmra.mxu1 %v2898_v18  ;;  %v4969_v18 = vrot.slane %v4951_v34, %v4265_v40 }
0x161e   :  { %3755 = vmatprep.mubr.msk.bf16.mxu1 %vm4147_vm0, %v4146_v1 }
0x1642   :  { %v2862_v42 = vpop.permute.xlu1 %2861 }
0x1643   :  { %v2872_v38 = vmul.f32 %v2867_v53, %v2862_v42 }
0x1645   :  { %v2881_v13 = vadd.f32 %v2876_v4, %v2872_v38 }
0x1647   :  { %v2891_v47 = vmul.f32 0.01, %v2881_v13  ;;  %vm2886_vm5 = vcmp.gt.f32.partialorder %v2881_v13, 0.0 }
0x1649   :  { %v2896_v33 = vsel %vm2886_vm5, %v2881_v13, %v2891_v47 }
0x164a   :  { %v2899_v14 = vpack.c.bf16 %v2896_v33, %v2896_v33 }
0x164c   :  { %3756 = vmatmul.mubr.bf16.gmra.mxu1 %v2899_v14 }
0x16d5   :  { %v3003_v7 = vpop.f32.mrf.mxu1 }
0x16d6   :  { %v3004_v51 = vadd.f32 %v3003_v7, %v2920_v36 }
0x16d7   :  { %v3749_v25 = vpop.f32.mrf.mxu1 }
0x16d8   :  { %vm3025_vm6 = vcmp.gt.f32.partialorder %v3004_v51, 0.0  ;;  %v3030_v44 = vmul.f32 0.01, %v3004_v51 }
0x16d9   :  { %v3006_v1 = vpop.f32.mrf.mxu1 }
0x16da   :  { %v3007_v39 = vadd.f32 %v3006_v1, %v2920_v36  ;;  %v3035_v32 = vsel %vm3025_vm6, %v3004_v51, %v3030_v44 }
0x16db   :  { %v3750_v31 = vpop.f32.mrf.mxu1  ;;  %v3044_v30 = vmul.f32 %v3043_v55, %v3035_v32  ;;  %v3077_v48 = vmul.f32 %v3076_v24, %v3035_v32 }
0x16dc   :  { %vm3026_vm0 = vcmp.gt.f32.partialorder %v3007_v39, 0.0  ;;  %v3031_v26 = vmul.f32 0.01, %v3007_v39 }
0x16dd   :  { %3049 = vadd.xlane.f32.xlu0 %v3044_v30  ;;  %v3011_v58 = vpop.f32.mrf.mxu1 }
0x16de   :  { %v3012_v54 = vadd.f32 %v3011_v58, %v2920_v36  ;;  %v3036_v53 = vsel %vm3026_vm0, %v3007_v39, %v3031_v26 }
0x16df   :  { %v3753_v50 = vpop.f32.mrf.mxu1  ;;  %v3045_v4 = vmul.f32 %v3043_v55, %v3036_v53  ;;  %v3078_v63 = vmul.f32 %v3076_v24, %v3036_v53 }
0x16e0   :  { %vm3027_vm7 = vcmp.gt.f32.partialorder %v3012_v54, 0.0  ;;  %v3032_v23 = vmul.f32 0.01, %v3012_v54 }
0x16e1   :  { %3051 = vadd.xlane.f32.xlu1 %v3045_v4  ;;  %v3014_v29 = vpop.f32.mrf.mxu1 }
0x16e2   :  { %v3015_v12 = vadd.f32 %v3014_v29, %v2920_v36  ;;  %v3037_v49 = vsel %vm3027_vm7, %v3012_v54, %v3032_v23 }
0x16e3   :  { %v3754_v41 = vpop.f32.mrf.mxu1  ;;  %v3046_v59 = vmul.f32 %v3043_v55, %v3037_v49  ;;  %v3079_v10 = vmul.f32 %v3076_v24, %v3037_v49 }
0x16e4   :  { %vm3028_vm8 = vcmp.gt.f32.partialorder %v3015_v12, 0.0  ;;  %v3033_v43 = vmul.f32 0.01, %v3015_v12 }
0x16e5   :  { %3053 = vadd.xlane.f32.xlu0 %v3046_v59 }
0x16e6   :  { %v3038_v3 = vsel %vm3028_vm8, %v3015_v12, %v3033_v43 }
0x16e7   :  { %v3047_v15 = vmul.f32 %v3043_v55, %v3038_v3  ;;  %v3080_v52 = vmul.f32 %v3076_v24, %v3038_v3 }
0x16e9   :  { %3055 = vadd.xlane.f32.xlu0 %v3047_v15 }
0x16ed   :  { %3082 = vadd.xlane.f32.xlu0 %v3077_v48 }
0x16f1   :  { %3086 = vadd.xlane.f32.xlu0 %v3079_v10 }
0x170c   :  { %v3019_v60 = vpop.f32.mrf.mxu1 }
0x170d   :  { %v3020_v20 = vadd.f32 %v3019_v60, %v2920_v36 }
0x170e   :  { %v3757_v22 = vpop.f32.mrf.mxu1 }
0x170f   :  { %vm3029_vm9 = vcmp.gt.f32.partialorder %v3020_v20, 0.0  ;;  %v3034_v17 = vmul.f32 0.01, %v3020_v20 }
0x1710   :  { %v3022_v5 = vpop.f32.mrf.mxu1 }
0x1711   :  { %v3039_v19 = vsel %vm3029_vm9, %v3020_v20, %v3034_v17 }
0x1712   :  { %v3758_v8 = vpop.f32.mrf.mxu1  ;;  %v3081_v37 = vmul.f32 %v3076_v24, %v3039_v19  ;;  %v3048_v46 = vmul.f32 %v3043_v55, %v3039_v19 }
0x1714   :  { %3090 = vadd.xlane.f32.xlu0 %v3081_v37  ;;  %3057 = vadd.xlane.f32.xlu1 %v3048_v46 }
0x1718   :  { %3084 = vadd.xlane.f32.xlu1 %v3078_v63 }
0x171c   :  { %3088 = vadd.xlane.f32.xlu1 %v3080_v52 }
0x1766   :  { %v3050_v42 = vpop.xlane.xlu0 %3049 }
0x1767   :  { %v3063_v38 = vadd.f32 %v4969_v18, %v3050_v42 }
0x1769   :  { %4048 = vtanh.f32 %v3063_v38 }
0x176a   :  { %v3052_v13 = vpop.xlane.xlu1 %3051 }
0x176b   :  { %v3064_v47 = vadd.f32 %v4969_v18, %v3052_v13 }
0x176d   :  { %4050 = vtanh.f32 %v3064_v47 }
0x176e   :  { %v3054_v33 = vpop.xlane.xlu0 %3053 }
0x176f   :  { %v3065_v14 = vadd.f32 %v4969_v18, %v3054_v33 }
0x1771   :  { %4052 = vtanh.f32 %v3065_v14 }
0x1772   :  { %v3056_v36 = vpop.xlane.xlu0 %3055 }
0x1773   :  { %v3066_v7 = vadd.f32 %v4969_v18, %v3056_v36 }
0x1775   :  { %4054 = vtanh.f32 %v3066_v7 }
0x1776   :  { %v4049_v51 = vpop.eup %4048  ;;  %v3083_v43 = vpop.xlane.xlu0 %3082 }
0x1777   :  { %v3102_v25 = vsub.f32 0.0, %v4049_v51  ;;  %v4976_v40 = vadd.f32 %v4049_v51, %v4921_v35  ;;  %v3092_v15 = vadd.f32 %v3083_v43, %v4969_v18 }
0x1779   :  { %v3107_v34 = vmul.f32 1.442695, %v3102_v25  ;;  %v3097_v60 = vsub.f32 %v4860_v11, %v3092_v15 }
0x177a   :  { %v4051_v55 = vpop.eup %4050  ;;  %v3087_v24 = vpop.xlane.xlu0 %3086 }
0x177b   :  { %4056 = vpow2.f32 %v3107_v34  ;;  %v3103_v44 = vsub.f32 0.0, %v4051_v55  ;;  %v4979_v1 = vadd.f32 %v4051_v55, %v4924_v57 }
0x177d   :  { %v3109_v39 = vmul.f32 1.442695, %v3103_v44  ;;  %v3152_v44 = vmul.f32 %v4930_v28, %v4930_v28 }
0x177e   :  { %v4053_v32 = vpop.eup %4052 }
0x177f   :  { %4058 = vpow2.f32 %v3109_v39  ;;  %v3104_v31 = vsub.f32 0.0, %v4053_v32  ;;  %v3144_v30 = vadd.f32 %v4053_v32, %v4909_v0  ;;  %v3153_v32 = vmul.f32 %v4935_v45, %v4935_v45 }
0x1781   :  { %v3111_v26 = vmul.f32 1.442695, %v3104_v31  ;;  %v3149_v14 = vsub.f32 0.0, %v3144_v30 }
0x1782   :  { %v4055_v58 = vpop.eup %4054 }
0x1783   :  { %4060 = vpow2.f32 %v3111_v26  ;;  %v3105_v54 = vsub.f32 0.0, %v4055_v58  ;;  %v4983_v35 = vadd.f32 %v4055_v58, %v4927_v27 }
0x1785   :  { %v3113_v53 = vmul.f32 1.442695, %v3105_v54  ;;  %v3150_v55 = vsub.f32 0.0, %v4983_v35 }
0x1787   :  { %4062 = vpow2.f32 %v3113_v53 }
0x1788   :  { %v4057_v50 = vpop.eup %4056 }
0x1789   :  { %3122 = vrot.lane.b32.xlu1 %v4057_v50, %s4150_s8 }
0x178c   :  { %v4059_v57 = vpop.eup %4058 }
0x178d   :  { %3124 = vrot.lane.b32.xlu0 %v4059_v57, %s4150_s8  ;;  %v3155_v57 = vmul.f32 %v4944_v56, %v4944_v56 }
0x1790   :  { %v4061_v4 = vpop.eup %4060 }
0x1791   :  { %3126 = vrot.lane.b32.xlu1 %v4061_v4, %s4150_s8 }
0x1794   :  { %v4063_v23 = vpop.eup %4062 }
0x1795   :  { %3128 = vrot.lane.b32.xlu1 %v4063_v23, %s4150_s8 }
0x179d   :  { %v3058_v0 = vpop.xlane.xlu1 %3057  ;;  %v3091_v20 = vpop.xlane.xlu0 %3090 }
0x179e   :  { %v3067_v29 = vadd.f32 %v4969_v18, %v3058_v0 }
0x17a0   :  { %4064 = vtanh.f32 %v3067_v29 }
0x17a1   :  { %v3085_v3 = vpop.xlane.xlu1 %3084 }
0x17a2   :  { %v3093_v10 = vadd.f32 %v3085_v3, %v4969_v18 }
0x17a4   :  { %v3098_v19 = vsub.f32 %v4866_v62, %v3093_v10 }
0x17a5   :  { %v3089_v48 = vpop.xlane.xlu1 %3088 }
0x17a6   :  { %v3095_v46 = vadd.f32 %v3089_v48, %v4969_v18 }
0x17a8   :  { %v3100_v38 = vsub.f32 %v4876_v21, %v3095_v46  ;;  %v3096_v21 = vadd.f32 %v3091_v20, %v4969_v18 }
0x17aa   :  { %v3101_v7 = vsub.f32 %v4882_v9, %v3096_v21 }
0x17ad   :  { %v4065_v27 = vpop.eup %4064 }
0x17ae   :  { %v3106_v12 = vsub.f32 0.0, %v4065_v27  ;;  %v3146_v49 = vadd.f32 %v4065_v27, %v4918_v6  ;;  %v3094_v6 = vadd.f32 %v3087_v24, %v4969_v18 }
0x17b0   :  { %v3115_v41 = vmul.f32 1.442695, %v3106_v12  ;;  %v3099_v63 = vsub.f32 %v4872_v61, %v3094_v6  ;;  %v3147_v61 = vsub.f32 0.0, %v4976_v40  ;;  %v3151_v36 = vsub.f32 0.0, %v3146_v49 }
0x17b1   :  { %v3148_v40 = vsub.f32 0.0, %v4979_v1  ;;  %v3154_v1 = vmul.f32 %v4940_v2, %v4940_v2  ;;  %v3156_v12 = vmul.f32 %v4948_v16, %v4948_v16 }
0x17b2   :  { %4066 = vpow2.f32 %v3115_v41 }
0x17bf   :  { %v4067_v59 = vpop.eup %4066 }
0x17c0   :  { %3130 = vrot.lane.b32.xlu0 %v4067_v59, %s4150_s8 }
0x17fb   :  { %v3123_v22 = vpop.permute.xlu1 %3122 }
0x17fc   :  { %v4995_v17 = vmul.f32 %v3123_v22, %v3097_v60 }
0x17fe   :  { %v3157_v5 = vmul.f32 %v4995_v17, %v4995_v17  ;;  %v3238_v10 = vsel %vm3237_vm10, %v4930_v28, %v4995_v17 }
0x17ff   :  { %v3125_v8 = vpop.permute.xlu0 %3124 }
0x1800   :  { %v5001_v37 = vmul.f32 %v3125_v8, %v3098_v19  ;;  %3167 = vrot.lane.b32.xlu1 %v3157_v5, %s4149_s7 }
0x1802   :  { %v3158_v11 = vmul.f32 %v5001_v37, %v5001_v37  ;;  %v3239_v19 = vsel %vm3237_vm10, %v4935_v45, %v5001_v37 }
0x1803   :  { %v3127_v52 = vpop.permute.xlu1 %3126 }
0x1804   :  { %v5008_v42 = vmul.f32 %v3127_v52, %v3099_v63  ;;  %3169 = vrot.lane.b32.xlu0 %v3158_v11, %s4149_s7 }
0x1806   :  { %v3159_v62 = vmul.f32 %v5008_v42, %v5008_v42  ;;  %v3240_v17 = vsel %vm3237_vm10, %v4940_v2, %v5008_v42 }
0x1807   :  { %v3129_v13 = vpop.permute.xlu1 %3128 }
0x1808   :  { %v5014_v47 = vmul.f32 %v3129_v13, %v3100_v38  ;;  %3171 = vrot.lane.b32.xlu1 %v3159_v62, %s4149_s7 }
0x180a   :  { %v3160_v33 = vmul.f32 %v5014_v47, %v5014_v47  ;;  %v3241_v37 = vsel %vm3237_vm10, %v4944_v56, %v5014_v47 }
0x180c   :  { %3173 = vrot.lane.b32.xlu0 %v3160_v33, %s4149_s7 }
0x1810   :  { %3202 = vrot.lane.b32.xlu0 %v3147_v61, %s4151_s0 }
0x1814   :  { %3206 = vrot.lane.b32.xlu0 %v3149_v14, %s4151_s0 }
0x1818   :  { %3210 = vrot.lane.b32.xlu0 %v3151_v36, %s4151_s0 }
0x1832   :  { %v3131_v51 = vpop.permute.xlu0 %3130 }
0x1833   :  { %v5023_v25 = vmul.f32 %v3131_v51, %v3101_v7 }
0x1835   :  { %v3161_v34 = vmul.f32 %v5023_v25, %v5023_v25  ;;  %v3242_v42 = vsel %vm3237_vm10, %v4948_v16, %v5023_v25 }
0x1837   :  { %3175 = vrot.lane.b32.xlu1 %v3161_v34, %s4149_s7 }
0x183b   :  { %3204 = vrot.lane.b32.xlu1 %v3148_v40, %s4151_s0 }
0x183f   :  { %3208 = vrot.lane.b32.xlu1 %v3150_v55, %s4151_s0 }
0x1872   :  { %v3168_v18 = vpop.permute.xlu1 %3167 }
0x1873   :  { %v3182_v39 = vadd.f32 %v3168_v18, %v3152_v44 }
0x1875   :  { %v3187_v9 = vmul.f32 -0.5, %v3182_v39 }
0x1876   :  { %v3170_v31 = vpop.permute.xlu0 %3169 }
0x1877   :  { %v3364_v30 = vadd.f32 -1.837877, %v3187_v9  ;;  %v3183_v26 = vadd.f32 %v3170_v31, %v3153_v32 }
0x1879   :  { %v3188_v58 = vmul.f32 -0.5, %v3183_v26  ;;  %3222 = vrot.lane.b32.xlu1 %v3364_v30, %s4152_s21 }
0x187a   :  { %v3172_v54 = vpop.permute.xlu1 %3171 }
0x187b   :  { %v3365_v35 = vadd.f32 -1.837877, %v3188_v58  ;;  %v3184_v53 = vadd.f32 %v3172_v54, %v3154_v1 }
0x187d   :  { %v3189_v50 = vmul.f32 -0.5, %v3184_v53  ;;  %3224 = vrot.lane.b32.xlu0 %v3365_v35, %s4152_s21 }
0x187e   :  { %v3174_v4 = vpop.permute.xlu0 %3173 }
0x187f   :  { %v3366_v23 = vadd.f32 -1.837877, %v3189_v50  ;;  %v3185_v0 = vadd.f32 %v3174_v4, %v3155_v57 }
0x1881   :  { %v3190_v29 = vmul.f32 -0.5, %v3185_v0  ;;  %3226 = vrot.lane.b32.xlu1 %v3366_v23, %s4152_s21 }
0x1882   :  { %v3203_v3 = vpop.permute.xlu0 %3202 }
0x1883   :  { %v3367_v27 = vadd.f32 -1.837877, %v3190_v29  ;;  %v3244_v60 = vsel %vm3243_vm11, %v3238_v10, %v3203_v3 }
0x1885   :  { %3228 = vrot.lane.b32.xlu0 %v3367_v27, %s4152_s21 }
0x1886   :  { %v3207_v24 = vpop.permute.xlu0 %3206 }
0x1887   :  { %v3246_v63 = vsel %vm3243_vm11, %v3240_v17, %v3207_v24 }
0x188a   :  { %v3211_v20 = vpop.permute.xlu0 %3210 }
0x188b   :  { %v3248_v61 = vsel %vm3243_vm11, %v3242_v42, %v3211_v20 }
0x18a9   :  { %v3176_v49 = vpop.permute.xlu1 %3175 }
0x18aa   :  { %v3186_v41 = vadd.f32 %v3176_v49, %v3156_v12 }
0x18ac   :  { %v3191_v59 = vmul.f32 -0.5, %v3186_v41 }
0x18ad   :  { %v3205_v15 = vpop.permute.xlu1 %3204 }
0x18ae   :  { %v3368_v43 = vadd.f32 -1.837877, %v3191_v59  ;;  %v3245_v8 = vsel %vm3243_vm11, %v3239_v19, %v3205_v15 }
0x18b0   :  { %3230 = vrot.lane.b32.xlu1 %v3368_v43, %s4152_s21 }
0x18b1   :  { %v3209_v48 = vpop.permute.xlu1 %3208 }
0x18b2   :  { %v3247_v38 = vsel %vm3243_vm11, %v3241_v37, %v3209_v48 }
0x18eb   :  { %v3223_v22 = vpop.permute.xlu1 %3222 }
0x18ec   :  { %v3250_v6 = vsel %vm3249_vm12, %v3244_v60, %v3223_v22 }
0x18ed   :  { %v3256_v5 = vsel %vm3255_vm13, %v3250_v6, 0.0 }
0x18ee   :  { %3261 = vst [vmem:[#allocation7] sm:$0xff] %v3256_v5 }
0x18ef   :  { %v3225_v46 = vpop.permute.xlu0 %3224 }
0x18f0   :  { %v3251_v11 = vsel %vm3249_vm12, %v3245_v8, %v3225_v46 }
0x18f1   :  { %v3257_v28 = vsel %vm3255_vm13, %v3251_v11, 0.0 }
0x18f2   :  { %3262 = vst [vmem:[#allocation7 + $0x8] sm:$0xff] %v3257_v28 }
0x18f3   :  { %v3227_v52 = vpop.permute.xlu1 %3226 }
0x18f4   :  { %v3252_v62 = vsel %vm3249_vm12, %v3246_v63, %v3227_v52 }
0x18f5   :  { %v3258_v45 = vsel %vm3255_vm13, %v3252_v62, 0.0 }
0x18f6   :  { %3263 = vst [vmem:[#allocation7 + $0x10] sm:$0xff] %v3258_v45 }
0x18f7   :  { %v3229_v13 = vpop.permute.xlu0 %3228 }
0x18f8   :  { %v3253_v33 = vsel %vm3249_vm12, %v3247_v38, %v3229_v13 }
0x18f9   :  { %v3259_v2 = vsel %vm3255_vm13, %v3253_v33, 0.0 }
0x18fa   :  { %3264 = vst [vmem:[#allocation7 + $0x18] sm:$0xff] %v3259_v2 }
0x1922   :  { %v3231_v14 = vpop.permute.xlu1 %3230 }
0x1923   :  { %v3254_v56 = vsel %vm3249_vm12, %v3248_v61, %v3231_v14 }
0x1924   :  { %v3260_v47 = vsel %vm3255_vm13, %v3254_v56, 0.0 }
0x1925   :  { %3265 = vst [vmem:[#allocation7 + $0x20] sm:$0xff] %v3260_v47 }
0x1926   :  { %4124 = shalt.err (!%p4121_p0)
}
0x1927   :  { %3277 = dma.vmem_to_hbm [thread:$0]  %s3272_s23, 640, %s5079_s3, [#allocation4], %s4140_s15, %s4140_s15, %s4141_s16  }
0x1928   :  { %4137 = dma.done.wait [#allocation4], 640  }
0x1929   :  { %4138 = vsyncadd [#allocation4], 4294966656 }
0x192a   :  { %3281 = vsyncpa [#allocation3], 1 }
0x192b   :  { %3282 = vsyncpa [#allocation6], 1 }
0x192c   :  { %3283 = vsyncpa [#allocation4], 1 }

</bundles_post_ra>
